<compile_context>
chip_gen: v7x
topology: tpu7x:2x2x1
jax: 0.10.0
libtpu: 0.0.40
codegen_flags: <defaults>
</compile_context>

<pallas_src>
import functools

import jax
import jax.numpy as jnp
import numpy as np
from jax.experimental import pallas as pl
from jax.experimental.pallas import tpu as pltpu


# ----------------------------------------------------------------------------
# shared math helpers (used identically by the kernel and the pure-JAX reference)
# ----------------------------------------------------------------------------
def _layernorm(x, g, eps=1e-5):
    # PyTorch LayerNorm in this module: scale-only, biased variance, eps=1e-5 (f32).
    mean = jnp.mean(x, axis=-1, keepdims=True)
    xc = x - mean
    var = jnp.mean(xc * xc, axis=-1, keepdims=True)
    return xc * jax.lax.rsqrt(var + eps) * g


def _l2norm(x):
    # F.normalize(x, dim=-1): x / max(||x||, 1e-12)
    ss = jnp.sum(x * x, axis=-1, keepdims=True)
    return x * jax.lax.rsqrt(jnp.maximum(ss, 1e-24))


# ----------------------------------------------------------------------------
# Pallas kernel: one (batch, q-tile) per outer grid point, flash loop over kv tiles
# ----------------------------------------------------------------------------
def attention_kernel(xq_ref, xkv_ref, g_in_ref, wq_ref, wk_ref, wv_ref, nkv_ref,
                     qs_ref, ks_ref, wo_ref, g_out_ref, o_ref,
                     q_scr, m_scr, l_scr, acc_scr, ocat_scr,
                     *, heads, scale):
    f32 = jnp.float32
    cdt = q_scr.dtype                       # compute (matmul-operand) dtype, bf16
    tq = xq_ref.shape[1]
    dh = qs_ref.shape[1]
    j = pl.program_id(2)

    g_in = g_in_ref[...].astype(f32)        # (1, dim)
    k_scale = ks_ref[...].astype(f32)       # (1, dh)

    # ---- once per (b, q-tile): build row-stacked normalized q and initialize the
    #      flash-softmax state with the learned null k/v token ---------------------
    @pl.when(j == 0)
    def _init():
        q_scale = qs_ref[...].astype(f32) * scale          # fold sim scale into q
        xn_q = _layernorm(xq_ref[0].astype(f32), g_in)     # (tq, dim) f32
        # one lane-dense projection for all heads (K=dim, N=heads*dh)
        q_all = jnp.dot(xn_q.astype(cdt), wq_ref[...],
                        preferred_element_type=f32)        # (tq, heads*dh) f32
        nk_n = _l2norm(nkv_ref[0:1, :].astype(f32)) * k_scale   # (1, dh)
        nv_b = jnp.broadcast_to(nkv_ref[1:2, :].astype(f32), (tq, dh))
        ones = jnp.ones((tq, 1), f32)
        for h in range(heads):              # static, small: layout plumbing only
            qh = _l2norm(q_all[:, h * dh:(h + 1) * dh]) * q_scale      # (tq, dh)
            r0, r1 = h * tq, (h + 1) * tq
            q_scr[r0:r1, :] = qh.astype(cdt)
            # null-token score = m init; exp(s0 - m) == 1 -> l = 1, acc = nv
            m_scr[r0:r1, :] = jnp.sum(qh * nk_n, axis=-1, keepdims=True)
            l_scr[r0:r1, :] = ones
            acc_scr[r0:r1, :] = nv_b

    # ---- every (b, i, j): one flash step over this kv tile (K/V shared by heads) ---
    xn_kv = _layernorm(xkv_ref[0].astype(f32), g_in)       # (tkv, dim) f32
    xn_kv_c = xn_kv.astype(cdt)
    k = jnp.dot(xn_kv_c, wk_ref[...], preferred_element_type=f32)      # (tkv, dh)
    v = jnp.dot(xn_kv_c, wv_ref[...], preferred_element_type=f32)      # (tkv, dh)
    k_n = (_l2norm(k) * k_scale).astype(cdt)
    v_c = v.astype(cdt)

    q = q_scr[...]                                          # (heads*tq, dh) bf16
    # one batched-heads score matmul; k transposed once (not once per head)
    s = jax.lax.dot_general(q, k_n, (((1,), (1,)), ((), ())),
                            preferred_element_type=f32)     # (heads*tq, tkv) f32

    m_prev = m_scr[...]
    m_new = jnp.maximum(m_prev, jnp.max(s, axis=-1, keepdims=True))
    alpha = jnp.exp(m_prev - m_new)
    p = jnp.exp(s - m_new)                                  # f32 softmax numerics
    l_scr[...] = alpha * l_scr[...] + jnp.sum(p, axis=-1, keepdims=True)
    acc_scr[...] = alpha * acc_scr[...] + jnp.dot(p.astype(cdt), v_c,
                                                  preferred_element_type=f32)
    m_scr[...] = m_new

    # ---- last kv tile: normalize, gather heads along lanes, to_out + LayerNorm ----
    @pl.when(j == pl.num_programs(2) - 1)
    def _finish():
        inv_l = pl.reciprocal(l_scr[...], approx=True)      # EUP slot
        for h in range(heads):
            r0, r1 = h * tq, (h + 1) * tq
            ocat_scr[:, h * dh:(h + 1) * dh] = (
                acc_scr[r0:r1, :] * inv_l[r0:r1, :]).astype(cdt)
        # single deep output projection: (tq, heads*dh) @ (heads*dh, dim)
        y = jnp.dot(ocat_scr[...], wo_ref[...], preferred_element_type=f32)
        o_ref[0] = _layernorm(y, g_out_ref[...].astype(f32)).astype(o_ref.dtype)


# ----------------------------------------------------------------------------
# wrapper
# ----------------------------------------------------------------------------
def attention_forward(x, g_in, w_q, w_kv, null_kv, q_scale, k_scale, w_out, g_out,
                      *, heads, scale=8.0, tq=None, tkv=None,
                      compute_dtype=jnp.bfloat16):
    """Pallas-backed equivalent of Attention.forward(x) (context/mask/bias = None)."""
    B, n, dim = x.shape
    dh = q_scale.shape[0]
    inner = heads * dh
    f32 = jnp.float32

    # tile sizes (re-derive for v7x 64 MiB VMEM if activations are huge)
    tq = min(n, 256) if tq is None else tq
    tkv = min(n, 512) if tkv is None else tkv
    assert n % tq == 0 and n % tkv == 0, "sequence length must be divisible by tiles"
    if tq < n:
        assert tq % 8 == 0
    if tkv < n:
        assert tkv % 8 == 0
    grid = (B, n // tq, n // tkv)

    # Wkv split in the wrapper (trace-time, free) -> no mid-vreg lane slices in-kernel
    w_k = w_kv[:, :dh]
    w_v = w_kv[:, dh:]

    kernel = functools.partial(attention_kernel, heads=heads, scale=float(scale))

    return pl.pallas_call(
        kernel,
        out_shape=jax.ShapeDtypeStruct((B, n, dim), f32),
        grid_spec=pltpu.PrefetchScalarGridSpec(
            num_scalar_prefetch=0,
            grid=grid,
            in_specs=[
                pl.BlockSpec((1, tq, dim),  lambda b, i, j: (b, i, 0)),   # x (q tile)
                pl.BlockSpec((1, tkv, dim), lambda b, i, j: (b, j, 0)),   # x (kv tile)
                pl.BlockSpec((1, dim),      lambda b, i, j: (0, 0)),      # norm.g
                pl.BlockSpec((dim, inner),  lambda b, i, j: (0, 0)),      # Wq
                pl.BlockSpec((dim, dh),     lambda b, i, j: (0, 0)),      # Wk
                pl.BlockSpec((dim, dh),     lambda b, i, j: (0, 0)),      # Wv
                pl.BlockSpec((2, dh),       lambda b, i, j: (0, 0)),      # null_kv
                pl.BlockSpec((1, dh),       lambda b, i, j: (0, 0)),      # q_scale
                pl.BlockSpec((1, dh),       lambda b, i, j: (0, 0)),      # k_scale
                pl.BlockSpec((inner, dim),  lambda b, i, j: (0, 0)),      # Wout
                pl.BlockSpec((1, dim),      lambda b, i, j: (0, 0)),      # out-norm.g
            ],
            out_specs=pl.BlockSpec((1, tq, dim), lambda b, i, j: (b, i, 0)),
            scratch_shapes=[
                pltpu.VMEM((heads * tq, dh), compute_dtype),   # stacked normalized q
                pltpu.VMEM((heads * tq, 1), f32),              # running max m
                pltpu.VMEM((heads * tq, 1), f32),              # running sum l
                pltpu.VMEM((heads * tq, dh), f32),             # running PV accumulator
                pltpu.VMEM((tq, inner), compute_dtype),        # heads gathered on lanes
            ],
        ),
        compiler_params=pltpu.CompilerParams(
            dimension_semantics=("parallel", "parallel", "arbitrary"),
            vmem_limit_bytes=48 * 1024 * 1024,
        ),
    )(x.astype(compute_dtype),                 # x for q tile
      x.astype(compute_dtype),                 # x for kv tile
      g_in.reshape(1, dim).astype(f32),
      w_q.astype(compute_dtype),
      w_k.astype(compute_dtype),
      w_v.astype(compute_dtype),
      null_kv.astype(f32),
      q_scale.reshape(1, dh).astype(f32),
      k_scale.reshape(1, dh).astype(f32),
      w_out.astype(compute_dtype),
      g_out.reshape(1, dim).astype(f32))


# ----------------------------------------------------------------------------
# pure-JAX f32 reference mirroring the PyTorch module
# ----------------------------------------------------------------------------
def reference_forward(x, g_in, w_q, w_kv, null_kv, q_scale, k_scale, w_out, g_out,
                      *, heads, scale=8.0):
    B, n, dim = x.shape
    dh = q_scale.shape[0]

    xn = _layernorm(x, g_in)
    q = xn @ w_q                                             # (B, n, heads*dh)
    kv = xn @ w_kv
    k, v = kv[..., :dh], kv[..., dh:]

    q = q.reshape(B, n, heads, dh).transpose(0, 2, 1, 3)     # b h n d
    nk = jnp.broadcast_to(null_kv[0], (B, 1, dh))
    nv = jnp.broadcast_to(null_kv[1], (B, 1, dh))
    k = jnp.concatenate([nk, k], axis=1)                     # (B, n+1, dh)
    v = jnp.concatenate([nv, v], axis=1)

    q = _l2norm(q) * q_scale
    k = _l2norm(k) * k_scale
    sim = jnp.einsum('bhid,bjd->bhij', q, k) * scale
    attn = jax.nn.softmax(sim.astype(jnp.float32), axis=-1)
    out = jnp.einsum('bhij,bjd->bhid', attn, v)
    out = out.transpose(0, 2, 1, 3).reshape(B, n, heads * dh)
    y = out @ w_out
    return _layernorm(y, g_out)


# ----------------------------------------------------------------------------
if __name__ == "__main__":
    # Small shapes consistent with module defaults (dim_head=64, heads=8, scale=8),
    # sized so the flash grid actually has multiple q and kv tiles: grid = (2, 2, 2).
    B, n, dim = 2, 32, 32
    heads, dh, scale = 8, 64, 8.0
    inner = heads * dh

    key = jax.random.PRNGKey(0)
    ks = jax.random.split(key, 9)
    x = jax.random.normal(ks[0], (B, n, dim), jnp.float32)
    w_q = jax.random.normal(ks[1], (dim, inner), jnp.float32) * 0.05
    w_kv = jax.random.normal(ks[2], (dim, 2 * dh), jnp.float32) * 0.05
    null_kv = jax.random.normal(ks[3], (2, dh), jnp.float32)
    q_scale = 1.0 + 0.1 * jax.random.normal(ks[4], (dh,), jnp.float32)
    k_scale = 1.0 + 0.1 * jax.random.normal(ks[5], (dh,), jnp.float32)
    w_out = jax.random.normal(ks[6], (inner, dim), jnp.float32) * 0.05
    g_in = 1.0 + 0.1 * jax.random.normal(ks[7], (dim,), jnp.float32)
    g_out = 1.0 + 0.1 * jax.random.normal(ks[8], (dim,), jnp.float32)

    out = jax.block_until_ready(
        attention_forward(x, g_in, w_q, w_kv, null_kv, q_scale, k_scale,
                          w_out, g_out, heads=heads, scale=scale, tq=16, tkv=16))
    ref = jax.block_until_ready(
        reference_forward(x, g_in, w_q, w_kv, null_kv, q_scale, k_scale,
                          w_out, g_out, heads=heads, scale=scale))

    # bf16 matmul operands (f32 accumulation) vs. an all-f32 reference -> bf16-level
    # tolerance on the LayerNorm-ed O(1) outputs.
    np.testing.assert_allclose(np.asarray(out), np.asarray(ref),
                               rtol=6e-2, atol=6e-2)
    print("KERNEL_OK")
</pallas_src>

<mosaic_0001>
module attributes {stable_mosaic.version = 11 : i64} {
  func.func @attention_kernel(%arg0: i32, %arg1: i32, %arg2: i32, %arg3: memref<1x16x32xbf16, #tpu.memory_space<vmem>>, %arg4: memref<1x16x32xbf16, #tpu.memory_space<vmem>>, %arg5: memref<1x32xf32, #tpu.memory_space<vmem>>, %arg6: memref<32x512xbf16, #tpu.memory_space<vmem>>, %arg7: memref<32x64xbf16, #tpu.memory_space<vmem>>, %arg8: memref<32x64xbf16, #tpu.memory_space<vmem>>, %arg9: memref<2x64xf32, #tpu.memory_space<vmem>>, %arg10: memref<1x64xf32, #tpu.memory_space<vmem>>, %arg11: memref<1x64xf32, #tpu.memory_space<vmem>>, %arg12: memref<512x32xbf16, #tpu.memory_space<vmem>>, %arg13: memref<1x32xf32, #tpu.memory_space<vmem>>, %arg14: memref<1x16x32xf32, #tpu.memory_space<vmem>>, %arg15: memref<128x64xbf16, #tpu.memory_space<vmem>>, %arg16: memref<128x1xf32, #tpu.memory_space<vmem>>, %arg17: memref<128x1xf32, #tpu.memory_space<vmem>>, %arg18: memref<128x64xf32, #tpu.memory_space<vmem>>, %arg19: memref<16x512xbf16, #tpu.memory_space<vmem>>) attributes {dimension_semantics = [#tpu.dimension_semantics<parallel>, #tpu.dimension_semantics<parallel>, #tpu.dimension_semantics<arbitrary>], iteration_bounds = array<i64: 2, 2, 2>, scalar_prefetch = 0 : i64, scratch_operands = 5 : i64, tpu.core_type = #tpu.core_type<tc>, window_params = [{transform_indices = @transform_0, window_bounds = array<i64: 1, 16, 32>}, {transform_indices = @transform_1, window_bounds = array<i64: 1, 16, 32>}, {pipeline_mode = #tpu.pipeline_mode<synchronous>, transform_indices = @transform_2, window_bounds = array<i64: 1, 32>}, {pipeline_mode = #tpu.pipeline_mode<synchronous>, transform_indices = @transform_3, window_bounds = array<i64: 32, 512>}, {pipeline_mode = #tpu.pipeline_mode<synchronous>, transform_indices = @transform_4, window_bounds = array<i64: 32, 64>}, {pipeline_mode = #tpu.pipeline_mode<synchronous>, transform_indices = @transform_5, window_bounds = array<i64: 32, 64>}, {pipeline_mode = #tpu.pipeline_mode<synchronous>, transform_indices = @transform_6, window_bounds = array<i64: 2, 64>}, {pipeline_mode = #tpu.pipeline_mode<synchronous>, transform_indices = @transform_7, window_bounds = array<i64: 1, 64>}, {pipeline_mode = #tpu.pipeline_mode<synchronous>, transform_indices = @transform_8, window_bounds = array<i64: 1, 64>}, {pipeline_mode = #tpu.pipeline_mode<synchronous>, transform_indices = @transform_9, window_bounds = array<i64: 512, 32>}, {pipeline_mode = #tpu.pipeline_mode<synchronous>, transform_indices = @transform_10, window_bounds = array<i64: 1, 32>}, {transform_indices = @transform_11, window_bounds = array<i64: 1, 16, 32>}]} {
    %c0 = arith.constant 0 : index
    %c0_0 = arith.constant 0 : index
    %0 = vector.load %arg5[%c0, %c0_0] : memref<1x32xf32, #tpu.memory_space<vmem>>, vector<1x32xf32>
    %c0_1 = arith.constant 0 : index
    %c0_2 = arith.constant 0 : index
    %1 = vector.load %arg11[%c0_1, %c0_2] : memref<1x64xf32, #tpu.memory_space<vmem>>, vector<1x64xf32>
    %c0_i32 = arith.constant 0 : i32
    %2 = arith.cmpi eq, %arg2, %c0_i32 : i32
    %3 = arith.extui %2 : i1 to i32
    %c0_i32_3 = arith.constant 0 : i32
    %4 = arith.cmpi ne, %3, %c0_i32_3 : i32
    scf.if %4 {
      %c0_38 = arith.constant 0 : index
      %c0_39 = arith.constant 0 : index
      %71 = vector.load %arg10[%c0_38, %c0_39] : memref<1x64xf32, #tpu.memory_space<vmem>>, vector<1x64xf32>
      %cst_40 = arith.constant 8.000000e+00 : f32
      %72 = vector.broadcast %cst_40 : f32 to vector<1x64xf32>
      %73 = arith.mulf %71, %72 : vector<1x64xf32>
      %c0_41 = arith.constant 0 : index
      %c0_42 = arith.constant 0 : index
      %c0_43 = arith.constant 0 : index
      %74 = vector.load %arg3[%c0_41, %c0_42, %c0_43] : memref<1x16x32xbf16, #tpu.memory_space<vmem>>, vector<1x16x32xbf16>
      %75 = vector.shape_cast %74 : vector<1x16x32xbf16> to vector<16x32xbf16>
      %76 = arith.extf %75 : vector<16x32xbf16> to vector<16x32xf32>
      %cst_44 = arith.constant dense<0.000000e+00> : vector<16xf32>
      %77 = vector.multi_reduction <add>, %76, %cst_44 [1] : vector<16x32xf32> to vector<16xf32>
      %78 = vector.shape_cast %77 : vector<16xf32> to vector<16x1xf32>
      %cst_45 = arith.constant 3.200000e+01 : f32
      %79 = vector.broadcast %cst_45 : f32 to vector<16x1xf32>
      %80 = arith.divf %78, %79 : vector<16x1xf32>
      %81 = vector.broadcast %80 : vector<16x1xf32> to vector<16x32xf32>
      %82 = arith.subf %76, %81 : vector<16x32xf32>
      %83 = arith.mulf %82, %82 : vector<16x32xf32>
      %cst_46 = arith.constant dense<0.000000e+00> : vector<16xf32>
      %84 = vector.multi_reduction <add>, %83, %cst_46 [1] : vector<16x32xf32> to vector<16xf32>
      %85 = vector.shape_cast %84 : vector<16xf32> to vector<16x1xf32>
      %cst_47 = arith.constant 3.200000e+01 : f32
      %86 = vector.broadcast %cst_47 : f32 to vector<16x1xf32>
      %87 = arith.divf %85, %86 : vector<16x1xf32>
      %cst_48 = arith.constant 9.99999974E-6 : f32
      %88 = vector.broadcast %cst_48 : f32 to vector<16x1xf32>
      %89 = arith.addf %87, %88 : vector<16x1xf32>
      %90 = math.rsqrt %89 : vector<16x1xf32>
      %91 = vector.broadcast %90 : vector<16x1xf32> to vector<16x32xf32>
      %92 = arith.mulf %82, %91 : vector<16x32xf32>
      %93 = vector.broadcast %0 : vector<1x32xf32> to vector<16x32xf32>
      %94 = arith.mulf %92, %93 : vector<16x32xf32>
      %95 = arith.truncf %94 : vector<16x32xf32> to vector<16x32xbf16>
      %c0_49 = arith.constant 0 : index
      %c0_50 = arith.constant 0 : index
      %96 = vector.load %arg6[%c0_49, %c0_50] : memref<32x512xbf16, #tpu.memory_space<vmem>>, vector<32x512xbf16>
      %cst_51 = arith.constant dense<0.000000e+00> : vector<16x512xf32>
      %97 = tpu.matmul %95, %96, %cst_51 {dimension_numbers = #tpu.dot_dimension_numbers<[1], [0], [0], [1], [0, 0, 1, 1], [], []>} : vector<16x32xbf16>, vector<32x512xbf16>, vector<16x512xf32> -> vector<16x512xf32>
      %c0_52 = arith.constant 0 : index
      %c0_53 = arith.constant 0 : index
      %98 = vector.load %arg9[%c0_52, %c0_53] : memref<2x64xf32, #tpu.memory_space<vmem>>, vector<1x64xf32>
      %99 = arith.mulf %98, %98 : vector<1x64xf32>
      %cst_54 = arith.constant dense<0.000000e+00> : vector<1xf32>
      %100 = vector.multi_reduction <add>, %99, %cst_54 [1] : vector<1x64xf32> to vector<1xf32>
      %101 = vector.shape_cast %100 : vector<1xf32> to vector<1x1xf32>
      %cst_55 = arith.constant 1.000000e-24 : f32
      %102 = vector.broadcast %cst_55 : f32 to vector<1x1xf32>
      %103 = arith.maximumf %101, %102 : vector<1x1xf32>
      %104 = math.rsqrt %103 : vector<1x1xf32>
      %105 = vector.broadcast %104 : vector<1x1xf32> to vector<1x64xf32>
      %106 = arith.mulf %98, %105 : vector<1x64xf32>
      %107 = arith.mulf %106, %1 : vector<1x64xf32>
      %c1 = arith.constant 1 : index
      %c0_56 = arith.constant 0 : index
      %108 = vector.load %arg9[%c1, %c0_56] : memref<2x64xf32, #tpu.memory_space<vmem>>, vector<1x64xf32>
      %109 = vector.shape_cast %108 : vector<1x64xf32> to vector<1x64xf32>
      %110 = vector.broadcast %109 : vector<1x64xf32> to vector<16x64xf32>
      %cst_57 = arith.constant 1.000000e+00 : f32
      %111 = vector.broadcast %cst_57 : f32 to vector<16x1xf32>
      %112 = vector.extract_strided_slice %97 {offsets = [0, 0], sizes = [16, 64], strides = [1, 1]} : vector<16x512xf32> to vector<16x64xf32>
      %113 = arith.mulf %112, %112 : vector<16x64xf32>
      %cst_58 = arith.constant dense<0.000000e+00> : vector<16xf32>
      %114 = vector.multi_reduction <add>, %113, %cst_58 [1] : vector<16x64xf32> to vector<16xf32>
      %115 = vector.shape_cast %114 : vector<16xf32> to vector<16x1xf32>
      %cst_59 = arith.constant 1.000000e-24 : f32
      %116 = vector.broadcast %cst_59 : f32 to vector<16x1xf32>
      %117 = arith.maximumf %115, %116 : vector<16x1xf32>
      %118 = math.rsqrt %117 : vector<16x1xf32>
      %119 = vector.broadcast %118 : vector<16x1xf32> to vector<16x64xf32>
      %120 = arith.mulf %112, %119 : vector<16x64xf32>
      %121 = vector.broadcast %73 : vector<1x64xf32> to vector<16x64xf32>
      %122 = arith.mulf %120, %121 : vector<16x64xf32>
      %123 = arith.truncf %122 : vector<16x64xf32> to vector<16x64xbf16>
      %c0_60 = arith.constant 0 : index
      %c0_61 = arith.constant 0 : index
      %124 = vector.load %arg15[%c0_60, %c0_61] : memref<128x64xbf16, #tpu.memory_space<vmem>>, vector<16x64xbf16>
      tpu.vector_store %arg15[%c0_60, %c0_61], %123 {strides = array<i32>} : memref<128x64xbf16, #tpu.memory_space<vmem>>, vector<16x64xbf16>,
      %125 = vector.broadcast %107 : vector<1x64xf32> to vector<16x64xf32>
      %126 = arith.mulf %122, %125 : vector<16x64xf32>
      %cst_62 = arith.constant dense<0.000000e+00> : vector<16xf32>
      %127 = vector.multi_reduction <add>, %126, %cst_62 [1] : vector<16x64xf32> to vector<16xf32>
      %128 = vector.shape_cast %127 : vector<16xf32> to vector<16x1xf32>
      %c0_63 = arith.constant 0 : index
      %c0_64 = arith.constant 0 : index
      %129 = vector.load %arg16[%c0_63, %c0_64] : memref<128x1xf32, #tpu.memory_space<vmem>>, vector<16x1xf32>
      tpu.vector_store %arg16[%c0_63, %c0_64], %128 {strides = array<i32>} : memref<128x1xf32, #tpu.memory_space<vmem>>, vector<16x1xf32>,
      %c0_65 = arith.constant 0 : index
      %c0_66 = arith.constant 0 : index
      %130 = vector.load %arg17[%c0_65, %c0_66] : memref<128x1xf32, #tpu.memory_space<vmem>>, vector<16x1xf32>
      tpu.vector_store %arg17[%c0_65, %c0_66], %111 {strides = array<i32>} : memref<128x1xf32, #tpu.memory_space<vmem>>, vector<16x1xf32>,
      %c0_67 = arith.constant 0 : index
      %c0_68 = arith.constant 0 : index
      %131 = vector.load %arg18[%c0_67, %c0_68] : memref<128x64xf32, #tpu.memory_space<vmem>>, vector<16x64xf32>
      tpu.vector_store %arg18[%c0_67, %c0_68], %110 {strides = array<i32>} : memref<128x64xf32, #tpu.memory_space<vmem>>, vector<16x64xf32>,
      %132 = vector.extract_strided_slice %97 {offsets = [0, 64], sizes = [16, 64], strides = [1, 1]} : vector<16x512xf32> to vector<16x64xf32>
      %133 = arith.mulf %132, %132 : vector<16x64xf32>
      %cst_69 = arith.constant dense<0.000000e+00> : vector<16xf32>
      %134 = vector.multi_reduction <add>, %133, %cst_69 [1] : vector<16x64xf32> to vector<16xf32>
      %135 = vector.shape_cast %134 : vector<16xf32> to vector<16x1xf32>
      %cst_70 = arith.constant 1.000000e-24 : f32
      %136 = vector.broadcast %cst_70 : f32 to vector<16x1xf32>
      %137 = arith.maximumf %135, %136 : vector<16x1xf32>
      %138 = math.rsqrt %137 : vector<16x1xf32>
      %139 = vector.broadcast %138 : vector<16x1xf32> to vector<16x64xf32>
      %140 = arith.mulf %132, %139 : vector<16x64xf32>
      %141 = vector.broadcast %73 : vector<1x64xf32> to vector<16x64xf32>
      %142 = arith.mulf %140, %141 : vector<16x64xf32>
      %143 = arith.truncf %142 : vector<16x64xf32> to vector<16x64xbf16>
      %c16 = arith.constant 16 : index
      %c0_71 = arith.constant 0 : index
      %144 = vector.load %arg15[%c16, %c0_71] : memref<128x64xbf16, #tpu.memory_space<vmem>>, vector<16x64xbf16>
      tpu.vector_store %arg15[%c16, %c0_71], %143 {strides = array<i32>} : memref<128x64xbf16, #tpu.memory_space<vmem>>, vector<16x64xbf16>,
      %145 = vector.broadcast %107 : vector<1x64xf32> to vector<16x64xf32>
      %146 = arith.mulf %142, %145 : vector<16x64xf32>
      %cst_72 = arith.constant dense<0.000000e+00> : vector<16xf32>
      %147 = vector.multi_reduction <add>, %146, %cst_72 [1] : vector<16x64xf32> to vector<16xf32>
      %148 = vector.shape_cast %147 : vector<16xf32> to vector<16x1xf32>
      %c16_73 = arith.constant 16 : index
      %c0_74 = arith.constant 0 : index
      %149 = vector.load %arg16[%c16_73, %c0_74] : memref<128x1xf32, #tpu.memory_space<vmem>>, vector<16x1xf32>
      tpu.vector_store %arg16[%c16_73, %c0_74], %148 {strides = array<i32>} : memref<128x1xf32, #tpu.memory_space<vmem>>, vector<16x1xf32>,
      %c16_75 = arith.constant 16 : index
      %c0_76 = arith.constant 0 : index
      %150 = vector.load %arg17[%c16_75, %c0_76] : memref<128x1xf32, #tpu.memory_space<vmem>>, vector<16x1xf32>
      tpu.vector_store %arg17[%c16_75, %c0_76], %111 {strides = array<i32>} : memref<128x1xf32, #tpu.memory_space<vmem>>, vector<16x1xf32>,
      %c16_77 = arith.constant 16 : index
      %c0_78 = arith.constant 0 : index
      %151 = vector.load %arg18[%c16_77, %c0_78] : memref<128x64xf32, #tpu.memory_space<vmem>>, vector<16x64xf32>
      tpu.vector_store %arg18[%c16_77, %c0_78], %110 {strides = array<i32>} : memref<128x64xf32, #tpu.memory_space<vmem>>, vector<16x64xf32>,
      %152 = vector.extract_strided_slice %97 {offsets = [0, 128], sizes = [16, 64], strides = [1, 1]} : vector<16x512xf32> to vector<16x64xf32>
      %153 = arith.mulf %152, %152 : vector<16x64xf32>
      %cst_79 = arith.constant dense<0.000000e+00> : vector<16xf32>
      %154 = vector.multi_reduction <add>, %153, %cst_79 [1] : vector<16x64xf32> to vector<16xf32>
      %155 = vector.shape_cast %154 : vector<16xf32> to vector<16x1xf32>
      %cst_80 = arith.constant 1.000000e-24 : f32
      %156 = vector.broadcast %cst_80 : f32 to vector<16x1xf32>
      %157 = arith.maximumf %155, %156 : vector<16x1xf32>
      %158 = math.rsqrt %157 : vector<16x1xf32>
      %159 = vector.broadcast %158 : vector<16x1xf32> to vector<16x64xf32>
      %160 = arith.mulf %152, %159 : vector<16x64xf32>
      %161 = vector.broadcast %73 : vector<1x64xf32> to vector<16x64xf32>
      %162 = arith.mulf %160, %161 : vector<16x64xf32>
      %163 = arith.truncf %162 : vector<16x64xf32> to vector<16x64xbf16>
      %c32 = arith.constant 32 : index
      %c0_81 = arith.constant 0 : index
      %164 = vector.load %arg15[%c32, %c0_81] : memref<128x64xbf16, #tpu.memory_space<vmem>>, vector<16x64xbf16>
      tpu.vector_store %arg15[%c32, %c0_81], %163 {strides = array<i32>} : memref<128x64xbf16, #tpu.memory_space<vmem>>, vector<16x64xbf16>,
      %165 = vector.broadcast %107 : vector<1x64xf32> to vector<16x64xf32>
      %166 = arith.mulf %162, %165 : vector<16x64xf32>
      %cst_82 = arith.constant dense<0.000000e+00> : vector<16xf32>
      %167 = vector.multi_reduction <add>, %166, %cst_82 [1] : vector<16x64xf32> to vector<16xf32>
      %168 = vector.shape_cast %167 : vector<16xf32> to vector<16x1xf32>
      %c32_83 = arith.constant 32 : index
      %c0_84 = arith.constant 0 : index
      %169 = vector.load %arg16[%c32_83, %c0_84] : memref<128x1xf32, #tpu.memory_space<vmem>>, vector<16x1xf32>
      tpu.vector_store %arg16[%c32_83, %c0_84], %168 {strides = array<i32>} : memref<128x1xf32, #tpu.memory_space<vmem>>, vector<16x1xf32>,
      %c32_85 = arith.constant 32 : index
      %c0_86 = arith.constant 0 : index
      %170 = vector.load %arg17[%c32_85, %c0_86] : memref<128x1xf32, #tpu.memory_space<vmem>>, vector<16x1xf32>
      tpu.vector_store %arg17[%c32_85, %c0_86], %111 {strides = array<i32>} : memref<128x1xf32, #tpu.memory_space<vmem>>, vector<16x1xf32>,
      %c32_87 = arith.constant 32 : index
      %c0_88 = arith.constant 0 : index
      %171 = vector.load %arg18[%c32_87, %c0_88] : memref<128x64xf32, #tpu.memory_space<vmem>>, vector<16x64xf32>
      tpu.vector_store %arg18[%c32_87, %c0_88], %110 {strides = array<i32>} : memref<128x64xf32, #tpu.memory_space<vmem>>, vector<16x64xf32>,
      %172 = vector.extract_strided_slice %97 {offsets = [0, 192], sizes = [16, 64], strides = [1, 1]} : vector<16x512xf32> to vector<16x64xf32>
      %173 = arith.mulf %172, %172 : vector<16x64xf32>
      %cst_89 = arith.constant dense<0.000000e+00> : vector<16xf32>
      %174 = vector.multi_reduction <add>, %173, %cst_89 [1] : vector<16x64xf32> to vector<16xf32>
      %175 = vector.shape_cast %174 : vector<16xf32> to vector<16x1xf32>
      %cst_90 = arith.constant 1.000000e-24 : f32
      %176 = vector.broadcast %cst_90 : f32 to vector<16x1xf32>
      %177 = arith.maximumf %175, %176 : vector<16x1xf32>
      %178 = math.rsqrt %177 : vector<16x1xf32>
      %179 = vector.broadcast %178 : vector<16x1xf32> to vector<16x64xf32>
      %180 = arith.mulf %172, %179 : vector<16x64xf32>
      %181 = vector.broadcast %73 : vector<1x64xf32> to vector<16x64xf32>
      %182 = arith.mulf %180, %181 : vector<16x64xf32>
      %183 = arith.truncf %182 : vector<16x64xf32> to vector<16x64xbf16>
      %c48 = arith.constant 48 : index
      %c0_91 = arith.constant 0 : index
      %184 = vector.load %arg15[%c48, %c0_91] : memref<128x64xbf16, #tpu.memory_space<vmem>>, vector<16x64xbf16>
      tpu.vector_store %arg15[%c48, %c0_91], %183 {strides = array<i32>} : memref<128x64xbf16, #tpu.memory_space<vmem>>, vector<16x64xbf16>,
      %185 = vector.broadcast %107 : vector<1x64xf32> to vector<16x64xf32>
      %186 = arith.mulf %182, %185 : vector<16x64xf32>
      %cst_92 = arith.constant dense<0.000000e+00> : vector<16xf32>
      %187 = vector.multi_reduction <add>, %186, %cst_92 [1] : vector<16x64xf32> to vector<16xf32>
      %188 = vector.shape_cast %187 : vector<16xf32> to vector<16x1xf32>
      %c48_93 = arith.constant 48 : index
      %c0_94 = arith.constant 0 : index
      %189 = vector.load %arg16[%c48_93, %c0_94] : memref<128x1xf32, #tpu.memory_space<vmem>>, vector<16x1xf32>
      tpu.vector_store %arg16[%c48_93, %c0_94], %188 {strides = array<i32>} : memref<128x1xf32, #tpu.memory_space<vmem>>, vector<16x1xf32>,
      %c48_95 = arith.constant 48 : index
      %c0_96 = arith.constant 0 : index
      %190 = vector.load %arg17[%c48_95, %c0_96] : memref<128x1xf32, #tpu.memory_space<vmem>>, vector<16x1xf32>
      tpu.vector_store %arg17[%c48_95, %c0_96], %111 {strides = array<i32>} : memref<128x1xf32, #tpu.memory_space<vmem>>, vector<16x1xf32>,
      %c48_97 = arith.constant 48 : index
      %c0_98 = arith.constant 0 : index
      %191 = vector.load %arg18[%c48_97, %c0_98] : memref<128x64xf32, #tpu.memory_space<vmem>>, vector<16x64xf32>
      tpu.vector_store %arg18[%c48_97, %c0_98], %110 {strides = array<i32>} : memref<128x64xf32, #tpu.memory_space<vmem>>, vector<16x64xf32>,
      %192 = vector.extract_strided_slice %97 {offsets = [0, 256], sizes = [16, 64], strides = [1, 1]} : vector<16x512xf32> to vector<16x64xf32>
      %193 = arith.mulf %192, %192 : vector<16x64xf32>
      %cst_99 = arith.constant dense<0.000000e+00> : vector<16xf32>
      %194 = vector.multi_reduction <add>, %193, %cst_99 [1] : vector<16x64xf32> to vector<16xf32>
      %195 = vector.shape_cast %194 : vector<16xf32> to vector<16x1xf32>
      %cst_100 = arith.constant 1.000000e-24 : f32
      %196 = vector.broadcast %cst_100 : f32 to vector<16x1xf32>
      %197 = arith.maximumf %195, %196 : vector<16x1xf32>
      %198 = math.rsqrt %197 : vector<16x1xf32>
      %199 = vector.broadcast %198 : vector<16x1xf32> to vector<16x64xf32>
      %200 = arith.mulf %192, %199 : vector<16x64xf32>
      %201 = vector.broadcast %73 : vector<1x64xf32> to vector<16x64xf32>
      %202 = arith.mulf %200, %201 : vector<16x64xf32>
      %203 = arith.truncf %202 : vector<16x64xf32> to vector<16x64xbf16>
      %c64 = arith.constant 64 : index
      %c0_101 = arith.constant 0 : index
      %204 = vector.load %arg15[%c64, %c0_101] : memref<128x64xbf16, #tpu.memory_space<vmem>>, vector<16x64xbf16>
      tpu.vector_store %arg15[%c64, %c0_101], %203 {strides = array<i32>} : memref<128x64xbf16, #tpu.memory_space<vmem>>, vector<16x64xbf16>,
      %205 = vector.broadcast %107 : vector<1x64xf32> to vector<16x64xf32>
      %206 = arith.mulf %202, %205 : vector<16x64xf32>
      %cst_102 = arith.constant dense<0.000000e+00> : vector<16xf32>
      %207 = vector.multi_reduction <add>, %206, %cst_102 [1] : vector<16x64xf32> to vector<16xf32>
      %208 = vector.shape_cast %207 : vector<16xf32> to vector<16x1xf32>
      %c64_103 = arith.constant 64 : index
      %c0_104 = arith.constant 0 : index
      %209 = vector.load %arg16[%c64_103, %c0_104] : memref<128x1xf32, #tpu.memory_space<vmem>>, vector<16x1xf32>
      tpu.vector_store %arg16[%c64_103, %c0_104], %208 {strides = array<i32>} : memref<128x1xf32, #tpu.memory_space<vmem>>, vector<16x1xf32>,
      %c64_105 = arith.constant 64 : index
      %c0_106 = arith.constant 0 : index
      %210 = vector.load %arg17[%c64_105, %c0_106] : memref<128x1xf32, #tpu.memory_space<vmem>>, vector<16x1xf32>
      tpu.vector_store %arg17[%c64_105, %c0_106], %111 {strides = array<i32>} : memref<128x1xf32, #tpu.memory_space<vmem>>, vector<16x1xf32>,
      %c64_107 = arith.constant 64 : index
      %c0_108 = arith.constant 0 : index
      %211 = vector.load %arg18[%c64_107, %c0_108] : memref<128x64xf32, #tpu.memory_space<vmem>>, vector<16x64xf32>
      tpu.vector_store %arg18[%c64_107, %c0_108], %110 {strides = array<i32>} : memref<128x64xf32, #tpu.memory_space<vmem>>, vector<16x64xf32>,
      %212 = vector.extract_strided_slice %97 {offsets = [0, 320], sizes = [16, 64], strides = [1, 1]} : vector<16x512xf32> to vector<16x64xf32>
      %213 = arith.mulf %212, %212 : vector<16x64xf32>
      %cst_109 = arith.constant dense<0.000000e+00> : vector<16xf32>
      %214 = vector.multi_reduction <add>, %213, %cst_109 [1] : vector<16x64xf32> to vector<16xf32>
      %215 = vector.shape_cast %214 : vector<16xf32> to vector<16x1xf32>
      %cst_110 = arith.constant 1.000000e-24 : f32
      %216 = vector.broadcast %cst_110 : f32 to vector<16x1xf32>
      %217 = arith.maximumf %215, %216 : vector<16x1xf32>
      %218 = math.rsqrt %217 : vector<16x1xf32>
      %219 = vector.broadcast %218 : vector<16x1xf32> to vector<16x64xf32>
      %220 = arith.mulf %212, %219 : vector<16x64xf32>
      %221 = vector.broadcast %73 : vector<1x64xf32> to vector<16x64xf32>
      %222 = arith.mulf %220, %221 : vector<16x64xf32>
      %223 = arith.truncf %222 : vector<16x64xf32> to vector<16x64xbf16>
      %c80 = arith.constant 80 : index
      %c0_111 = arith.constant 0 : index
      %224 = vector.load %arg15[%c80, %c0_111] : memref<128x64xbf16, #tpu.memory_space<vmem>>, vector<16x64xbf16>
      tpu.vector_store %arg15[%c80, %c0_111], %223 {strides = array<i32>} : memref<128x64xbf16, #tpu.memory_space<vmem>>, vector<16x64xbf16>,
      %225 = vector.broadcast %107 : vector<1x64xf32> to vector<16x64xf32>
      %226 = arith.mulf %222, %225 : vector<16x64xf32>
      %cst_112 = arith.constant dense<0.000000e+00> : vector<16xf32>
      %227 = vector.multi_reduction <add>, %226, %cst_112 [1] : vector<16x64xf32> to vector<16xf32>
      %228 = vector.shape_cast %227 : vector<16xf32> to vector<16x1xf32>
      %c80_113 = arith.constant 80 : index
      %c0_114 = arith.constant 0 : index
      %229 = vector.load %arg16[%c80_113, %c0_114] : memref<128x1xf32, #tpu.memory_space<vmem>>, vector<16x1xf32>
      tpu.vector_store %arg16[%c80_113, %c0_114], %228 {strides = array<i32>} : memref<128x1xf32, #tpu.memory_space<vmem>>, vector<16x1xf32>,
      %c80_115 = arith.constant 80 : index
      %c0_116 = arith.constant 0 : index
      %230 = vector.load %arg17[%c80_115, %c0_116] : memref<128x1xf32, #tpu.memory_space<vmem>>, vector<16x1xf32>
      tpu.vector_store %arg17[%c80_115, %c0_116], %111 {strides = array<i32>} : memref<128x1xf32, #tpu.memory_space<vmem>>, vector<16x1xf32>,
      %c80_117 = arith.constant 80 : index
      %c0_118 = arith.constant 0 : index
      %231 = vector.load %arg18[%c80_117, %c0_118] : memref<128x64xf32, #tpu.memory_space<vmem>>, vector<16x64xf32>
      tpu.vector_store %arg18[%c80_117, %c0_118], %110 {strides = array<i32>} : memref<128x64xf32, #tpu.memory_space<vmem>>, vector<16x64xf32>,
      %232 = vector.extract_strided_slice %97 {offsets = [0, 384], sizes = [16, 64], strides = [1, 1]} : vector<16x512xf32> to vector<16x64xf32>
      %233 = arith.mulf %232, %232 : vector<16x64xf32>
      %cst_119 = arith.constant dense<0.000000e+00> : vector<16xf32>
      %234 = vector.multi_reduction <add>, %233, %cst_119 [1] : vector<16x64xf32> to vector<16xf32>
      %235 = vector.shape_cast %234 : vector<16xf32> to vector<16x1xf32>
      %cst_120 = arith.constant 1.000000e-24 : f32
      %236 = vector.broadcast %cst_120 : f32 to vector<16x1xf32>
      %237 = arith.maximumf %235, %236 : vector<16x1xf32>
      %238 = math.rsqrt %237 : vector<16x1xf32>
      %239 = vector.broadcast %238 : vector<16x1xf32> to vector<16x64xf32>
      %240 = arith.mulf %232, %239 : vector<16x64xf32>
      %241 = vector.broadcast %73 : vector<1x64xf32> to vector<16x64xf32>
      %242 = arith.mulf %240, %241 : vector<16x64xf32>
      %243 = arith.truncf %242 : vector<16x64xf32> to vector<16x64xbf16>
      %c96 = arith.constant 96 : index
      %c0_121 = arith.constant 0 : index
      %244 = vector.load %arg15[%c96, %c0_121] : memref<128x64xbf16, #tpu.memory_space<vmem>>, vector<16x64xbf16>
      tpu.vector_store %arg15[%c96, %c0_121], %243 {strides = array<i32>} : memref<128x64xbf16, #tpu.memory_space<vmem>>, vector<16x64xbf16>,
      %245 = vector.broadcast %107 : vector<1x64xf32> to vector<16x64xf32>
      %246 = arith.mulf %242, %245 : vector<16x64xf32>
      %cst_122 = arith.constant dense<0.000000e+00> : vector<16xf32>
      %247 = vector.multi_reduction <add>, %246, %cst_122 [1] : vector<16x64xf32> to vector<16xf32>
      %248 = vector.shape_cast %247 : vector<16xf32> to vector<16x1xf32>
      %c96_123 = arith.constant 96 : index
      %c0_124 = arith.constant 0 : index
      %249 = vector.load %arg16[%c96_123, %c0_124] : memref<128x1xf32, #tpu.memory_space<vmem>>, vector<16x1xf32>
      tpu.vector_store %arg16[%c96_123, %c0_124], %248 {strides = array<i32>} : memref<128x1xf32, #tpu.memory_space<vmem>>, vector<16x1xf32>,
      %c96_125 = arith.constant 96 : index
      %c0_126 = arith.constant 0 : index
      %250 = vector.load %arg17[%c96_125, %c0_126] : memref<128x1xf32, #tpu.memory_space<vmem>>, vector<16x1xf32>
      tpu.vector_store %arg17[%c96_125, %c0_126], %111 {strides = array<i32>} : memref<128x1xf32, #tpu.memory_space<vmem>>, vector<16x1xf32>,
      %c96_127 = arith.constant 96 : index
      %c0_128 = arith.constant 0 : index
      %251 = vector.load %arg18[%c96_127, %c0_128] : memref<128x64xf32, #tpu.memory_space<vmem>>, vector<16x64xf32>
      tpu.vector_store %arg18[%c96_127, %c0_128], %110 {strides = array<i32>} : memref<128x64xf32, #tpu.memory_space<vmem>>, vector<16x64xf32>,
      %252 = vector.extract_strided_slice %97 {offsets = [0, 448], sizes = [16, 64], strides = [1, 1]} : vector<16x512xf32> to vector<16x64xf32>
      %253 = arith.mulf %252, %252 : vector<16x64xf32>
      %cst_129 = arith.constant dense<0.000000e+00> : vector<16xf32>
      %254 = vector.multi_reduction <add>, %253, %cst_129 [1] : vector<16x64xf32> to vector<16xf32>
      %255 = vector.shape_cast %254 : vector<16xf32> to vector<16x1xf32>
      %cst_130 = arith.constant 1.000000e-24 : f32
      %256 = vector.broadcast %cst_130 : f32 to vector<16x1xf32>
      %257 = arith.maximumf %255, %256 : vector<16x1xf32>
      %258 = math.rsqrt %257 : vector<16x1xf32>
      %259 = vector.broadcast %258 : vector<16x1xf32> to vector<16x64xf32>
      %260 = arith.mulf %252, %259 : vector<16x64xf32>
      %261 = vector.broadcast %73 : vector<1x64xf32> to vector<16x64xf32>
      %262 = arith.mulf %260, %261 : vector<16x64xf32>
      %263 = arith.truncf %262 : vector<16x64xf32> to vector<16x64xbf16>
      %c112 = arith.constant 112 : index
      %c0_131 = arith.constant 0 : index
      %264 = vector.load %arg15[%c112, %c0_131] : memref<128x64xbf16, #tpu.memory_space<vmem>>, vector<16x64xbf16>
      tpu.vector_store %arg15[%c112, %c0_131], %263 {strides = array<i32>} : memref<128x64xbf16, #tpu.memory_space<vmem>>, vector<16x64xbf16>,
      %265 = vector.broadcast %107 : vector<1x64xf32> to vector<16x64xf32>
      %266 = arith.mulf %262, %265 : vector<16x64xf32>
      %cst_132 = arith.constant dense<0.000000e+00> : vector<16xf32>
      %267 = vector.multi_reduction <add>, %266, %cst_132 [1] : vector<16x64xf32> to vector<16xf32>
      %268 = vector.shape_cast %267 : vector<16xf32> to vector<16x1xf32>
      %c112_133 = arith.constant 112 : index
      %c0_134 = arith.constant 0 : index
      %269 = vector.load %arg16[%c112_133, %c0_134] : memref<128x1xf32, #tpu.memory_space<vmem>>, vector<16x1xf32>
      tpu.vector_store %arg16[%c112_133, %c0_134], %268 {strides = array<i32>} : memref<128x1xf32, #tpu.memory_space<vmem>>, vector<16x1xf32>,
      %c112_135 = arith.constant 112 : index
      %c0_136 = arith.constant 0 : index
      %270 = vector.load %arg17[%c112_135, %c0_136] : memref<128x1xf32, #tpu.memory_space<vmem>>, vector<16x1xf32>
      tpu.vector_store %arg17[%c112_135, %c0_136], %111 {strides = array<i32>} : memref<128x1xf32, #tpu.memory_space<vmem>>, vector<16x1xf32>,
      %c112_137 = arith.constant 112 : index
      %c0_138 = arith.constant 0 : index
      %271 = vector.load %arg18[%c112_137, %c0_138] : memref<128x64xf32, #tpu.memory_space<vmem>>, vector<16x64xf32>
      tpu.vector_store %arg18[%c112_137, %c0_138], %110 {strides = array<i32>} : memref<128x64xf32, #tpu.memory_space<vmem>>, vector<16x64xf32>,
    } else {
    }
    %c0_4 = arith.constant 0 : index
    %c0_5 = arith.constant 0 : index
    %c0_6 = arith.constant 0 : index
    %5 = vector.load %arg4[%c0_4, %c0_5, %c0_6] : memref<1x16x32xbf16, #tpu.memory_space<vmem>>, vector<1x16x32xbf16>
    %6 = vector.shape_cast %5 : vector<1x16x32xbf16> to vector<16x32xbf16>
    %7 = arith.extf %6 : vector<16x32xbf16> to vector<16x32xf32>
    %cst = arith.constant dense<0.000000e+00> : vector<16xf32>
    %8 = vector.multi_reduction <add>, %7, %cst [1] : vector<16x32xf32> to vector<16xf32>
    %9 = vector.shape_cast %8 : vector<16xf32> to vector<16x1xf32>
    %cst_7 = arith.constant 3.200000e+01 : f32
    %10 = vector.broadcast %cst_7 : f32 to vector<16x1xf32>
    %11 = arith.divf %9, %10 : vector<16x1xf32>
    %12 = vector.broadcast %11 : vector<16x1xf32> to vector<16x32xf32>
    %13 = arith.subf %7, %12 : vector<16x32xf32>
    %14 = arith.mulf %13, %13 : vector<16x32xf32>
    %cst_8 = arith.constant dense<0.000000e+00> : vector<16xf32>
    %15 = vector.multi_reduction <add>, %14, %cst_8 [1] : vector<16x32xf32> to vector<16xf32>
    %16 = vector.shape_cast %15 : vector<16xf32> to vector<16x1xf32>
    %cst_9 = arith.constant 3.200000e+01 : f32
    %17 = vector.broadcast %cst_9 : f32 to vector<16x1xf32>
    %18 = arith.divf %16, %17 : vector<16x1xf32>
    %cst_10 = arith.constant 9.99999974E-6 : f32
    %19 = vector.broadcast %cst_10 : f32 to vector<16x1xf32>
    %20 = arith.addf %18, %19 : vector<16x1xf32>
    %21 = math.rsqrt %20 : vector<16x1xf32>
    %22 = vector.broadcast %21 : vector<16x1xf32> to vector<16x32xf32>
    %23 = arith.mulf %13, %22 : vector<16x32xf32>
    %24 = vector.broadcast %0 : vector<1x32xf32> to vector<16x32xf32>
    %25 = arith.mulf %23, %24 : vector<16x32xf32>
    %26 = arith.truncf %25 : vector<16x32xf32> to vector<16x32xbf16>
    %c0_11 = arith.constant 0 : index
    %c0_12 = arith.constant 0 : index
    %27 = vector.load %arg7[%c0_11, %c0_12] : memref<32x64xbf16, #tpu.memory_space<vmem>>, vector<32x64xbf16>
    %cst_13 = arith.constant dense<0.000000e+00> : vector<16x64xf32>
    %28 = tpu.matmul %26, %27, %cst_13 {dimension_numbers = #tpu.dot_dimension_numbers<[1], [0], [0], [1], [0, 0, 1, 1], [], []>} : vector<16x32xbf16>, vector<32x64xbf16>, vector<16x64xf32> -> vector<16x64xf32>
    %c0_14 = arith.constant 0 : index
    %c0_15 = arith.constant 0 : index
    %29 = vector.load %arg8[%c0_14, %c0_15] : memref<32x64xbf16, #tpu.memory_space<vmem>>, vector<32x64xbf16>
    %cst_16 = arith.constant dense<0.000000e+00> : vector<16x64xf32>
    %30 = tpu.matmul %26, %29, %cst_16 {dimension_numbers = #tpu.dot_dimension_numbers<[1], [0], [0], [1], [0, 0, 1, 1], [], []>} : vector<16x32xbf16>, vector<32x64xbf16>, vector<16x64xf32> -> vector<16x64xf32>
    %31 = arith.mulf %28, %28 : vector<16x64xf32>
    %cst_17 = arith.constant dense<0.000000e+00> : vector<16xf32>
    %32 = vector.multi_reduction <add>, %31, %cst_17 [1] : vector<16x64xf32> to vector<16xf32>
    %33 = vector.shape_cast %32 : vector<16xf32> to vector<16x1xf32>
    %cst_18 = arith.constant 1.000000e-24 : f32
    %34 = vector.broadcast %cst_18 : f32 to vector<16x1xf32>
    %35 = arith.maximumf %33, %34 : vector<16x1xf32>
    %36 = math.rsqrt %35 : vector<16x1xf32>
    %37 = vector.broadcast %36 : vector<16x1xf32> to vector<16x64xf32>
    %38 = arith.mulf %28, %37 : vector<16x64xf32>
    %39 = vector.broadcast %1 : vector<1x64xf32> to vector<16x64xf32>
    %40 = arith.mulf %38, %39 : vector<16x64xf32>
    %41 = arith.truncf %40 : vector<16x64xf32> to vector<16x64xbf16>
    %42 = arith.truncf %30 : vector<16x64xf32> to vector<16x64xbf16>
    %c0_19 = arith.constant 0 : index
    %c0_20 = arith.constant 0 : index
    %43 = vector.load %arg15[%c0_19, %c0_20] : memref<128x64xbf16, #tpu.memory_space<vmem>>, vector<128x64xbf16>
    %cst_21 = arith.constant dense<0.000000e+00> : vector<128x16xf32>
    %44 = tpu.matmul %43, %41, %cst_21 {dimension_numbers = #tpu.dot_dimension_numbers<[1], [1], [0], [0], [0, 0, 1, 0], [], []>} : vector<128x64xbf16>, vector<16x64xbf16>, vector<128x16xf32> -> vector<128x16xf32>
    %c0_22 = arith.constant 0 : index
    %c0_23 = arith.constant 0 : index
    %45 = vector.load %arg16[%c0_22, %c0_23] : memref<128x1xf32, #tpu.memory_space<vmem>>, vector<128x1xf32>
    %cst_24 = arith.constant dense<0xFF800000> : vector<128xf32>
    %46 = vector.multi_reduction <maximumf>, %44, %cst_24 [1] : vector<128x16xf32> to vector<128xf32>
    %47 = vector.shape_cast %46 : vector<128xf32> to vector<128x1xf32>
    %48 = arith.maximumf %45, %47 : vector<128x1xf32>
    %49 = arith.subf %45, %48 : vector<128x1xf32>
    %50 = math.exp %49 : vector<128x1xf32>
    %51 = vector.broadcast %48 : vector<128x1xf32> to vector<128x16xf32>
    %52 = arith.subf %44, %51 : vector<128x16xf32>
    %53 = math.exp %52 : vector<128x16xf32>
    %c0_25 = arith.constant 0 : index
    %c0_26 = arith.constant 0 : index
    %54 = vector.load %arg17[%c0_25, %c0_26] : memref<128x1xf32, #tpu.memory_space<vmem>>, vector<128x1xf32>
    %55 = arith.mulf %50, %54 : vector<128x1xf32>
    %cst_27 = arith.constant dense<0.000000e+00> : vector<128xf32>
    %56 = vector.multi_reduction <add>, %53, %cst_27 [1] : vector<128x16xf32> to vector<128xf32>
    %57 = vector.shape_cast %56 : vector<128xf32> to vector<128x1xf32>
    %58 = arith.addf %55, %57 : vector<128x1xf32>
    %c0_28 = arith.constant 0 : index
    %c0_29 = arith.constant 0 : index
    %59 = vector.load %arg17[%c0_28, %c0_29] : memref<128x1xf32, #tpu.memory_space<vmem>>, vector<128x1xf32>
    tpu.vector_store %arg17[%c0_28, %c0_29], %58 {strides = array<i32>} : memref<128x1xf32, #tpu.memory_space<vmem>>, vector<128x1xf32>,
    %c0_30 = arith.constant 0 : index
    %c0_31 = arith.constant 0 : index
    %60 = vector.load %arg18[%c0_30, %c0_31] : memref<128x64xf32, #tpu.memory_space<vmem>>, vector<128x64xf32>
    %61 = vector.broadcast %50 : vector<128x1xf32> to vector<128x64xf32>
    %62 = arith.mulf %61, %60 : vector<128x64xf32>
    %63 = arith.truncf %53 : vector<128x16xf32> to vector<128x16xbf16>
    %cst_32 = arith.constant dense<0.000000e+00> : vector<128x64xf32>
    %64 = tpu.matmul %63, %42, %cst_32 {dimension_numbers = #tpu.dot_dimension_numbers<[1], [0], [0], [1], [0, 0, 1, 1], [], []>} : vector<128x16xbf16>, vector<16x64xbf16>, vector<128x64xf32> -> vector<128x64xf32>
    %65 = arith.addf %62, %64 : vector<128x64xf32>
    %c0_33 = arith.constant 0 : index
    %c0_34 = arith.constant 0 : index
    %66 = vector.load %arg18[%c0_33, %c0_34] : memref<128x64xf32, #tpu.memory_space<vmem>>, vector<128x64xf32>
    tpu.vector_store %arg18[%c0_33, %c0_34], %65 {strides = array<i32>} : memref<128x64xf32, #tpu.memory_space<vmem>>, vector<128x64xf32>,
    %c0_35 = arith.constant 0 : index
    %c0_36 = arith.constant 0 : index
    %67 = vector.load %arg16[%c0_35, %c0_36] : memref<128x1xf32, #tpu.memory_space<vmem>>, vector<128x1xf32>
    tpu.vector_store %arg16[%c0_35, %c0_36], %48 {strides = array<i32>} : memref<128x1xf32, #tpu.memory_space<vmem>>, vector<128x1xf32>,
    %c1_i32 = arith.constant 1 : i32
    %68 = arith.cmpi eq, %arg2, %c1_i32 : i32
    %69 = arith.extui %68 : i1 to i32
    %c0_i32_37 = arith.constant 0 : i32
    %70 = arith.cmpi ne, %69, %c0_i32_37 : i32
    scf.if %70 {
      %c0_38 = arith.constant 0 : index
      %c0_39 = arith.constant 0 : index
      %71 = vector.load %arg17[%c0_38, %c0_39] : memref<128x1xf32, #tpu.memory_space<vmem>>, vector<128x1xf32>
      %72 = tpu.reciprocal %71 {approx = true} : vector<128x1xf32> -> vector<128x1xf32>
      %c0_40 = arith.constant 0 : index
      %c0_41 = arith.constant 0 : index
      %73 = vector.load %arg18[%c0_40, %c0_41] : memref<128x64xf32, #tpu.memory_space<vmem>>, vector<16x64xf32>
      %74 = vector.extract_strided_slice %72 {offsets = [0, 0], sizes = [16, 1], strides = [1, 1]} : vector<128x1xf32> to vector<16x1xf32>
      %75 = vector.broadcast %74 : vector<16x1xf32> to vector<16x64xf32>
      %76 = arith.mulf %73, %75 : vector<16x64xf32>
      %77 = arith.truncf %76 : vector<16x64xf32> to vector<16x64xbf16>
      %c0_42 = arith.constant 0 : index
      %c0_43 = arith.constant 0 : index
      %78 = vector.load %arg19[%c0_42, %c0_43] : memref<16x512xbf16, #tpu.memory_space<vmem>>, vector<16x64xbf16>
      tpu.vector_store %arg19[%c0_42, %c0_43], %77 {strides = array<i32>} : memref<16x512xbf16, #tpu.memory_space<vmem>>, vector<16x64xbf16>,
      %c16 = arith.constant 16 : index
      %c0_44 = arith.constant 0 : index
      %79 = vector.load %arg18[%c16, %c0_44] : memref<128x64xf32, #tpu.memory_space<vmem>>, vector<16x64xf32>
      %80 = vector.extract_strided_slice %72 {offsets = [16, 0], sizes = [16, 1], strides = [1, 1]} : vector<128x1xf32> to vector<16x1xf32>
      %81 = vector.broadcast %80 : vector<16x1xf32> to vector<16x64xf32>
      %82 = arith.mulf %79, %81 : vector<16x64xf32>
      %83 = arith.truncf %82 : vector<16x64xf32> to vector<16x64xbf16>
      %c0_45 = arith.constant 0 : index
      %c64 = arith.constant 64 : index
      %84 = vector.load %arg19[%c0_45, %c64] : memref<16x512xbf16, #tpu.memory_space<vmem>>, vector<16x64xbf16>
      tpu.vector_store %arg19[%c0_45, %c64], %83 {strides = array<i32>} : memref<16x512xbf16, #tpu.memory_space<vmem>>, vector<16x64xbf16>,
      %c32 = arith.constant 32 : index
      %c0_46 = arith.constant 0 : index
      %85 = vector.load %arg18[%c32, %c0_46] : memref<128x64xf32, #tpu.memory_space<vmem>>, vector<16x64xf32>
      %86 = vector.extract_strided_slice %72 {offsets = [32, 0], sizes = [16, 1], strides = [1, 1]} : vector<128x1xf32> to vector<16x1xf32>
      %87 = vector.broadcast %86 : vector<16x1xf32> to vector<16x64xf32>
      %88 = arith.mulf %85, %87 : vector<16x64xf32>
      %89 = arith.truncf %88 : vector<16x64xf32> to vector<16x64xbf16>
      %c0_47 = arith.constant 0 : index
      %c128 = arith.constant 128 : index
      %90 = vector.load %arg19[%c0_47, %c128] : memref<16x512xbf16, #tpu.memory_space<vmem>>, vector<16x64xbf16>
      tpu.vector_store %arg19[%c0_47, %c128], %89 {strides = array<i32>} : memref<16x512xbf16, #tpu.memory_space<vmem>>, vector<16x64xbf16>,
      %c48 = arith.constant 48 : index
      %c0_48 = arith.constant 0 : index
      %91 = vector.load %arg18[%c48, %c0_48] : memref<128x64xf32, #tpu.memory_space<vmem>>, vector<16x64xf32>
      %92 = vector.extract_strided_slice %72 {offsets = [48, 0], sizes = [16, 1], strides = [1, 1]} : vector<128x1xf32> to vector<16x1xf32>
      %93 = vector.broadcast %92 : vector<16x1xf32> to vector<16x64xf32>
      %94 = arith.mulf %91, %93 : vector<16x64xf32>
      %95 = arith.truncf %94 : vector<16x64xf32> to vector<16x64xbf16>
      %c0_49 = arith.constant 0 : index
      %c192 = arith.constant 192 : index
      %96 = vector.load %arg19[%c0_49, %c192] : memref<16x512xbf16, #tpu.memory_space<vmem>>, vector<16x64xbf16>
      tpu.vector_store %arg19[%c0_49, %c192], %95 {strides = array<i32>} : memref<16x512xbf16, #tpu.memory_space<vmem>>, vector<16x64xbf16>,
      %c64_50 = arith.constant 64 : index
      %c0_51 = arith.constant 0 : index
      %97 = vector.load %arg18[%c64_50, %c0_51] : memref<128x64xf32, #tpu.memory_space<vmem>>, vector<16x64xf32>
      %98 = vector.extract_strided_slice %72 {offsets = [64, 0], sizes = [16, 1], strides = [1, 1]} : vector<128x1xf32> to vector<16x1xf32>
      %99 = vector.broadcast %98 : vector<16x1xf32> to vector<16x64xf32>
      %100 = arith.mulf %97, %99 : vector<16x64xf32>
      %101 = arith.truncf %100 : vector<16x64xf32> to vector<16x64xbf16>
      %c0_52 = arith.constant 0 : index
      %c256 = arith.constant 256 : index
      %102 = vector.load %arg19[%c0_52, %c256] : memref<16x512xbf16, #tpu.memory_space<vmem>>, vector<16x64xbf16>
      tpu.vector_store %arg19[%c0_52, %c256], %101 {strides = array<i32>} : memref<16x512xbf16, #tpu.memory_space<vmem>>, vector<16x64xbf16>,
      %c80 = arith.constant 80 : index
      %c0_53 = arith.constant 0 : index
      %103 = vector.load %arg18[%c80, %c0_53] : memref<128x64xf32, #tpu.memory_space<vmem>>, vector<16x64xf32>
      %104 = vector.extract_strided_slice %72 {offsets = [80, 0], sizes = [16, 1], strides = [1, 1]} : vector<128x1xf32> to vector<16x1xf32>
      %105 = vector.broadcast %104 : vector<16x1xf32> to vector<16x64xf32>
      %106 = arith.mulf %103, %105 : vector<16x64xf32>
      %107 = arith.truncf %106 : vector<16x64xf32> to vector<16x64xbf16>
      %c0_54 = arith.constant 0 : index
      %c320 = arith.constant 320 : index
      %108 = vector.load %arg19[%c0_54, %c320] : memref<16x512xbf16, #tpu.memory_space<vmem>>, vector<16x64xbf16>
      tpu.vector_store %arg19[%c0_54, %c320], %107 {strides = array<i32>} : memref<16x512xbf16, #tpu.memory_space<vmem>>, vector<16x64xbf16>,
      %c96 = arith.constant 96 : index
      %c0_55 = arith.constant 0 : index
      %109 = vector.load %arg18[%c96, %c0_55] : memref<128x64xf32, #tpu.memory_space<vmem>>, vector<16x64xf32>
      %110 = vector.extract_strided_slice %72 {offsets = [96, 0], sizes = [16, 1], strides = [1, 1]} : vector<128x1xf32> to vector<16x1xf32>
      %111 = vector.broadcast %110 : vector<16x1xf32> to vector<16x64xf32>
      %112 = arith.mulf %109, %111 : vector<16x64xf32>
      %113 = arith.truncf %112 : vector<16x64xf32> to vector<16x64xbf16>
      %c0_56 = arith.constant 0 : index
      %c384 = arith.constant 384 : index
      %114 = vector.load %arg19[%c0_56, %c384] : memref<16x512xbf16, #tpu.memory_space<vmem>>, vector<16x64xbf16>
      tpu.vector_store %arg19[%c0_56, %c384], %113 {strides = array<i32>} : memref<16x512xbf16, #tpu.memory_space<vmem>>, vector<16x64xbf16>,
      %c112 = arith.constant 112 : index
      %c0_57 = arith.constant 0 : index
      %115 = vector.load %arg18[%c112, %c0_57] : memref<128x64xf32, #tpu.memory_space<vmem>>, vector<16x64xf32>
      %116 = vector.extract_strided_slice %72 {offsets = [112, 0], sizes = [16, 1], strides = [1, 1]} : vector<128x1xf32> to vector<16x1xf32>
      %117 = vector.broadcast %116 : vector<16x1xf32> to vector<16x64xf32>
      %118 = arith.mulf %115, %117 : vector<16x64xf32>
      %119 = arith.truncf %118 : vector<16x64xf32> to vector<16x64xbf16>
      %c0_58 = arith.constant 0 : index
      %c448 = arith.constant 448 : index
      %120 = vector.load %arg19[%c0_58, %c448] : memref<16x512xbf16, #tpu.memory_space<vmem>>, vector<16x64xbf16>
      tpu.vector_store %arg19[%c0_58, %c448], %119 {strides = array<i32>} : memref<16x512xbf16, #tpu.memory_space<vmem>>, vector<16x64xbf16>,
      %c0_59 = arith.constant 0 : index
      %c0_60 = arith.constant 0 : index
      %121 = vector.load %arg19[%c0_59, %c0_60] : memref<16x512xbf16, #tpu.memory_space<vmem>>, vector<16x512xbf16>
      %c0_61 = arith.constant 0 : index
      %c0_62 = arith.constant 0 : index
      %122 = vector.load %arg12[%c0_61, %c0_62] : memref<512x32xbf16, #tpu.memory_space<vmem>>, vector<512x32xbf16>
      %cst_63 = arith.constant dense<0.000000e+00> : vector<16x32xf32>
      %123 = tpu.matmul %121, %122, %cst_63 {dimension_numbers = #tpu.dot_dimension_numbers<[1], [0], [0], [1], [0, 0, 1, 1], [], []>} : vector<16x512xbf16>, vector<512x32xbf16>, vector<16x32xf32> -> vector<16x32xf32>
      %c0_64 = arith.constant 0 : index
      %c0_65 = arith.constant 0 : index
      %124 = vector.load %arg13[%c0_64, %c0_65] : memref<1x32xf32, #tpu.memory_space<vmem>>, vector<1x32xf32>
      %cst_66 = arith.constant dense<0.000000e+00> : vector<16xf32>
      %125 = vector.multi_reduction <add>, %123, %cst_66 [1] : vector<16x32xf32> to vector<16xf32>
      %126 = vector.shape_cast %125 : vector<16xf32> to vector<16x1xf32>
      %cst_67 = arith.constant 3.200000e+01 : f32
      %127 = vector.broadcast %cst_67 : f32 to vector<16x1xf32>
      %128 = arith.divf %126, %127 : vector<16x1xf32>
      %129 = vector.broadcast %128 : vector<16x1xf32> to vector<16x32xf32>
      %130 = arith.subf %123, %129 : vector<16x32xf32>
      %131 = arith.mulf %130, %130 : vector<16x32xf32>
      %cst_68 = arith.constant dense<0.000000e+00> : vector<16xf32>
      %132 = vector.multi_reduction <add>, %131, %cst_68 [1] : vector<16x32xf32> to vector<16xf32>
      %133 = vector.shape_cast %132 : vector<16xf32> to vector<16x1xf32>
      %cst_69 = arith.constant 3.200000e+01 : f32
      %134 = vector.broadcast %cst_69 : f32 to vector<16x1xf32>
      %135 = arith.divf %133, %134 : vector<16x1xf32>
      %cst_70 = arith.constant 9.99999974E-6 : f32
      %136 = vector.broadcast %cst_70 : f32 to vector<16x1xf32>
      %137 = arith.addf %135, %136 : vector<16x1xf32>
      %138 = math.rsqrt %137 : vector<16x1xf32>
      %139 = vector.broadcast %138 : vector<16x1xf32> to vector<16x32xf32>
      %140 = arith.mulf %130, %139 : vector<16x32xf32>
      %141 = vector.broadcast %124 : vector<1x32xf32> to vector<16x32xf32>
      %142 = arith.mulf %140, %141 : vector<16x32xf32>
      %c0_71 = arith.constant 0 : index
      %c0_72 = arith.constant 0 : index
      %c0_73 = arith.constant 0 : index
      %143 = vector.load %arg14[%c0_71, %c0_72, %c0_73] : memref<1x16x32xf32, #tpu.memory_space<vmem>>, vector<1x16x32xf32>
      %144 = vector.shape_cast %143 : vector<1x16x32xf32> to vector<16x32xf32>
      %145 = vector.shape_cast %142 : vector<16x32xf32> to vector<1x16x32xf32>
      tpu.vector_store %arg14[%c0_71, %c0_72, %c0_73], %145 {strides = array<i32>} : memref<1x16x32xf32, #tpu.memory_space<vmem>>, vector<1x16x32xf32>,
    } else {
    }
    return
  }
  func.func @transform_0(%arg0: i32, %arg1: i32, %arg2: i32) -> (i32, i32, i32) {
    %c0_i32 = arith.constant 0 : i32
    %c0_i32_0 = arith.constant 0 : i32
    return %arg0, %arg1, %c0_i32 : i32, i32, i32
  }
  func.func @transform_1(%arg0: i32, %arg1: i32, %arg2: i32) -> (i32, i32, i32) {
    %c0_i32 = arith.constant 0 : i32
    %c0_i32_0 = arith.constant 0 : i32
    return %arg0, %arg2, %c0_i32 : i32, i32, i32
  }
  func.func @transform_2(%arg0: i32, %arg1: i32, %arg2: i32) -> (i32, i32) {
    %c0_i32 = arith.constant 0 : i32
    %c0_i32_0 = arith.constant 0 : i32
    %c0_i32_1 = arith.constant 0 : i32
    return %c0_i32, %c0_i32_0 : i32, i32
  }
  func.func @transform_3(%arg0: i32, %arg1: i32, %arg2: i32) -> (i32, i32) {
    %c0_i32 = arith.constant 0 : i32
    %c0_i32_0 = arith.constant 0 : i32
    %c0_i32_1 = arith.constant 0 : i32
    return %c0_i32, %c0_i32_0 : i32, i32
  }
  func.func @transform_4(%arg0: i32, %arg1: i32, %arg2: i32) -> (i32, i32) {
    %c0_i32 = arith.constant 0 : i32
    %c0_i32_0 = arith.constant 0 : i32
    %c0_i32_1 = arith.constant 0 : i32
    return %c0_i32, %c0_i32_0 : i32, i32
  }
  func.func @transform_5(%arg0: i32, %arg1: i32, %arg2: i32) -> (i32, i32) {
    %c0_i32 = arith.constant 0 : i32
    %c0_i32_0 = arith.constant 0 : i32
    %c0_i32_1 = arith.constant 0 : i32
    return %c0_i32, %c0_i32_0 : i32, i32
  }
  func.func @transform_6(%arg0: i32, %arg1: i32, %arg2: i32) -> (i32, i32) {
    %c0_i32 = arith.constant 0 : i32
    %c0_i32_0 = arith.constant 0 : i32
    %c0_i32_1 = arith.constant 0 : i32
    return %c0_i32, %c0_i32_0 : i32, i32
  }
  func.func @transform_7(%arg0: i32, %arg1: i32, %arg2: i32) -> (i32, i32) {
    %c0_i32 = arith.constant 0 : i32
    %c0_i32_0 = arith.constant 0 : i32
    %c0_i32_1 = arith.constant 0 : i32
    return %c0_i32, %c0_i32_0 : i32, i32
  }
  func.func @transform_8(%arg0: i32, %arg1: i32, %arg2: i32) -> (i32, i32) {
    %c0_i32 = arith.constant 0 : i32
    %c0_i32_0 = arith.constant 0 : i32
    %c0_i32_1 = arith.constant 0 : i32
    return %c0_i32, %c0_i32_0 : i32, i32
  }
  func.func @transform_9(%arg0: i32, %arg1: i32, %arg2: i32) -> (i32, i32) {
    %c0_i32 = arith.constant 0 : i32
    %c0_i32_0 = arith.constant 0 : i32
    %c0_i32_1 = arith.constant 0 : i32
    return %c0_i32, %c0_i32_0 : i32, i32
  }
  func.func @transform_10(%arg0: i32, %arg1: i32, %arg2: i32) -> (i32, i32) {
    %c0_i32 = arith.constant 0 : i32
    %c0_i32_0 = arith.constant 0 : i32
    %c0_i32_1 = arith.constant 0 : i32
    return %c0_i32, %c0_i32_0 : i32, i32
  }
  func.func @transform_11(%arg0: i32, %arg1: i32, %arg2: i32) -> (i32, i32, i32) {
    %c0_i32 = arith.constant 0 : i32
    %c0_i32_0 = arith.constant 0 : i32
    return %arg0, %arg1, %c0_i32 : i32, i32, i32
  }
}

</mosaic_0001>

<bundles_post_ra>
// kernel: tpu_custom_call.1
= control target key start
LH: loop header
LB: loop body
LE: loop exit
PB: predicated region body
PF: predicated region fallthrough
CT: control target
= control target key end

     0   :  { %s4351_s0 = inlined_call_operand.vmem [shape: bf16[2,32,32], index: 0, kind: input, shape index: {}]   ;;  %s4352_s1 = inlined_call_operand.vmem [shape: bf16[2,32,32], index: 1, kind: input, shape index: {}]   ;;  %s4353_s2 = inlined_call_operand.vmem [shape: f32[1,32], index: 2, kind: input, shape index: {}]   ;;  %s4354_s3 = inlined_call_operand.vmem [shape: bf16[32,512], index: 3, kind: input, shape index: {}]   ;;  %s4355_s4 = inlined_call_operand.vmem [shape: bf16[32,64], index: 4, kind: input, shape index: {}]   ;;  %s4356_s5 = inlined_call_operand.vmem [shape: bf16[32,64], index: 5, kind: input, shape index: {}]   ;;  %s4357_s6 = inlined_call_operand.vmem [shape: f32[2,64], index: 6, kind: input, shape index: {}]   ;;  %s4358_s7 = inlined_call_operand.vmem [shape: f32[1,64], index: 7, kind: input, shape index: {}]   ;;  %s4359_s8 = inlined_call_operand.vmem [shape: f32[1,64], index: 8, kind: input, shape index: {}]   ;;  %s4360_s9 = inlined_call_operand.vmem [shape: bf16[512,32], index: 9, kind: input, shape index: {}]   ;;  %s4361_s10 = inlined_call_operand.vmem [shape: f32[1,32], index: 10, kind: input, shape index: {}]   ;;  %s4362_s11 = inlined_call_operand.hbm [shape: f32[2,32,32], index: 11, kind: output, shape index: {}]  }
   0x1   :  { %4374 = sst [smem:[#allocation21_spill]] %s4353_s2 }
   0x2   :  { %4375 = sst [smem:[#allocation22_spill]] %s4359_s8 }
   0x3   :  { %16 = vsyncpa [#allocation8], 0 }
   0x4   :  { %18 = vsyncpa [#allocation8 + $0x1], 0  ;;  %s3357_s17 = smov 0   ;;  %s3359_s18 = smov 0  }
   0x5   :  { %s3361_s19 = smov 0   ;;  %s3363_s20 = smov 0  }
   0x6   :  { %s3365_s21 = smov 0   ;;  %s3367_s22 = smov 0  }
   0x7   :  { %s3369_s23 = smov 0   ;;  %s3371_s24 = smov 0  }
   0x8   :  { %s3373_s25 = smov 0   ;;  %s3375_s26 = smov 0  }
   0x9 LB: > { %4376 = sst [smem:[#allocation10_spill]] %s3248_s17  ;;  %s2664_s27 = sadd.s32 4294967295, %s3284_s26   ;;  %s3284_s26 = sphi %s3375_s26, %s24_s26   ;;  %s3280_s25 = sphi %s3373_s25, %s4402_s25   ;;  %s3276_s24 = sphi %s3371_s24, %s4401_s24   ;;  %s3272_s23 = sphi %s3369_s23, %s4400_s23   ;;  %s3268_s22 = sphi %s3367_s22, %s4405_s22   ;;  %s3264_s21 = sphi %s3365_s21, %s4398_s21   ;;  %s3260_s20 = sphi %s3363_s20, %s4397_s20   ;;  %s3256_s19 = sphi %s3361_s19, %s4396_s19   ;;  %s3252_s18 = sphi %s3359_s18, %s4404_s18   ;;  %s3248_s17 = sphi %s3357_s17, %s4403_s17  }
   0xa   : > { %4377 = sst [smem:[#allocation11_spill]] %s3256_s19  ;;  %s2665_s28 = sadd.s32 4294967294, %s3284_s26  }
   0xb   : > { %4378 = sst [smem:[#allocation12_spill]] %s3272_s23  ;;  %s36_s29 = sadd.s32 1, %s3272_s23 }
   0xc   : > { %4379 = sst [smem:[#allocation13_spill]] %s3276_s24  ;;  %p37_p0 = scmp.ge.s32.totalorder %s36_s29, 2 }
   0xd   : > { %4380 = sst [smem:[#allocation14_spill]] %s3280_s25  ;;  %s39_s30 = sadd.s32 1, %s3276_s24 }
   0xe   : > { %4381 = sst [smem:[#allocation15_spill]] %s3284_s26  ;;  %s43_s12 = sadd.s32 1, %s3280_s25 }
   0xf   : > { %p307_p1 = scmp.ne.s32.totalorder %s3256_s19, %s3252_s18  ;;  %s4407_s29 = smov (%p37_p0, %s36_s29), 0 }
  0x10   : > { %4382 = sst [smem:[#allocation16_spill]] %s4407_s29  ;;  %s4409_s30 = smov (!%p37_p0, %s39_s30), %s3276_s24 }
  0x11   : > { %p308_p2 = scmp.eq.s32.totalorder %s2664_s27, 7  ;;  %p313_p3 = scmp.ne.s32.totalorder %s3252_s18, %s3248_s17 }
  0x12   : > { %p41_p4 = scmp.ge.s32.totalorder %s4409_s30, 2  ;;  %p314_p5 = scmp.eq.s32.totalorder %s2665_s28, 7 }
  0x13   : > { %p3419_p6 = por %p308_p2, %p307_p1  ;;  %p2668_p8 = scmp.ge.s32.totalorder %s3284_s26, 1 }
  0x14   : > { %s4411_s30 = smov (%p41_p4, %s4409_s30), 0  ;;  %s4413_s12 = smov (!%p41_p4, %s43_s12), %s3280_s25 }
  0x15   : > { %4384 = sst [smem:[#allocation17_spill]] %s4411_s30  ;;  %p3426_p7 = por %p314_p5, %p313_p3 }
  0x16   : > { %p45_p9 = scmp.ge.s32.totalorder %s4413_s12, 2  ;;  %p385_p10 = scmp.lt.s32.totalorder %s3284_s26, 9 }
  0x17   : > { %s4385_s14 = scalar_select %p3426_p7, 1, 0 }
  0x18   : > { %s293_s15 = ssub.s32 %s3276_s24, %s4411_s30  ;;  %s4415_s12 = smov (%p45_p9, %s4413_s12), 0 }
  0x19   : > { %4386 = sst [smem:[#allocation18_spill]] %s4385_s14  ;;  %p386_p11 = pnand %p2668_p8, %p385_p10 }
  0x1a   : > { %4387 = sst [smem:[#allocation19_spill]] %s4415_s12  ;;  %s292_s16 = ssub.s32 %s3280_s25, %s4415_s12 }
  0x1b   : > { %s294_s27 = sor.u32 %s293_s15, %s292_s16  ;;  %s297_s28 = sadd.s32 1, %s3256_s19 }
  0x1c   : > { %p295_p12 = scmp.eq.s32.totalorder %s294_s27, 0  ;;  %389 = sbr.rel (%p386_p11) target bundleno = 3540 (0xdd4), region = 64 }
  0x1d   : > { %s4371_s23 = sand.u32 (!%p386_p11), 1, %s3252_s18   ;;  %s3444_s14 = sshll.u32 (!%p386_p11), %s3264_s21, 1 }
  0x1e   : > { %s3440_s29 = scalar_select %p295_p12, %s3256_s19, %s297_s28  }
  0x1f   : > { %s4389_s2 = sld [smem:[#allocation21_spill]] (!%p386_p11)  ;;  %s4390_s8 = sld [smem:[#allocation22_spill]] (!%p386_p11) }
  0x20   : > { %4388 = sst [smem:[#allocation20_spill]] %s3440_s29  ;;  %s2669_s27 = sshll.u32 (!%p386_p11), %s4371_s23, 4 }
  0x21   : > { %p439_p13 = scmp.lt.s32.totalorder (!%p386_p11), %s3268_s22, 1  ;;  %p441_p0 = scmp.lt.s32.totalorder (!%p386_p11), %s3444_s14, 3 }
  0x22   : > { %s2673_s25 = sshll.u32 (!%p386_p11), %s3260_s20, 1  ;;  %s3471_s26 = scalar_lea.vmem (!%p386_p11), [#allocation7], %s2669_s27 }
  0x23   : > { %s440_s28 = scalar_select %p439_p13, %s3268_s22, 1 }
  0x24   : > { %s442_s12 = scalar_select %p441_p0, %s3444_s14, 3 }
  0x25   : > { %v3449_v0 = vld [vmem:[%s4389_s2] sm:$0x1]  ;;  %s2671_s21 = sshll.u32 %s440_s28, 2  ;;  %p451_p1 = scmp.lt.s32.totalorder %s2673_s25, 3 }
  0x26   : > { %v3454_v1 = vld [vmem:[%s4390_s8] sm:$0x1]  ;;  %s444_s29 = sadd.s32 %s2671_s21, %s442_s12  ;;  %p2676_p2 = scmp.ne.s32.totalorder %s3260_s20, 0 }
  0x27   : > { %s2672_s24 = sshll.u32 %s444_s29, 2  ;;  %s4417_s25 = smov (!%p451_p1, %s2673_s25), 3  ;;  %vm472_vm0 = vcmask (!%p2676_p2), 261120   ;;  %v2976_v17 = vld [vmem:[%s4354_s3 + $0x4] ss:$16 sps:$4 sm:$0xff] (!%p2676_p2)   ;;  %v3286_v25 = vmov (!%p2676_p2), 0   ;;  %v501_v34 = vlaneseq (!%p2676_p2) }
  0x28   : > { %s446_s2 = scalar_lea.vmem %s4351_s0, %s2672_s24  ;;  %s454_s17 = sadd.s32 %s2671_s21, %s4417_s25  ;;  %v2978_v18 = vld [vmem:[%s4354_s3 + $0xc] ss:$16 sps:$4 sm:$0xff] (!%p2676_p2)   ;;  %v2980_v19 = vld [vmem:[%s4354_s3] ss:$16 sps:$4 sm:$0xff] (!%p2676_p2)   ;;  %v2981_v20 = vld [vmem:[%s4354_s3 + $0x8] ss:$16 sps:$4 sm:$0xff] (!%p2676_p2)   ;;  %560 = vmatprep.subr.bf16.mxu0 (!%p2676_p2), %v2976_v17  ;;  %592 = vmatprep.mubr.bf16.mxu0 (!%p2676_p2), %v3286_v25 }
  0x29   : > { %s2675_s15 = sshll.u32 %s454_s17, 2  ;;  %465 = sbr.rel (%p2676_p2) target bundleno = 1267 (0x4f3), region = 68  ;;  %v2751_v2 = vld [vmem:[%s446_s2] sm:$0xff] (!%p2676_p2)   ;;  %v2984_v22 = vld [vmem:[%s4354_s3 + $0x2c] ss:$16 sps:$4 sm:$0xff] (!%p2676_p2)   ;;  %603 = vmatprep.subr.bf16.mxu1 (!%p2676_p2), %v2978_v18  ;;  %561 = vmatpush1.bf16.msra.mxu0 (!%p2676_p2), %v2980_v19  ;;  %vm648_vm1 = vcmask (!%p2676_p2), 516096  }
  0x2a   : > { %s3469_s23 = scalar_lea.vmem %s4352_s1, %s2675_s15  ;;  %v2752_v3 = vunpack.c.l.bf16 (!%p2676_p2), %v2751_v2  ;;  %v2753_v4 = vunpack.c.h.bf16 (!%p2676_p2), %v2751_v2  ;;  %v2982_v21 = vld [vmem:[%s4354_s3 + $0x24] ss:$16 sps:$4 sm:$0xff] (!%p2676_p2)   ;;  %604 = vmatpush1.bf16.msra.mxu1 (!%p2676_p2), %v2981_v20  ;;  %v2986_v23 = vld [vmem:[%s4354_s3 + $0x20] ss:$16 sps:$4 sm:$0xff] (!%p2676_p2)   ;;  %v2987_v24 = vld [vmem:[%s4354_s3 + $0x28] ss:$16 sps:$4 sm:$0xff] (!%p2676_p2)   ;;  %635 = vmatprep.mubr.bf16.mxu1 (!%p2676_p2), %v3286_v25 }
  0x2b   : > { %562 = vmatprep.subr.bf16.mxu0 (!%p2676_p2), %v2982_v21  ;;  %605 = vmatprep.subr.bf16.mxu1 (!%p2676_p2), %v2984_v22  ;;  %v646_v26 = vld [vmem:[%s4357_s6] sm:$0x1] (!%p2676_p2)  ;;  %v502_v36 = vshrl.u32 (!%p2676_p2), %v501_v34, 7  ;;  %s3287_s25 = smov (!%p2676_p2), 64   ;;  %vm663_vm2 = vcmask (!%p2676_p2), 523264   ;;  %vm698_vm3 = vcmask (!%p2676_p2), 7168  }
  0x2c   : > { %v473_v5 = vsel (!%p2676_p2), %vm472_vm0, %v2752_v3, 0.0  ;;  %v476_v6 = vsel (!%p2676_p2), %vm472_vm0, %v2753_v4, 0.0  ;;  %v647_v27 = vmul.f32 (!%p2676_p2), %v646_v26, %v646_v26  ;;  %v466_v62 = vld [vmem:[%s4358_s7] sm:$0x1] (!%p2676_p2) }
  0x2d   : > { %474 = vadd.xlane.f32.xlu0 (!%p2676_p2), %v473_v5  ;;  %563 = vmatpush1.bf16.msra.mxu0 (!%p2676_p2), %v2986_v23  ;;  %v503_v37 = vsub.s32 (!%p2676_p2), 0, %v502_v36  ;;  %v467_v2 = vmul.f32 (!%p2676_p2), 8.0, %v466_v62 }
  0x2e   : > { %606 = vmatpush1.bf16.msra.mxu1 (!%p2676_p2), %v2987_v24  ;;  %v649_v28 = vsel (!%p2676_p2), %vm648_vm1, %v647_v27, 0.0 }
  0x2f   : > { %v504_v40 = vrot.slane (!%p2676_p2), %v3449_v0, %v503_v37 }
  0x31   : > { %477 = vadd.xlane.f32.xlu0 %v476_v6  ;;  %v3552_v6 = vrot.slane %v467_v2, %v503_v37 }
  0x35   : > { %650 = vadd.xlane.f32.xlu0 %v649_v28 }
  0xba   : > { %v475_v7 = vpop.xlane.xlu0 %474 }
  0xbb   : > { %v480_v8 = vmul.f32 0.03125, %v475_v7 }
  0xbd   : > { %v482_v9 = vsub.f32 %v2752_v3, %v480_v8 }
  0xbe   : > { %v478_v10 = vpop.xlane.xlu0 %477 }
  0xbf   : > { %v481_v11 = vmul.f32 0.03125, %v478_v10  ;;  %v484_v12 = vmul.f32 %v482_v9, %v482_v9 }
  0xc1   : > { %v483_v13 = vsub.f32 %v2753_v4, %v481_v11  ;;  %v486_v14 = vsel %vm472_vm0, %v484_v12, 0.0 }
  0xc2   : > { %487 = vadd.xlane.f32.xlu1 %v486_v14  ;;  %v651_v59 = vpop.xlane.xlu0 %650 }
  0xc3   : > { %v485_v15 = vmul.f32 %v483_v13, %v483_v13  ;;  %v652_v61 = vmax.f32 %v651_v59, 1e-24 }
  0xc5   : > { %v489_v16 = vsel %vm472_vm0, %v485_v15, 0.0 }
  0xc6   : > { %490 = vadd.xlane.f32.xlu1 %v489_v16 }
 0x14f   : > { %v488_v29 = vpop.xlane.xlu1 %487 }
 0x150   : > { %v492_v30 = vmul.f32 0.03125, %v488_v29 }
 0x152   : > { %v494_v31 = vadd.f32 1e-05, %v492_v30 }
 0x153   : > { %v491_v32 = vpop.xlane.xlu1 %490 }
 0x154   : > { %2988 = vrsqrt.f32 %v494_v31  ;;  %v493_v33 = vmul.f32 0.03125, %v491_v32 }
 0x156   : > { %v495_v35 = vadd.f32 1e-05, %v493_v33 }
 0x158   : > { %2990 = vrsqrt.f32 %v495_v35 }
 0x159   : > { %2992 = vrsqrt.f32 %v652_v61 }
 0x15e   : > { %v2989_v38 = vpop.eup %2988 }
 0x15f   : > { %v498_v39 = vmul.f32 %v2989_v38, %v482_v9 }
 0x161   : > { %v506_v43 = vmul.f32 %v504_v40, %v498_v39 }
 0x162   : > { %v2991_v41 = vpop.eup %2990 }
 0x163   : > { %v499_v42 = vmul.f32 %v2991_v41, %v483_v13  ;;  %v2993_v63 = vpop.eup %2992 }
 0x164   : > { %v654_v5 = vmul.f32 %v2993_v63, %v646_v26 }
 0x165   : > { %v507_v44 = vmul.f32 %v504_v40, %v499_v42 }
 0x166   : > { %v655_v8 = vmul.f32 %v654_v5, %v3454_v1 }
 0x167   : > { %v508_v45 = vpack.c.bf16 %v507_v44, %v506_v43 }
 0x168   : > { %v3563_v10 = vrot.slane %v655_v8, %v503_v37 }
 0x169   : > { %2685 = vmatmul.mubr.msk.bf16.vlgmr.msra.gmra.mrb[0].mxu0 %vm472_vm0, %v508_v45  ;;  %2686 = vmatmul.mubr.msk.bf16.vlgmr.msra.gmra.mrb[0].mxu1 %vm472_vm0, %v508_v45 }
 0x23c   : > { %v3508_v46 = vpop.f32.mrb[0].mxu0  ;;  %v3510_v47 = vpop.f32.mrb[0].mxu1 }
 0x23d   : > { %v661_v48 = vmul.f32 %v3508_v46, %v3508_v46  ;;  %v3514_v49 = vpop.f32.mrb[1].mxu0  ;;  %v3516_v50 = vpop.f32.mrb[1].mxu1  ;;  %v3531_v56 = vmul.f32 %v3510_v47, %v3510_v47 }
 0x23e   : > { %v3518_v51 = vpop.f32.mrb[2].mxu0  ;;  %v3520_v52 = vpop.f32.mrb[2].mxu1  ;;  %v762_v3 = vmul.f32 %v3514_v49, %v3514_v49  ;;  %v926_v9 = vmul.f32 %v3516_v50, %v3516_v50 }
 0x23f   : > { %v662_v53 = vmul.f32 %v3518_v51, %v3518_v51  ;;  %v3524_v54 = vpop.f32.mrb[3].mxu1  ;;  %707 = vrot.lane.b32.xlu1 %v661_v48, %s3287_s25  ;;  %v3527_v55 = vpop.f32.mrb[3].mxu0  ;;  %v3536_v57 = vmul.f32 %v3520_v52, %v3520_v52  ;;  %v664_v60 = vsel %vm663_vm2, %v661_v48, 0.0  ;;  %v846_v42 = vsel %vm663_vm2, %v3531_v56, 0.0 }
 0x240   : > { %v927_v4 = vmul.f32 %v3524_v54, %v3524_v54  ;;  %v763_v7 = vmul.f32 %v3527_v55, %v3527_v55  ;;  %v764_v40 = vsel %vm663_vm2, %v762_v3, 0.0  ;;  %v928_v45 = vsel %vm663_vm2, %v926_v9, 0.0 }
 0x241   : > { %709 = vrot.lane.b32.xlu0 %v662_v53, %s3287_s25  ;;  %v667_v58 = vsel %vm663_vm2, %v662_v53, 0.0  ;;  %v849_v44 = vsel %vm663_vm2, %v3536_v57, 0.0  ;;  %v3288_v48 = vmov 1.0  }
 0x242   : > { %v767_v36 = vsel %vm663_vm2, %v763_v7, 0.0  ;;  %v931_v39 = vsel %vm663_vm2, %v927_v4, 0.0  ;;  %701 = vst.msk [vmem:[#allocation4] sm:$0xff] %vm698_vm3, %v3288_v48  ;;  %702 = vst.msk [vmem:[#allocation4 + $0x8] sm:$0xff] %vm698_vm3, %v3288_v48 }
 0x243   : > { %878 = vrot.lane.b32.xlu1 %v3531_v56, %s3287_s25  ;;  %758 = vst.msk [vmem:[#allocation4 + $0x10] sm:$0xff] %vm698_vm3, %v3288_v48  ;;  %759 = vst.msk [vmem:[#allocation4 + $0x18] sm:$0xff] %vm698_vm3, %v3288_v48 }
 0x244   : > { %790 = vst.msk [vmem:[#allocation4 + $0x20] sm:$0xff] %vm698_vm3, %v3288_v48  ;;  %791 = vst.msk [vmem:[#allocation4 + $0x28] sm:$0xff] %vm698_vm3, %v3288_v48 }
 0x245   : > { %880 = vrot.lane.b32.xlu0 %v3536_v57, %s3287_s25  ;;  %840 = vst.msk [vmem:[#allocation4 + $0x30] sm:$0xff] %vm698_vm3, %v3288_v48  ;;  %841 = vst.msk [vmem:[#allocation4 + $0x38] sm:$0xff] %vm698_vm3, %v3288_v48 }
 0x246   : > { %872 = vst.msk [vmem:[#allocation4 + $0x40] sm:$0xff] %vm698_vm3, %v3288_v48  ;;  %873 = vst.msk [vmem:[#allocation4 + $0x48] sm:$0xff] %vm698_vm3, %v3288_v48 }
 0x247   : > { %922 = vst.msk [vmem:[#allocation4 + $0x50] sm:$0xff] %vm698_vm3, %v3288_v48  ;;  %923 = vst.msk [vmem:[#allocation4 + $0x58] sm:$0xff] %vm698_vm3, %v3288_v48 }
 0x248   : > { %954 = vst.msk [vmem:[#allocation4 + $0x60] sm:$0xff] %vm698_vm3, %v3288_v48  ;;  %955 = vst.msk [vmem:[#allocation4 + $0x68] sm:$0xff] %vm698_vm3, %v3288_v48 }
 0x249   : > { %1004 = vst.msk [vmem:[#allocation4 + $0x70] sm:$0xff] %vm698_vm3, %v3288_v48  ;;  %1005 = vst.msk [vmem:[#allocation4 + $0x78] sm:$0xff] %vm698_vm3, %v3288_v48 }
 0x264   : > { %668 = vadd.xlane.f32.xlu0 %v667_v58 }
 0x267   : > { %665 = vadd.xlane.f32.xlu1 %v664_v60 }
 0x278   : > { %796 = vrot.lane.b32.xlu1 %v762_v3, %s3287_s25 }
 0x27a   : > { %962 = vrot.lane.b32.xlu0 %v927_v4, %s3287_s25 }
 0x27c   : > { %798 = vrot.lane.b32.xlu1 %v763_v7, %s3287_s25 }
 0x27e   : > { %725 = vrot.lane.b32.xlu0 %v3552_v6, %s3287_s25 }
 0x280   : > { %960 = vrot.lane.b32.xlu1 %v926_v9, %s3287_s25 }
 0x284   : > { %737 = vrot.lane.b32.xlu1 %v3563_v10, %s3287_s25 }
 0x2b1   : > { %v708_v11 = vpop.permute.xlu1 %707 }
 0x2b2   : > { %v713_v12 = vsel %vm663_vm2, %v708_v11, 0.0 }
 0x2b3   : > { %714 = vadd.xlane.f32.xlu1 %v713_v12  ;;  %v710_v15 = vpop.permute.xlu0 %709 }
 0x2b4   : > { %v716_v25 = vsel %vm663_vm2, %v710_v15, 0.0 }
 0x2b5   : > { %v879_v13 = vpop.permute.xlu1 %878 }
 0x2b6   : > { %v884_v14 = vsel %vm663_vm2, %v879_v13, 0.0 }
 0x2b7   : > { %885 = vadd.xlane.f32.xlu0 %v884_v14  ;;  %v881_v16 = vpop.permute.xlu0 %880 }
 0x2b8   : > { %v887_v31 = vsel %vm663_vm2, %v881_v16, 0.0 }
 0x2f1   : > { %v669_v17 = vpop.xlane.xlu0 %668 }
 0x2f2   : > { %v671_v18 = vmax.f32 %v669_v17, 1e-24 }
 0x2f4   : > { %2994 = vrsqrt.f32 %v671_v18  ;;  %v666_v19 = vpop.xlane.xlu1 %665 }
 0x2f5   : > { %v670_v20 = vmax.f32 %v666_v19, 1e-24  ;;  %v963_v27 = vpop.permute.xlu0 %962 }
 0x2f6   : > { %v969_v30 = vsel %vm663_vm2, %v963_v27, 0.0 }
 0x2f7   : > { %2996 = vrsqrt.f32 %v670_v20 }
 0x2f8   : > { %v797_v21 = vpop.permute.xlu1 %796 }
 0x2f9   : > { %v802_v22 = vsel %vm663_vm2, %v797_v21, 0.0  ;;  %v3610_v53 = vpop.permute.xlu0 %725 }
 0x2fa   : > { %803 = vadd.xlane.f32.xlu0 %v802_v22 }
 0x2fc   : > { %v799_v23 = vpop.permute.xlu1 %798 }
 0x2fd   : > { %v805_v24 = vsel %vm663_vm2, %v799_v23, 0.0 }
 0x2fe   : > { %v2995_v26 = vpop.eup %2994  ;;  %806 = vadd.xlane.f32.xlu1 %v805_v24  ;;  %717 = vadd.xlane.f32.xlu0 %v716_v25 }
 0x2ff   : > { %v675_v28 = vmul.f32 %v2995_v26, %v3518_v51 }
 0x300   : > { %v961_v32 = vpop.permute.xlu1 %960 }
 0x301   : > { %v2997_v29 = vpop.eup %2996  ;;  %v3579_v35 = vmul.f32 %v3552_v6, %v675_v28  ;;  %v966_v37 = vsel %vm663_vm2, %v961_v32, 0.0 }
 0x302   : > { %970 = vadd.xlane.f32.xlu1 %v969_v30  ;;  %888 = vadd.xlane.f32.xlu0 %v887_v31  ;;  %v674_v33 = vmul.f32 %v2997_v29, %v3508_v46 }
 0x304   : > { %v682_v34 = vmul.f32 %v3552_v6, %v674_v33  ;;  %v3612_v56 = vpop.permute.xlu1 %737 }
 0x306   : > { %768 = vadd.xlane.f32.xlu1 %v767_v36  ;;  %967 = vadd.xlane.f32.xlu0 %v966_v37  ;;  %v684_v38 = vpack.c.bf16 %v3579_v35, %v682_v34  ;;  %v690_v41 = vmul.f32 %v3563_v10, %v682_v34 }
 0x308   : > { %685 = vst.msk [vmem:[#allocation2] sm:$0xff] %vm663_vm2, %v684_v38  ;;  %v692_v43 = vsel %vm663_vm2, %v690_v41, 0.0 }
 0x30a   : > { %932 = vadd.xlane.f32.xlu1 %v931_v39  ;;  %765 = vadd.xlane.f32.xlu0 %v764_v40 }
 0x30e   : > { %847 = vadd.xlane.f32.xlu0 %v846_v42  ;;  %693 = vadd.xlane.f32.xlu1 %v692_v43 }
 0x312   : > { %850 = vadd.xlane.f32.xlu0 %v849_v44 }
 0x316   : > { %929 = vadd.xlane.f32.xlu0 %v928_v45 }
 0x340   : > { %v715_v58 = vpop.xlane.xlu1 %714 }
 0x341   : > { %v719_v59 = vmax.f32 %v715_v58, 1e-24 }
 0x344   : > { %v886_v57 = vpop.xlane.xlu0 %885 }
 0x345   : > { %v890_v62 = vmax.f32 %v886_v57, 1e-24 }
 0x387   : > { %v804_v60 = vpop.xlane.xlu0 %803 }
 0x388   : > { %v808_v61 = vmax.f32 %v804_v60, 1e-24 }
 0x38a   : > { %2998 = vrsqrt.f32 %v808_v61 }
 0x38b   : > { %3000 = vrsqrt.f32 %v719_v59  ;;  %v807_v63 = vpop.xlane.xlu1 %806  ;;  %v718_v2 = vpop.xlane.xlu0 %717 }
 0x38c   : > { %v809_v3 = vmax.f32 %v807_v63, 1e-24  ;;  %v720_v4 = vmax.f32 %v718_v2, 1e-24  ;;  %3002 = vrsqrt.f32 %v890_v62 }
 0x38e   : > { %3004 = vrsqrt.f32 %v809_v3 }
 0x38f   : > { %3006 = vrsqrt.f32 %v720_v4  ;;  %v971_v5 = vpop.xlane.xlu1 %970  ;;  %v889_v7 = vpop.xlane.xlu0 %888 }
 0x390   : > { %v973_v8 = vmax.f32 %v971_v5, 1e-24  ;;  %v891_v9 = vmax.f32 %v889_v7, 1e-24 }
 0x392   : > { %3008 = vrsqrt.f32 %v973_v8 }
 0x393   : > { %3010 = vrsqrt.f32 %v891_v9  ;;  %v769_v11 = vpop.xlane.xlu1 %768  ;;  %v968_v12 = vpop.xlane.xlu0 %967 }
 0x394   : > { %v2999_v13 = vpop.eup %2998  ;;  %v771_v14 = vmax.f32 %v769_v11, 1e-24  ;;  %v972_v15 = vmax.f32 %v968_v12, 1e-24 }
 0x395   : > { %v3001_v16 = vpop.eup %3000  ;;  %v812_v20 = vmul.f32 %v2999_v13, %v3514_v49 }
 0x396   : > { %3012 = vrsqrt.f32 %v771_v14  ;;  %v3003_v17 = vpop.eup %3002  ;;  %v723_v23 = vmul.f32 %v3001_v16, %v3508_v46 }
 0x397   : > { %3014 = vrsqrt.f32 %v972_v15  ;;  %v933_v18 = vpop.xlane.xlu1 %932  ;;  %v766_v19 = vpop.xlane.xlu0 %765  ;;  %v3619_v29 = vmul.f32 %v812_v20, %v3610_v53 }
 0x398   : > { %v3005_v21 = vpop.eup %3004  ;;  %v770_v22 = vmax.f32 %v766_v19, 1e-24  ;;  %v3626_v46 = vmul.f32 %v3610_v53, %v723_v23  ;;  %v935_v36 = vmax.f32 %v933_v18, 1e-24 }
 0x399   : > { %v3007_v24 = vpop.eup %3006  ;;  %v813_v25 = vmul.f32 %v3005_v21, %v3527_v55 }
 0x39a   : > { %v724_v26 = vmul.f32 %v3007_v24, %v3518_v51  ;;  %3016 = vrsqrt.f32 %v770_v22  ;;  %v894_v51 = vmul.f32 %v3003_v17, %v3510_v47 }
 0x39b   : > { %v848_v27 = vpop.xlane.xlu0 %847  ;;  %v694_v28 = vpop.xlane.xlu1 %693  ;;  %v3622_v30 = vmul.f32 %v813_v25, %v3610_v53 }
 0x39c   : > { %v3009_v31 = vpop.eup %3008  ;;  %v852_v32 = vmax.f32 %v848_v27, 1e-24  ;;  %699 = vst.msk [vmem:[#allocation3] sm:$0xff] %vm698_vm3, %v694_v28  ;;  %v3629_v33 = vmul.f32 %v3610_v53, %v724_v26  ;;  %v3638_v43 = vmul.f32 %v894_v51, %v3610_v53  ;;  %v822_v27 = vmul.f32 %v3619_v29, %v3612_v56 }
 0x39d   : > { %v3011_v34 = vpop.eup %3010  ;;  %v816_v37 = vpack.c.bf16 %v3622_v30, %v3619_v29  ;;  %v977_v45 = vmul.f32 %v3009_v31, %v3524_v54  ;;  %v740_v28 = vmul.f32 %v3612_v56, %v3626_v46 }
 0x39e   : > { %3018 = vrsqrt.f32 %v852_v32  ;;  %v730_v38 = vpack.c.bf16 %v3629_v33, %v3626_v46  ;;  %v895_v39 = vmul.f32 %v3011_v34, %v3520_v52  ;;  %v741_v31 = vmul.f32 %v3612_v56, %v3629_v33 }
 0x39f   : > { %v851_v40 = vpop.xlane.xlu0 %850  ;;  %3020 = vrsqrt.f32 %v935_v36  ;;  %v3652_v63 = vmul.f32 %v977_v45, %v3610_v53  ;;  %v823_v46 = vmul.f32 %v3622_v30, %v3612_v56 }
 0x3a0   : > { %v3013_v41 = vpop.eup %3012  ;;  %v853_v42 = vmax.f32 %v851_v40, 1e-24  ;;  %v3641_v44 = vmul.f32 %v895_v39, %v3610_v53 }
 0x3a1   : > { %v3015_v48 = vpop.eup %3014  ;;  %v775_v61 = vmul.f32 %v3013_v41, %v3527_v55  ;;  %v987_v33 = vmul.f32 %v3652_v63, %v3612_v56 }
 0x3a2   : > { %3022 = vrsqrt.f32 %v853_v42  ;;  %v976_v57 = vmul.f32 %v3015_v48, %v3516_v50  ;;  %v898_v58 = vpack.c.bf16 %v3641_v44, %v3638_v43  ;;  %v905_v32 = vmul.f32 %v3641_v44, %v3612_v56 }
 0x3a3   : > { %v930_v59 = vpop.xlane.xlu0 %929  ;;  %v777_v8 = vmul.f32 %v775_v61, %v3552_v6 }
 0x3a4   : > { %v934_v60 = vmax.f32 %v930_v59, 1e-24  ;;  %v3649_v62 = vmul.f32 %v976_v57, %v3610_v53  ;;  %v3017_v2 = vpop.eup %3016 }
 0x3a5   : > { %v774_v3 = vmul.f32 %v3017_v2, %v3514_v49  ;;  %v691_v49 = vmul.f32 %v3563_v10, %v3579_v35  ;;  %v781_v18 = vmul.f32 %v777_v8, %v3563_v10 }
 0x3a6   : > { %3024 = vrsqrt.f32 %v934_v60  ;;  %v980_v4 = vpack.c.bf16 %v3652_v63, %v3649_v62 }
 0x3a7   : > { %v776_v7 = vmul.f32 %v774_v3, %v3552_v6  ;;  %v695_v21 = vsel %vm663_vm2, %v691_v49, 0.0  ;;  %v785_v24 = vsel %vm663_vm2, %v781_v18, 0.0 }
 0x3a8   : > { %v3019_v5 = vpop.eup %3018 }
 0x3a9   : > { %v856_v55 = vmul.f32 %v3019_v5, %v3510_v47  ;;  %v780_v9 = vmul.f32 %v776_v7, %v3563_v10  ;;  %v778_v11 = vpack.c.bf16 %v777_v8, %v776_v7  ;;  %v3021_v12 = vpop.eup %3020 }
 0x3aa   : > { %v939_v19 = vmul.f32 %v3021_v12, %v3524_v54 }
 0x3ab   : > { %v858_v53 = vmul.f32 %v856_v55, %v3552_v6  ;;  %v782_v14 = vsel %vm663_vm2, %v780_v9, 0.0  ;;  %779 = vst.msk [vmem:[#allocation2 + $0x10] sm:$0xff] %vm663_vm2, %v778_v11  ;;  %v2687_v9 = vld [vmem:[%s4357_s6 + $0x1] ss:$0 sm:$0xff] }
 0x3ac   : > { %v3023_v13 = vpop.eup %3022  ;;  %783 = vadd.xlane.f32.xlu0 %v782_v14  ;;  %v941_v54 = vmul.f32 %v939_v19, %v3552_v6  ;;  %703 = vst.msk [vmem:[#allocation5] sm:$0xff] %vm663_vm2, %v2687_v9  ;;  %704 = vst.msk [vmem:[#allocation5 + $0x8] sm:$0xff] %vm663_vm2, %v2687_v9 }
 0x3ad   : > { %v862_v15 = vmul.f32 %v858_v53, %v3563_v10  ;;  %v857_v16 = vmul.f32 %v3023_v13, %v3520_v52  ;;  %760 = vst.msk [vmem:[#allocation5 + $0x10] sm:$0xff] %vm663_vm2, %v2687_v9  ;;  %761 = vst.msk [vmem:[#allocation5 + $0x18] sm:$0xff] %vm663_vm2, %v2687_v9 }
 0x3ae   : > { %v945_v34 = vmul.f32 %v941_v54, %v3563_v10  ;;  %792 = vst.msk [vmem:[#allocation5 + $0x20] sm:$0xff] %vm663_vm2, %v2687_v9  ;;  %793 = vst.msk [vmem:[#allocation5 + $0x28] sm:$0xff] %vm663_vm2, %v2687_v9 }
 0x3af   : > { %v864_v47 = vsel %vm663_vm2, %v862_v15, 0.0  ;;  %v859_v17 = vmul.f32 %v857_v16, %v3552_v6  ;;  %842 = vst.msk [vmem:[#allocation5 + $0x30] sm:$0xff] %vm663_vm2, %v2687_v9  ;;  %843 = vst.msk [vmem:[#allocation5 + $0x38] sm:$0xff] %vm663_vm2, %v2687_v9 }
 0x3b0   : > { %v3025_v20 = vpop.eup %3024  ;;  %865 = vadd.xlane.f32.xlu1 %v864_v47  ;;  %696 = vadd.xlane.f32.xlu0 %v695_v21  ;;  %v949_v36 = vsel %vm663_vm2, %v945_v34, 0.0  ;;  %874 = vst.msk [vmem:[#allocation5 + $0x40] sm:$0xff] %vm663_vm2, %v2687_v9  ;;  %875 = vst.msk [vmem:[#allocation5 + $0x48] sm:$0xff] %vm663_vm2, %v2687_v9 }
 0x3b1   : > { %v860_v35 = vpack.c.bf16 %v859_v17, %v858_v53  ;;  %v863_v22 = vmul.f32 %v859_v17, %v3563_v10  ;;  %v938_v23 = vmul.f32 %v3025_v20, %v3516_v50  ;;  %v986_v50 = vmul.f32 %v3649_v62, %v3612_v56  ;;  %924 = vst.msk [vmem:[#allocation5 + $0x50] sm:$0xff] %vm663_vm2, %v2687_v9 }
 0x3b2   : > { %925 = vst.msk [vmem:[#allocation5 + $0x58] sm:$0xff] %vm663_vm2, %v2687_v9  ;;  %956 = vst.msk [vmem:[#allocation5 + $0x60] sm:$0xff] %vm663_vm2, %v2687_v9 }
 0x3b3   : > { %861 = vst.msk [vmem:[#allocation2 + $0x20] sm:$0xff] %vm663_vm2, %v860_v35  ;;  %v867_v52 = vsel %vm663_vm2, %v863_v22, 0.0  ;;  %v940_v25 = vmul.f32 %v938_v23, %v3552_v6  ;;  %v904_v6 = vmul.f32 %v3638_v43, %v3612_v56  ;;  %957 = vst.msk [vmem:[#allocation5 + $0x68] sm:$0xff] %vm663_vm2, %v2687_v9 }
 0x3b4   : > { %786 = vadd.xlane.f32.xlu1 %v785_v24  ;;  %868 = vadd.xlane.f32.xlu0 %v867_v52  ;;  %1006 = vst.msk [vmem:[#allocation5 + $0x70] sm:$0xff] %vm663_vm2, %v2687_v9  ;;  %1007 = vst.msk [vmem:[#allocation5 + $0x78] sm:$0xff] %vm663_vm2, %v2687_v9 }
 0x3b5   : > { %v942_v26 = vpack.c.bf16 %v941_v54, %v940_v25  ;;  %v944_v29 = vmul.f32 %v940_v25, %v3563_v10 }
 0x3b7   : > { %943 = vst.msk [vmem:[#allocation2 + $0x30] sm:$0xff] %vm663_vm2, %v942_v26  ;;  %v946_v51 = vsel %vm663_vm2, %v944_v29, 0.0 }
 0x3c5   : > { %826 = vrot.lane.b32.xlu1 %v822_v27, %s3287_s25 }
 0x3c9   : > { %990 = vrot.lane.b32.xlu1 %v986_v50, %s3287_s25 }
 0x3ca   : > { %744 = vrot.lane.b32.xlu0 %v740_v28, %s3287_s25 }
 0x3cd   : > { %732 = vrot.lane.b32.xlu1 %v730_v38, %s3287_s25 }
 0x3ce   : > { %908 = vrot.lane.b32.xlu0 %v904_v6, %s3287_s25 }
 0x3d1   : > { %746 = vrot.lane.b32.xlu1 %v741_v31, %s3287_s25 }
 0x3d2   : > { %818 = vrot.lane.b32.xlu0 %v816_v37, %s3287_s25 }
 0x3d5   : > { %900 = vrot.lane.b32.xlu1 %v898_v58, %s3287_s25 }
 0x3d9   : > { %910 = vrot.lane.b32.xlu1 %v905_v32, %s3287_s25 }
 0x3dd   : > { %828 = vrot.lane.b32.xlu1 %v823_v46, %s3287_s25 }
 0x3e1   : > { %992 = vrot.lane.b32.xlu1 %v987_v33, %s3287_s25 }
 0x3f1   : > { %947 = vadd.xlane.f32.xlu0 %v946_v51 }
 0x3f5   : > { %950 = vadd.xlane.f32.xlu0 %v949_v36 }
 0x439   : > { %v784_v37 = vpop.xlane.xlu0 %783 }
 0x43a   : > { %788 = vst.msk [vmem:[#allocation3 + $0x20] sm:$0xff] %vm698_vm3, %v784_v37 }
 0x43d   : > { %v866_v30 = vpop.xlane.xlu1 %865  ;;  %v697_v38 = vpop.xlane.xlu0 %696 }
 0x43e   : > { %870 = vst.msk [vmem:[#allocation3 + $0x40] sm:$0xff] %vm698_vm3, %v866_v30  ;;  %700 = vst.msk [vmem:[#allocation3 + $0x8] sm:$0xff] %vm698_vm3, %v697_v38 }
 0x441   : > { %v787_v56 = vpop.xlane.xlu1 %786  ;;  %v869_v39 = vpop.xlane.xlu0 %868 }
 0x442   : > { %789 = vst.msk [vmem:[#allocation3 + $0x28] sm:$0xff] %vm698_vm3, %v787_v56  ;;  %871 = vst.msk [vmem:[#allocation3 + $0x48] sm:$0xff] %vm698_vm3, %v869_v39 }
 0x445   : > { %v827_v10 = vpop.permute.xlu1 %826  ;;  %v745_v40 = vpop.permute.xlu0 %744 }
 0x446   : > { %v832_v41 = vsel %vm663_vm2, %v827_v10, 0.0  ;;  %v750_v42 = vsel %vm663_vm2, %v745_v40, 0.0 }
 0x447   : > { %833 = vadd.xlane.f32.xlu1 %v832_v41  ;;  %751 = vadd.xlane.f32.xlu0 %v750_v42 }
 0x449   : > { %v991_v43 = vpop.permute.xlu1 %990  ;;  %v909_v44 = vpop.permute.xlu0 %908 }
 0x44a   : > { %v914_v45 = vsel %vm663_vm2, %v909_v44, 0.0  ;;  %v996_v5 = vsel %vm663_vm2, %v991_v43, 0.0 }
 0x44b   : > { %915 = vadd.xlane.f32.xlu0 %v914_v45 }
 0x44d   : > { %v733_v48 = vpop.permute.xlu1 %732  ;;  %v819_v57 = vpop.permute.xlu0 %818 }
 0x44e   : > { %735 = vst.msk [vmem:[#allocation2 + $0x8] sm:$0xff] %vm663_vm2, %v733_v48  ;;  %821 = vst.msk [vmem:[#allocation2 + $0x18] sm:$0xff] %vm663_vm2, %v819_v57 }
 0x451   : > { %v747_v58 = vpop.permute.xlu1 %746 }
 0x452   : > { %v753_v59 = vsel %vm663_vm2, %v747_v58, 0.0 }
 0x453   : > { %754 = vadd.xlane.f32.xlu1 %v753_v59 }
 0x455   : > { %v901_v60 = vpop.permute.xlu1 %900 }
 0x456   : > { %903 = vst.msk [vmem:[#allocation2 + $0x28] sm:$0xff] %vm663_vm2, %v901_v60 }
 0x459   : > { %v911_v61 = vpop.permute.xlu1 %910 }
 0x45a   : > { %v917_v2 = vsel %vm663_vm2, %v911_v61, 0.0 }
 0x45b   : > { %918 = vadd.xlane.f32.xlu1 %v917_v2 }
 0x45d   : > { %v829_v3 = vpop.permute.xlu1 %828 }
 0x45e   : > { %v835_v7 = vsel %vm663_vm2, %v829_v3, 0.0 }
 0x45f   : > { %997 = vadd.xlane.f32.xlu1 %v996_v5  ;;  %836 = vadd.xlane.f32.xlu0 %v835_v7 }
 0x461   : > { %v993_v8 = vpop.permute.xlu1 %992 }
 0x462   : > { %v999_v55 = vsel %vm663_vm2, %v993_v8, 0.0 }
 0x463   : > { %1000 = vadd.xlane.f32.xlu1 %v999_v55 }
 0x475   : > { %982 = vrot.lane.b32.xlu0 %v980_v4, %s3287_s25 }
 0x47e   : > { %v948_v11 = vpop.xlane.xlu0 %947 }
 0x47f   : > { %952 = vst.msk [vmem:[#allocation3 + $0x60] sm:$0xff] %vm698_vm3, %v948_v11 }
 0x482   : > { %v951_v12 = vpop.xlane.xlu0 %950 }
 0x483   : > { %953 = vst.msk [vmem:[#allocation3 + $0x68] sm:$0xff] %vm698_vm3, %v951_v12 }
 0x4d4   : > { %v834_v53 = vpop.xlane.xlu1 %833  ;;  %v752_v13 = vpop.xlane.xlu0 %751 }
 0x4d5   : > { %838 = vst.msk [vmem:[#allocation3 + $0x30] sm:$0xff] %vm698_vm3, %v834_v53  ;;  %756 = vst.msk [vmem:[#allocation3 + $0x10] sm:$0xff] %vm698_vm3, %v752_v13 }
 0x4d8   : > { %v916_v14 = vpop.xlane.xlu0 %915 }
 0x4d9   : > { %920 = vst.msk [vmem:[#allocation3 + $0x50] sm:$0xff] %vm698_vm3, %v916_v14 }
 0x4e0   : > { %v755_v49 = vpop.xlane.xlu1 %754 }
 0x4e1   : > { %757 = vst.msk [vmem:[#allocation3 + $0x18] sm:$0xff] %vm698_vm3, %v755_v49 }
 0x4e8   : > { %v919_v62 = vpop.xlane.xlu1 %918 }
 0x4e9   : > { %921 = vst.msk [vmem:[#allocation3 + $0x58] sm:$0xff] %vm698_vm3, %v919_v62 }
 0x4ec   : > { %v837_v63 = vpop.xlane.xlu0 %836  ;;  %v998_v4 = vpop.xlane.xlu1 %997 }
 0x4ed   : > { %839 = vst.msk [vmem:[#allocation3 + $0x38] sm:$0xff] %vm698_vm3, %v837_v63  ;;  %1002 = vst.msk [vmem:[#allocation3 + $0x70] sm:$0xff] %vm698_vm3, %v998_v4 }
 0x4f0   : > { %v983_v15 = vpop.permute.xlu0 %982  ;;  %v1001_v16 = vpop.xlane.xlu1 %1000 }
 0x4f1   : > { %985 = vst.msk [vmem:[#allocation2 + $0x38] sm:$0xff] %vm663_vm2, %v983_v15 }
 0x4f2   : > { %1003 = vst.msk [vmem:[#allocation3 + $0x78] sm:$0xff] %vm698_vm3, %v1001_v16 }
 0x4f3 PF: > { %v2755_v47 = vld [vmem:[%s3469_s23] sm:$0xff]   ;;  %vm1012_vm4 = vcmask 261120   ;;  %v3289_v6 = vmov 0.0   ;;  %v3030_v31 = vld [vmem:[%s4355_s4 + $0x8] sm:$0xff]   ;;  %vm3290_vm5 = vmmov 0   ;;  %v1041_v36 = vlaneseq  ;;  %p2710_p3 = scmp.ne.s32.totalorder %s3260_s20, 1 }
 0x4f4   : > { %v2756_v17 = vunpack.c.l.bf16 %v2755_v47  ;;  %v2757_v18 = vunpack.c.h.bf16 %v2755_v47  ;;  %v3028_v50 = vld [vmem:[%s4355_s4] sm:$0xff]   ;;  %2826 = vmatprep.subr.bf16.mxu0 %v3289_v6  ;;  %2834 = vmatprep.subr.bf16.mxu1 %v3289_v6  ;;  %v3031_v32 = vld [vmem:[%s4356_s5 + $0x8] sm:$0xff]   ;;  %vm1168_vm6 = vcmask 523264   ;;  %vm1339_vm7 = vcmask 130048   ;;  %s3293_s20 = smov (!%p2710_p3), 64  }
 0x4f5   : > { %v3029_v28 = vld [vmem:[%s4356_s5] sm:$0xff]   ;;  %2827 = vmatpush3.bf16.msra.mxu0 %v3028_v50  ;;  %2830 = vmatprep.mubr.msk.bf16.mxu0 %vm3290_vm5, %v3289_v6  ;;  %v1042_v30 = vshrl.u32 %v1041_v36, 7  ;;  %vm1676_vm8 = vcmask 7168   ;;  %vm2053_vm9 = vcmask (!%p2710_p3), 1048064  }
 0x4f6   : > { %v1013_v19 = vsel %vm1012_vm4, %v2756_v17, 0.0  ;;  %v1016_v20 = vsel %vm1012_vm4, %v2757_v18, 0.0  ;;  %2835 = vmatpush3.bf16.msra.mxu1 %v3029_v28  ;;  %2828 = vmatprep.subr.bf16.mxu0 %v3289_v6  ;;  %v1191_v55 = vld [vmem:[#allocation2] sm:$0xff] }
 0x4f7   : > { %1014 = vadd.xlane.f32.xlu0 %v1013_v19  ;;  %2836 = vmatprep.subr.bf16.mxu1 %v3289_v6  ;;  %v1043_v38 = vsub.s32 0, %v1042_v30  ;;  %v1194_v19 = vld [vmem:[#allocation2 + $0x18] sm:$0xff]  ;;  %v3291_v30 = vmov 0  }
 0x4f8   : > { %2838 = vmatprep.mubr.msk.bf16.mxu1 %vm3290_vm5, %v3289_v6  ;;  %3026 = vset.pattern.permute.xlu0 %v3291_v30 }
 0x4f9   : > { %2829 = vmatpush3.bf16.msra.mxu0 %v3030_v31  ;;  %v1044_v10 = vrot.slane %v3449_v0, %v1043_v38  ;;  %v1185_v49 = vrot.slane %v3454_v1, %v1043_v38  ;;  %v1196_v1 = vld [vmem:[#allocation2 + $0x28] sm:$0xff]  ;;  %3027 = vset.pattern.permute.xlu1 %v3291_v30 }
 0x4fa   : > { %2837 = vmatpush3.bf16.msra.mxu1 %v3031_v32 }
 0x4fb   : > { %1017 = vadd.xlane.f32.xlu0 %v1016_v20  ;;  %v1195_v20 = vld [vmem:[#allocation2 + $0x20] sm:$0xff] }
 0x584   : > { %v1015_v21 = vpop.xlane.xlu0 %1014 }
 0x585   : > { %v1020_v35 = vmul.f32 0.03125, %v1015_v21  ;;  %v1197_v21 = vld [vmem:[#allocation2 + $0x30] sm:$0xff] }
 0x587   : > { %v1022_v22 = vsub.f32 %v2756_v17, %v1020_v35  ;;  %v1192_v17 = vld [vmem:[#allocation2 + $0x8] sm:$0xff]  ;;  %v1198_v35 = vld [vmem:[#allocation2 + $0x38] sm:$0xff] }
 0x588   : > { %v1018_v23 = vpop.xlane.xlu0 %1017 }
 0x589   : > { %v1021_v52 = vmul.f32 0.03125, %v1018_v23  ;;  %v1024_v24 = vmul.f32 %v1022_v22, %v1022_v22 }
 0x58b   : > { %v1023_v25 = vsub.f32 %v2757_v18, %v1021_v52  ;;  %v1026_v54 = vsel %vm1012_vm4, %v1024_v24, 0.0  ;;  %v1193_v18 = vld [vmem:[#allocation2 + $0x10] sm:$0xff] }
 0x58c   : > { %1027 = vadd.xlane.f32.xlu1 %v1026_v54 }
 0x58d   : > { %v1025_v26 = vmul.f32 %v1023_v25, %v1023_v25 }
 0x58f   : > { %v1029_v27 = vsel %vm1012_vm4, %v1025_v26, 0.0 }
 0x590   : > { %1030 = vadd.xlane.f32.xlu1 %v1029_v27 }
 0x619   : > { %v1028_v46 = vpop.xlane.xlu1 %1027 }
 0x61a   : > { %v1032_v33 = vmul.f32 0.03125, %v1028_v46 }
 0x61c   : > { %v1034_v29 = vadd.f32 1e-05, %v1032_v33 }
 0x61d   : > { %v1031_v51 = vpop.xlane.xlu1 %1030 }
 0x61e   : > { %3032 = vrsqrt.f32 %v1034_v29  ;;  %v1033_v34 = vmul.f32 0.03125, %v1031_v51 }
 0x620   : > { %v1035_v37 = vadd.f32 1e-05, %v1033_v34 }
 0x622   : > { %3034 = vrsqrt.f32 %v1035_v37 }
 0x628   : > { %v3033_v56 = vpop.eup %3032 }
 0x629   : > { %v1038_v39 = vmul.f32 %v3033_v56, %v1022_v22 }
 0x62b   : > { %v1046_v42 = vmul.f32 %v1044_v10, %v1038_v39 }
 0x62c   : > { %v3035_v40 = vpop.eup %3034 }
 0x62d   : > { %v1039_v41 = vmul.f32 %v3035_v40, %v1023_v25 }
 0x62f   : > { %v1047_v43 = vmul.f32 %v1044_v10, %v1039_v41 }
 0x631   : > { %v1048_v44 = vpack.c.bf16 %v1047_v43, %v1046_v42 }
 0x633   : > { %2831 = vmatmul.mubr.msk.bf16.vlgmr.msra.gmra.mrb[0].mxu0 %vm1012_vm4, %v1048_v44  ;;  %2839 = vmatmul.mubr.msk.bf16.vlgmr.msra.gmra.mrb[0].mxu1 %vm1012_vm4, %v1048_v44 }
 0x634   : > { %2844 = vmatprep.mubr.msk.bf16.mxu0 %vm1168_vm6, %v1191_v55 }
 0x706   : > { %v1102_v45 = vpop.f32.mrb[0].mxu0  ;;  %v1159_v48 = vpop.f32.mrb[0].mxu1 }
 0x707   : > { %v1166_v57 = vmul.f32 %v1102_v45, %v1102_v45  ;;  %v2832_v58 = vpop.f32.mrb[1].mxu0  ;;  %v2840_v59 = vpop.f32.mrb[1].mxu1 }
 0x708   : > { %v1105_v60 = vpop.f32.mrb[2].mxu0  ;;  %v1162_v61 = vpop.f32.mrb[2].mxu1  ;;  %v1323_v58 = vld [vmem:[#allocation3] sm:$0xff]  ;;  %v3862_v59 = vld [vmem:[#allocation3 + $0x18] sm:$0xff] }
 0x709   : > { %v1167_v2 = vmul.f32 %v1105_v60, %v1105_v60  ;;  %v1190_v3 = vpack.c.bf16 %v1162_v61, %v1159_v48  ;;  %v2833_v0 = vpop.f32.mrb[3].mxu0  ;;  %v2841_v5 = vpop.f32.mrb[3].mxu1  ;;  %v1169_v7 = vsel %vm1168_vm6, %v1166_v57, 0.0 }
 0x70a   : > { %1170 = vadd.xlane.f32.xlu0 %v1169_v7  ;;  %v3867_v0 = vld [vmem:[#allocation3 + $0x10] sm:$0xff]  ;;  %v3870_v5 = vld [vmem:[#allocation3 + $0x8] sm:$0xff] }
 0x70b   : > { %2860 = vmatprep.subr.bf16.mxu1 %v1190_v3  ;;  %v1172_v8 = vsel %vm1168_vm6, %v1167_v2, 0.0 }
 0x70c   : > { %2861 = vmatpush3.bf16.msra.mxu1 %v1190_v3  ;;  %1173 = vadd.xlane.f32.xlu1 %v1172_v8 }
 0x797   : > { %v1171_v9 = vpop.xlane.xlu0 %1170 }
 0x798   : > { %v1175_v11 = vmax.f32 %v1171_v9, 1e-24 }
 0x799   : > { %v1174_v12 = vpop.xlane.xlu1 %1173 }
 0x79a   : > { %3036 = vrsqrt.f32 %v1175_v11  ;;  %v1176_v53 = vmax.f32 %v1174_v12, 1e-24  ;;  %v3880_v11 = vld [vmem:[#allocation3 + $0x20] sm:$0xff]  ;;  %v3885_v12 = vld [vmem:[#allocation3 + $0x38] sm:$0xff] }
 0x79c   : > { %3038 = vrsqrt.f32 %v1176_v53 }
 0x7a4   : > { %v3037_v13 = vpop.eup %3036 }
 0x7a5   : > { %v1179_v14 = vmul.f32 %v3037_v13, %v1102_v45 }
 0x7a6   : > { %v3039_v62 = vpop.eup %3038 }
 0x7a7   : > { %v1180_v63 = vmul.f32 %v3039_v62, %v1105_v60  ;;  %v1187_v4 = vmul.f32 %v1185_v49, %v1179_v14  ;;  %v3895_v62 = vld [vmem:[#allocation3 + $0x30] sm:$0xff] }
 0x7a9   : > { %v1188_v15 = vmul.f32 %v1185_v49, %v1180_v63  ;;  %v1328_v63 = vld [vmem:[#allocation3 + $0x28] sm:$0xff] }
 0x7ab   : > { %v1189_v16 = vpack.c.bf16 %v1188_v15, %v1187_v4 }
 0x7ad   : > { %2878 = vmatprep.subr.msk.bf16.mxu0 %vm1168_vm6, %v1189_v16  ;;  %v1224_v47 = vsel %vm1168_vm6, %v1189_v16, 0 }
 0x7ae   : > { %2843 = vmatpush3.bf16.xpose.msra.mxu0 %v1224_v47 }
 0x7b5   : > { %2845 = vmatmul.mubr.msk.bf16.vlgmr.msra.gmra.mrb[4].mxu0 %vm1168_vm6, %v1192_v17  ;;  %v3905_v17 = vld [vmem:[#allocation3 + $0x40] sm:$0xff] }
 0x7b6   : > { %2848 = vmatprep.mubr.msk.bf16.mxu0 %vm1168_vm6, %v1193_v18  ;;  %v3910_v18 = vld [vmem:[#allocation3 + $0x58] sm:$0xff] }
 0x7bd   : > { %2849 = vmatmul.mubr.msk.bf16.gmra.mrb[8].mxu0 %vm1168_vm6, %v1194_v19 }
 0x7be   : > { %2852 = vmatprep.mubr.msk.bf16.mxu0 %vm1168_vm6, %v1195_v20 }
 0x7c5   : > { %2853 = vmatmul.mubr.msk.bf16.gmra.mrb[12].mxu0 %vm1168_vm6, %v1196_v1 }
 0x7c6   : > { %2856 = vmatprep.mubr.msk.bf16.mxu0 %vm1168_vm6, %v1197_v21 }
 0x7cd   : > { %2857 = vmatmul.mubr.msk.bf16.gmra.mrb[16].mxu0 %vm1168_vm6, %v1198_v35  ;;  %v3917_v35 = vld [vmem:[#allocation3 + $0x50] sm:$0xff] }
 0x888   : > { %v3798_v22 = vpop.f32.mrb[4].mxu0 }
 0x889   : > { %v3800_v23 = vpop.f32.mrb[5].mxu0  ;;  %v1346_v26 = vsel %vm1339_vm7, %v3798_v22, -inf }
 0x88a   : > { %v3802_v52 = vpop.f32.mrb[6].mxu0  ;;  %v1340_v24 = vsel %vm1339_vm7, %v3800_v23, -inf }
 0x88b   : > { %1341 = vmax.xlane.f32.xlu0 %v1340_v24  ;;  %v3806_v25 = vpop.f32.mrb[7].mxu0  ;;  %v1349_v54 = vsel %vm1339_vm7, %v3802_v52, -inf  ;;  %v3920_v24 = vld [vmem:[#allocation3 + $0x48] sm:$0xff] }
 0x88c   : > { %1350 = vmax.xlane.f32.xlu1 %v1349_v54  ;;  %v1343_v27 = vsel %vm1339_vm7, %v3806_v25, -inf }
 0x88f   : > { %1347 = vmax.xlane.f32.xlu0 %v1346_v26 }
 0x890   : > { %1344 = vmax.xlane.f32.xlu1 %v1343_v27  ;;  %v3814_v50 = vpop.f32.mrb[8].mxu0 }
 0x891   : > { %v3816_v28 = vpop.f32.mrb[9].mxu0  ;;  %v1358_v33 = vsel %vm1339_vm7, %v3814_v50, -inf }
 0x892   : > { %v3818_v6 = vpop.f32.mrb[10].mxu0  ;;  %v1352_v31 = vsel %vm1339_vm7, %v3816_v28, -inf }
 0x893   : > { %1353 = vmax.xlane.f32.xlu0 %v1352_v31  ;;  %v1361_v32 = vsel %vm1339_vm7, %v3818_v6, -inf  ;;  %v3824_v46 = vpop.f32.mrb[11].mxu0 }
 0x894   : > { %1362 = vmax.xlane.f32.xlu1 %v1361_v32  ;;  %v1355_v29 = vsel %vm1339_vm7, %v3824_v46, -inf }
 0x897   : > { %1359 = vmax.xlane.f32.xlu0 %v1358_v33  ;;  %v3929_v33 = vld [vmem:[#allocation3 + $0x60] sm:$0xff] }
 0x898   : > { %1356 = vmax.xlane.f32.xlu1 %v1355_v29  ;;  %v3830_v51 = vpop.f32.mrb[12].mxu0  ;;  %v3932_v29 = vld [vmem:[#allocation3 + $0x78] sm:$0xff] }
 0x899   : > { %v3832_v34 = vpop.f32.mrb[13].mxu0  ;;  %v1370_v39 = vsel %vm1339_vm7, %v3830_v51, -inf }
 0x89a   : > { %v3834_v36 = vpop.f32.mrb[14].mxu0  ;;  %v1364_v37 = vsel %vm1339_vm7, %v3832_v34, -inf }
 0x89b   : > { %v1373_v38 = vsel %vm1339_vm7, %v3834_v36, -inf  ;;  %v3840_v56 = vpop.f32.mrb[15].mxu0  ;;  %1365 = vmax.xlane.f32.xlu0 %v1364_v37 }
 0x89c   : > { %1374 = vmax.xlane.f32.xlu1 %v1373_v38  ;;  %v1367_v10 = vsel %vm1339_vm7, %v3840_v56, -inf }
 0x89f   : > { %1371 = vmax.xlane.f32.xlu0 %v1370_v39 }
 0x8a0   : > { %1368 = vmax.xlane.f32.xlu1 %v1367_v10  ;;  %v3846_v40 = vpop.f32.mrb[16].mxu0 }
 0x8a1   : > { %v3848_v41 = vpop.f32.mrb[17].mxu0  ;;  %v1382_v48 = vsel %vm1339_vm7, %v3846_v40, -inf }
 0x8a2   : > { %v3850_v42 = vpop.f32.mrb[18].mxu0  ;;  %v1376_v43 = vsel %vm1339_vm7, %v3848_v41, -inf }
 0x8a3   : > { %v1385_v44 = vsel %vm1339_vm7, %v3850_v42, -inf  ;;  %v3856_v45 = vpop.f32.mrb[19].mxu0  ;;  %1377 = vmax.xlane.f32.xlu0 %v1376_v43 }
 0x8a4   : > { %1386 = vmax.xlane.f32.xlu1 %v1385_v44  ;;  %v1379_v57 = vsel %vm1339_vm7, %v3856_v45, -inf  ;;  %v3945_v44 = vld [vmem:[#allocation3 + $0x70] sm:$0xff] }
 0x8a7   : > { %1383 = vmax.xlane.f32.xlu0 %v1382_v48  ;;  %v1336_v48 = vld [vmem:[#allocation3 + $0x68] sm:$0xff] }
 0x8a8   : > { %1380 = vmax.xlane.f32.xlu1 %v1379_v57 }
 0x918   : > { %v1342_v60 = vpop.xlane.xlu0 %1341 }
 0x919   : > { %v1388_v61 = vmax.f32 %v1323_v58, %v1342_v60  ;;  %v1351_v2 = vpop.xlane.xlu1 %1350 }
 0x91a   : > { %v3865_v3 = vmax.f32 %v3862_v59, %v1351_v2 }
 0x91b   : > { %1966 = vst.msk [vmem:[#allocation3] sm:$0xff] %vm1676_vm8, %v1388_v61  ;;  %1454 = vperm.xlu0 %3026, %v1388_v61   ;;  %v1404_v26 = vsub.f32 %v1323_v58, %v1388_v61 }
 0x91c   : > { %1969 = vst.msk [vmem:[#allocation3 + $0x18] sm:$0xff] %vm1676_vm8, %v3865_v3  ;;  %v1348_v7 = vpop.xlane.xlu0 %1347  ;;  %v1407_v38 = vsub.f32 %v3862_v59, %v3865_v3 }
 0x91d   : > { %v3875_v8 = vmax.f32 %v3867_v0, %v1348_v7  ;;  %v1345_v55 = vpop.xlane.xlu1 %1344  ;;  %v1420_v30 = vmul.f32 1.442695, %v1404_v26 }
 0x91e   : > { %v3878_v9 = vmax.f32 %v3870_v5, %v1345_v55  ;;  %v1426_v59 = vmul.f32 1.442695, %v1407_v38 }
 0x91f   : > { %1968 = vst.msk [vmem:[#allocation3 + $0x10] sm:$0xff] %vm1676_vm8, %v3875_v8  ;;  %1464 = vperm.xlu1 %3027, %v3875_v8   ;;  %3040 = vpow2.f32 %v1420_v30 }
 0x920   : > { %1967 = vst.msk [vmem:[#allocation3 + $0x8] sm:$0xff] %vm1676_vm8, %v3878_v9  ;;  %v1354_v53 = vpop.xlane.xlu0 %1353  ;;  %v1405_v55 = vsub.f32 %v3870_v5, %v3878_v9  ;;  %3042 = vpow2.f32 %v1426_v59 }
 0x921   : > { %v3890_v13 = vmax.f32 %v3880_v11, %v1354_v53  ;;  %v1363_v14 = vpop.xlane.xlu1 %1362 }
 0x922   : > { %v3893_v49 = vmax.f32 %v3885_v12, %v1363_v14 }
 0x923   : > { %1970 = vst.msk [vmem:[#allocation3 + $0x20] sm:$0xff] %vm1676_vm8, %v3890_v13  ;;  %1469 = vperm.xlu1 %3027, %v3865_v3  }
 0x924   : > { %1973 = vst.msk [vmem:[#allocation3 + $0x38] sm:$0xff] %vm1676_vm8, %v3893_v49  ;;  %v1360_v4 = vpop.xlane.xlu0 %1359  ;;  %v1411_v53 = vsub.f32 %v3885_v12, %v3893_v49  ;;  %v1408_v12 = vsub.f32 %v3880_v11, %v3890_v13 }
 0x925   : > { %v3903_v15 = vmax.f32 %v3895_v62, %v1360_v4  ;;  %v1357_v16 = vpop.xlane.xlu1 %1356  ;;  %v1422_v4 = vmul.f32 1.442695, %v1405_v55 }
 0x926   : > { %v1393_v47 = vmax.f32 %v1328_v63, %v1357_v16  ;;  %v1434_v16 = vmul.f32 1.442695, %v1411_v53 }
 0x927   : > { %1972 = vst.msk [vmem:[#allocation3 + $0x30] sm:$0xff] %vm1676_vm8, %v3903_v15  ;;  %1459 = vperm.xlu1 %3027, %v3878_v9  }
 0x928   : > { %1971 = vst.msk [vmem:[#allocation3 + $0x28] sm:$0xff] %vm1676_vm8, %v1393_v47  ;;  %v1366_v19 = vpop.xlane.xlu0 %1365  ;;  %v1409_v60 = vsub.f32 %v1328_v63, %v1393_v47  ;;  %v1406_v63 = vsub.f32 %v3867_v0, %v3875_v8 }
 0x929   : > { %v1375_v20 = vpop.xlane.xlu1 %1374  ;;  %v3914_v1 = vmax.f32 %v3905_v17, %v1366_v19  ;;  %v3971_v9 = vpop.eup %3040  ;;  %v1410_v19 = vsub.f32 %v3895_v62, %v3903_v15 }
 0x92a   : > { %v1399_v21 = vmax.f32 %v3910_v18, %v1375_v20  ;;  %v1430_v14 = vmul.f32 1.442695, %v1409_v60 }
 0x92b   : > { %1484 = vperm.xlu1 %3027, %v3903_v15   ;;  %1974 = vst.msk [vmem:[#allocation3 + $0x40] sm:$0xff] %vm1676_vm8, %v3914_v1  ;;  %v1412_v15 = vsub.f32 %v3905_v17, %v3914_v1 }
 0x92c   : > { %1977 = vst.msk [vmem:[#allocation3 + $0x58] sm:$0xff] %vm1676_vm8, %v1399_v21  ;;  %v1372_v54 = vpop.xlane.xlu0 %1371  ;;  %3044 = vpow2.f32 %v1430_v14  ;;  %v1415_v5 = vsub.f32 %v3910_v18, %v1399_v21  ;;  %v1428_v18 = vmul.f32 1.442695, %v1408_v12 }
 0x92d   : > { %v1369_v27 = vpop.xlane.xlu1 %1368  ;;  %v3926_v31 = vmax.f32 %v3917_v35, %v1372_v54  ;;  %3046 = vpow2.f32 %v1422_v4 }
 0x92e   : > { %v1397_v32 = vmax.f32 %v3920_v24, %v1369_v27  ;;  %3048 = vpow2.f32 %v1434_v16  ;;  %v1442_v0 = vmul.f32 1.442695, %v1415_v5 }
 0x92f   : > { %1474 = vperm.xlu1 %3027, %v3890_v13   ;;  %1976 = vst.msk [vmem:[#allocation3 + $0x50] sm:$0xff] %vm1676_vm8, %v3926_v31 }
 0x930   : > { %1975 = vst.msk [vmem:[#allocation3 + $0x48] sm:$0xff] %vm1676_vm8, %v1397_v32  ;;  %1499 = vperm.xlu0 %3026, %v1397_v32   ;;  %v1378_v37 = vpop.xlane.xlu0 %1377  ;;  %v1413_v8 = vsub.f32 %v3920_v24, %v1397_v32  ;;  %v1414_v24 = vsub.f32 %v3917_v35, %v3926_v31 }
 0x931   : > { %v1387_v39 = vpop.xlane.xlu1 %1386  ;;  %v3940_v10 = vmax.f32 %v3929_v33, %v1378_v37 }
 0x932   : > { %v3943_v43 = vmax.f32 %v3932_v29, %v1387_v39  ;;  %v1438_v20 = vmul.f32 1.442695, %v1413_v8  ;;  %v1440_v27 = vmul.f32 1.442695, %v1414_v24 }
 0x933   : > { %1479 = vperm.xlu1 %3027, %v1393_v47   ;;  %1978 = vst.msk [vmem:[#allocation3 + $0x60] sm:$0xff] %vm1676_vm8, %v3940_v10  ;;  %v1424_v47 = vmul.f32 1.442695, %v1406_v63  ;;  %v1416_v37 = vsub.f32 %v3929_v33, %v3940_v10 }
 0x934   : > { %v1419_v57 = vsub.f32 %v3932_v29, %v3943_v43  ;;  %1981 = vst.msk [vmem:[#allocation3 + $0x78] sm:$0xff] %vm1676_vm8, %v3943_v43  ;;  %1509 = vperm.xlu0 %3026, %v1399_v21   ;;  %v1384_v58 = vpop.xlane.xlu0 %1383  ;;  %v1432_v21 = vmul.f32 1.442695, %v1410_v19 }
 0x935   : > { %v1381_v61 = vpop.xlane.xlu1 %1380  ;;  %v3954_v2 = vmax.f32 %v3945_v44, %v1384_v58  ;;  %3050 = vpow2.f32 %v1424_v47 }
 0x936   : > { %v1401_v3 = vmax.f32 %v1336_v48, %v1381_v61  ;;  %3052 = vpow2.f32 %v1442_v0 }
 0x937   : > { %1489 = vperm.xlu1 %3027, %v3893_v49   ;;  %v1418_v7 = vsub.f32 %v3945_v44, %v3954_v2  ;;  %1980 = vst.msk [vmem:[#allocation3 + $0x70] sm:$0xff] %vm1676_vm8, %v3954_v2  ;;  %v3978_v49 = vpop.eup %3042  ;;  %3054 = vpow2.f32 %v1428_v18 }
 0x938   : > { %1979 = vst.msk [vmem:[#allocation3 + $0x68] sm:$0xff] %vm1676_vm8, %v1401_v3  ;;  %1519 = vperm.xlu0 %3026, %v1401_v3   ;;  %v1417_v11 = vsub.f32 %v1336_v48, %v1401_v3  ;;  %v3984_v13 = vpop.eup %3044  ;;  %3056 = vpow2.f32 %v1438_v20 }
 0x939   : > { %v3990_v26 = vpop.eup %3046  ;;  %3058 = vpow2.f32 %v1432_v21 }
 0x93a   : > { %v1446_v54 = vmul.f32 1.442695, %v1417_v11  ;;  %v3992_v62 = vpop.eup %3048 }
 0x93b   : > { %1494 = vperm.xlu1 %3027, %v3914_v1   ;;  %v1444_v1 = vmul.f32 1.442695, %v1416_v37 }
 0x93c   : > { %1529 = vperm.xlu0 %3026, %v3943_v43   ;;  %3060 = vpow2.f32 %v1446_v54 }
 0x93d   : > { %3062 = vpow2.f32 %v1440_v27 }
 0x93f   : > { %1504 = vperm.xlu1 %3027, %v3926_v31   ;;  %v3998_v32 = vpop.eup %3050  ;;  %v1436_v31 = vmul.f32 1.442695, %v1412_v15 }
 0x940   : > { %1711 = vperm.xlu0 %3026, %v3971_v9   ;;  %v4000_v35 = vpop.eup %3052 }
 0x941   : > { %v4006_v30 = vpop.eup %3054  ;;  %3064 = vpow2.f32 %v1436_v31 }
 0x942   : > { %v4008_v17 = vpop.eup %3056  ;;  %3066 = vpow2.f32 %v1444_v1 }
 0x943   : > { %1514 = vperm.xlu1 %3027, %v3940_v10   ;;  %v4012_v38 = vpop.eup %3058 }
 0x944   : > { %1726 = vperm.xlu0 %3026, %v3978_v49  }
 0x946   : > { %v4014_v39 = vpop.eup %3060 }
 0x947   : > { %1524 = vperm.xlu1 %3027, %v3954_v2   ;;  %v4018_v33 = vpop.eup %3062 }
 0x948   : > { %1736 = vperm.xlu0 %3026, %v3984_v13  }
 0x94b   : > { %1716 = vperm.xlu1 %3027, %v3990_v26   ;;  %v4021_v10 = vpop.eup %3064 }
 0x94c   : > { %1746 = vperm.xlu0 %3026, %v3992_v62   ;;  %v4024_v48 = vpop.eup %3066 }
 0x94f   : > { %1721 = vperm.xlu1 %3027, %v3998_v32  }
 0x950   : > { %1766 = vperm.xlu0 %3026, %v4000_v35  }
 0x953   : > { %1731 = vperm.xlu1 %3027, %v4006_v30  }
 0x954   : > { %1756 = vperm.xlu0 %3026, %v4008_v17  }
 0x957   : > { %1741 = vperm.xlu1 %3027, %v4012_v38  }
 0x958   : > { %1776 = vperm.xlu0 %3026, %v4014_v39  }
 0x95b   : > { %1761 = vperm.xlu1 %3027, %v4018_v33  }
 0x95f   : > { %1751 = vperm.xlu1 %3027, %v4021_v10  }
 0x963   : > { %1771 = vperm.xlu1 %3027, %v4024_v48  }
 0x99a   : > { %v1455_v58 = vpop.permute.xlu0 %1454 }
 0x99b   : > { %v1532_v59 = vsub.f32 %v3800_v23, %v1455_v58 }
 0x99d   : > { %v1548_v60 = vmul.f32 1.442695, %v1532_v59 }
 0x99e   : > { %v1465_v61 = vpop.permute.xlu1 %1464 }
 0x99f   : > { %3068 = vpow2.f32 %v1548_v60  ;;  %v1534_v3 = vsub.f32 %v3798_v22, %v1465_v61 }
 0x9a1   : > { %v1552_v55 = vmul.f32 1.442695, %v1534_v3 }
 0x9a2   : > { %v1470_v53 = vpop.permute.xlu1 %1469 }
 0x9a3   : > { %3070 = vpow2.f32 %v1552_v55  ;;  %v1535_v14 = vsub.f32 %v3802_v52, %v1470_v53 }
 0x9a5   : > { %v1554_v63 = vmul.f32 1.442695, %v1535_v14 }
 0x9a6   : > { %v1460_v4 = vpop.permute.xlu1 %1459 }
 0x9a7   : > { %3072 = vpow2.f32 %v1554_v63  ;;  %v1533_v16 = vsub.f32 %v3806_v25, %v1460_v4 }
 0x9a9   : > { %v3069_v5 = vpop.eup %3068  ;;  %v1550_v47 = vmul.f32 1.442695, %v1533_v16 }
 0x9aa   : > { %v1485_v12 = vpop.permute.xlu1 %1484  ;;  %v1612_v23 = vsel %vm1339_vm7, %v3069_v5, 0.0 }
 0x9ab   : > { %3074 = vpow2.f32 %v1550_v47  ;;  %v1538_v0 = vsub.f32 %v3814_v50, %v1485_v12  ;;  %1613 = vadd.xlane.f32.xlu1 %v1612_v23 }
 0x9ad   : > { %v3071_v22 = vpop.eup %3070  ;;  %v1560_v8 = vmul.f32 1.442695, %v1538_v0 }
 0x9ae   : > { %v1475_v18 = vpop.permute.xlu1 %1474  ;;  %v1618_v19 = vsel %vm1339_vm7, %v3071_v22, 0.0 }
 0x9af   : > { %3076 = vpow2.f32 %v1560_v8  ;;  %v1536_v52 = vsub.f32 %v3816_v28, %v1475_v18  ;;  %v1500_v20 = vpop.permute.xlu0 %1499  ;;  %1619 = vadd.xlane.f32.xlu0 %v1618_v19 }
 0x9b0   : > { %v1541_v37 = vsub.f32 %v3840_v56, %v1500_v20 }
 0x9b1   : > { %v3073_v25 = vpop.eup %3072  ;;  %v1556_v11 = vmul.f32 1.442695, %v1536_v52 }
 0x9b2   : > { %v1480_v21 = vpop.permute.xlu1 %1479  ;;  %v1621_v24 = vsel %vm1339_vm7, %v3073_v25, 0.0  ;;  %v1806_v54 = vpack.c.bf16 %v3073_v25, %v3071_v22  ;;  %v1566_v55 = vmul.f32 1.442695, %v1541_v37 }
 0x9b3   : > { %3078 = vpow2.f32 %v1556_v11  ;;  %v1537_v50 = vsub.f32 %v3824_v46, %v1480_v21  ;;  %v1510_v15 = vpop.permute.xlu0 %1509  ;;  %1622 = vadd.xlane.f32.xlu1 %v1621_v24 }
 0x9b4   : > { %v1543_v46 = vsub.f32 %v3834_v36, %v1510_v15 }
 0x9b5   : > { %v3075_v27 = vpop.eup %3074  ;;  %v1558_v31 = vmul.f32 1.442695, %v1537_v50 }
 0x9b6   : > { %v1490_v1 = vpop.permute.xlu1 %1489  ;;  %v1615_v28 = vsel %vm1339_vm7, %v3075_v27, 0.0  ;;  %v1805_v58 = vpack.c.bf16 %v3075_v27, %v3069_v5 }
 0x9b7   : > { %3080 = vpow2.f32 %v1558_v31  ;;  %v1539_v59 = vsub.f32 %v3818_v6, %v1490_v1  ;;  %1616 = vadd.xlane.f32.xlu0 %v1615_v28  ;;  %v1520_v60 = vpop.permute.xlu0 %1519  ;;  %v1570_v6 = vmul.f32 1.442695, %v1543_v46 }
 0x9b8   : > { %2862 = vmatprep.mubr.msk.bf16.mxu1 %vm1339_vm7, %v1805_v58  ;;  %v1545_v16 = vsub.f32 %v3856_v45, %v1520_v60 }
 0x9b9   : > { %v3077_v61 = vpop.eup %3076  ;;  %v1562_v3 = vmul.f32 1.442695, %v1539_v59  ;;  %2863 = vmatmul.mubr.msk.bf16.vlgmr.msra.gmra.mrb[4].mxu1 %vm1339_vm7, %v1806_v54 }
 0x9ba   : > { %v1495_v53 = vpop.permute.xlu1 %1494  ;;  %v1630_v56 = vsel %vm1339_vm7, %v3077_v61, 0.0  ;;  %v1574_v22 = vmul.f32 1.442695, %v1545_v16 }
 0x9bb   : > { %3082 = vpow2.f32 %v1562_v3  ;;  %v1540_v14 = vsub.f32 %v3832_v34, %v1495_v53  ;;  %1631 = vadd.xlane.f32.xlu0 %v1630_v56  ;;  %v1530_v5 = vpop.permute.xlu0 %1529 }
 0x9bc   : > { %3084 = vpow2.f32 %v1566_v55  ;;  %v1547_v0 = vsub.f32 %v3850_v42, %v1530_v5 }
 0x9bd   : > { %v3079_v63 = vpop.eup %3078  ;;  %v1564_v4 = vmul.f32 1.442695, %v1540_v14 }
 0x9be   : > { %v1505_v47 = vpop.permute.xlu1 %1504  ;;  %v1624_v36 = vsel %vm1339_vm7, %v3079_v63, 0.0  ;;  %v1578_v52 = vmul.f32 1.442695, %v1547_v0 }
 0x9bf   : > { %3086 = vpow2.f32 %v1564_v4  ;;  %v1542_v12 = vsub.f32 %v3830_v51, %v1505_v47  ;;  %1625 = vadd.xlane.f32.xlu0 %v1624_v36  ;;  %v4081_v47 = vpop.permute.xlu0 %1711 }
 0x9c0   : > { %3088 = vpow2.f32 %v1570_v6  ;;  %v1450_v6 = vmul.f32 1.442695, %v1419_v57 }
 0x9c1   : > { %v3081_v23 = vpop.eup %3080  ;;  %v1568_v34 = vmul.f32 1.442695, %v1542_v12 }
 0x9c2   : > { %v1515_v8 = vpop.permute.xlu1 %1514  ;;  %v1807_v18 = vpack.c.bf16 %v3081_v23, %v3079_v63  ;;  %v1627_v54 = vsel %vm1339_vm7, %v3081_v23, 0.0  ;;  %v1448_v63 = vmul.f32 1.442695, %v1418_v7 }
 0x9c3   : > { %3090 = vpow2.f32 %v1568_v34  ;;  %v1544_v19 = vsub.f32 %v3848_v41, %v1515_v8  ;;  %v4085_v2 = vpop.permute.xlu0 %1726 }
 0x9c4   : > { %2866 = vmatprep.mubr.msk.bf16.mxu1 %vm1339_vm7, %v1807_v18  ;;  %3092 = vpow2.f32 %v1574_v22  ;;  %v1580_v22 = vld [vmem:[#allocation4] sm:$0xff] }
 0x9c5   : > { %v3083_v45 = vpop.eup %3082  ;;  %v1572_v20 = vmul.f32 1.442695, %v1544_v19  ;;  %v1596_v8 = vmul.f32 %v3971_v9, %v1580_v22 }
 0x9c6   : > { %v1525_v25 = vpop.permute.xlu1 %1524  ;;  %v1633_v51 = vsel %vm1339_vm7, %v3083_v45, 0.0  ;;  %v1808_v11 = vpack.c.bf16 %v3083_v45, %v3077_v61  ;;  %v3085_v21 = vpop.eup %3084  ;;  %v1582_v45 = vld [vmem:[#allocation4 + $0x10] sm:$0xff] }
 0x9c7   : > { %3094 = vpow2.f32 %v1572_v20  ;;  %v1546_v42 = vsub.f32 %v3846_v40, %v1525_v25  ;;  %1634 = vadd.xlane.f32.xlu1 %v1633_v51  ;;  %v1639_v58 = vsel %vm1339_vm7, %v3085_v21, 0.0  ;;  %v4089_v29 = vpop.permute.xlu0 %1736  ;;  %v1598_v20 = vmul.f32 %v3998_v32, %v1582_v45  ;;  %v1583_v51 = vld [vmem:[#allocation4 + $0x18] sm:$0xff] }
 0x9c8   : > { %2867 = vmatmul.mubr.msk.bf16.gmra.mrb[8].mxu1 %vm1339_vm7, %v1808_v11  ;;  %3096 = vpow2.f32 %v1578_v52 }
 0x9c9   : > { %v3087_v24 = vpop.eup %3086  ;;  %v1576_v41 = vmul.f32 1.442695, %v1546_v42  ;;  %v1599_v42 = vmul.f32 %v3978_v49, %v1583_v51 }
 0x9ca   : > { %v1809_v50 = vpack.c.bf16 %v3085_v21, %v3087_v24  ;;  %v3089_v15 = vpop.eup %3088  ;;  %v1636_v59 = vsel %vm1339_vm7, %v3087_v24, 0.0  ;;  %v4079_v5 = vpop.permute.xlu1 %1716  ;;  %v1581_v24 = vld [vmem:[#allocation4 + $0x8] sm:$0xff] }
 0x9cb   : > { %3098 = vpow2.f32 %v1576_v41  ;;  %1628 = vadd.xlane.f32.xlu1 %v1627_v54  ;;  %v1645_v31 = vsel %vm1339_vm7, %v3089_v15, 0.0  ;;  %v4093_v57 = vpop.permute.xlu0 %1746  ;;  %v1597_v9 = vmul.f32 %v3990_v26, %v1581_v24 }
 0x9cc   : > { %2870 = vmatprep.mubr.msk.bf16.mxu1 %vm1339_vm7, %v1809_v50  ;;  %3100 = vpow2.f32 %v1448_v63  ;;  %v1586_v50 = vld [vmem:[#allocation4 + $0x30] sm:$0xff]  ;;  %v1589_v63 = vld [vmem:[#allocation4 + $0x48] sm:$0xff] }
 0x9cd   : > { %v3091_v27 = vpop.eup %3090  ;;  %3102 = vpow2.f32 %v1450_v6  ;;  %v1602_v32 = vmul.f32 %v4012_v38, %v1586_v50 }
 0x9ce   : > { %v1642_v40 = vsel %vm1339_vm7, %v3091_v27, 0.0  ;;  %v1810_v37 = vpack.c.bf16 %v3089_v15, %v3091_v27  ;;  %v3093_v1 = vpop.eup %3092  ;;  %v4083_v44 = vpop.permute.xlu1 %1721 }
 0x9cf   : > { %1646 = vadd.xlane.f32.xlu1 %v1645_v31  ;;  %1643 = vadd.xlane.f32.xlu0 %v1642_v40  ;;  %v1651_v56 = vsel %vm1339_vm7, %v3093_v1, 0.0  ;;  %v4097_v12 = vpop.permute.xlu0 %1766  ;;  %v1584_v31 = vld [vmem:[#allocation4 + $0x20] sm:$0xff] }
 0x9d0   : > { %2871 = vmatmul.mubr.msk.bf16.gmra.mrb[12].mxu1 %vm1339_vm7, %v1810_v37  ;;  %v1600_v49 = vmul.f32 %v4006_v30, %v1584_v31  ;;  %v1694_v31 = vld [vmem:[#allocation5 + $0x8] sm:$0xff] }
 0x9d1   : > { %v3095_v28 = vpop.eup %3094 }
 0x9d2   : > { %v1811_v60 = vpack.c.bf16 %v3093_v1, %v3095_v28  ;;  %v3097_v61 = vpop.eup %3096  ;;  %v1648_v14 = vsel %vm1339_vm7, %v3095_v28, 0.0  ;;  %v4087_v7 = vpop.permute.xlu1 %1731  ;;  %v1587_v28 = vld [vmem:[#allocation4 + $0x38] sm:$0xff] }
 0x9d3   : > { %1640 = vadd.xlane.f32.xlu1 %v1639_v58  ;;  %1637 = vadd.xlane.f32.xlu0 %v1636_v59  ;;  %v1657_v3 = vsel %vm1339_vm7, %v3097_v61, 0.0  ;;  %v4101_v0 = vpop.permute.xlu0 %1756  ;;  %v1603_v26 = vmul.f32 %v3992_v62, %v1587_v28  ;;  %v1585_v59 = vld [vmem:[#allocation4 + $0x28] sm:$0xff]  ;;  %v1588_v62 = vld [vmem:[#allocation4 + $0x40] sm:$0xff]  ;;  %v1790_v28 = vmul.f32 %v4079_v5, %v1694_v31 }
 0x9d4   : > { %2874 = vmatprep.mubr.msk.bf16.mxu1 %vm1339_vm7, %v1811_v60  ;;  %v1601_v38 = vmul.f32 %v3984_v13, %v1585_v59  ;;  %v1604_v13 = vmul.f32 %v4021_v10, %v1588_v62  ;;  %v1593_v10 = vld [vmem:[#allocation4 + $0x68] sm:$0xff] }
 0x9d5   : > { %v3099_v46 = vpop.eup %3098 }
 0x9d6   : > { %v1654_v55 = vsel %vm1339_vm7, %v3099_v46, 0.0  ;;  %v1812_v53 = vpack.c.bf16 %v3097_v61, %v3099_v46  ;;  %v4073_v4 = vpop.eup %3100  ;;  %v4091_v43 = vpop.permute.xlu1 %1741  ;;  %v1590_v46 = vld [vmem:[#allocation4 + $0x50] sm:$0xff] }
 0x9d7   : > { %1658 = vadd.xlane.f32.xlu1 %v1657_v3  ;;  %1655 = vadd.xlane.f32.xlu0 %v1654_v55  ;;  %v4076_v16 = vpop.eup %3102  ;;  %v4106_v18 = vpop.permute.xlu0 %1776  ;;  %v1591_v3 = vld [vmem:[#allocation4 + $0x58] sm:$0xff]  ;;  %v1606_v30 = vmul.f32 %v4018_v33, %v1590_v46 }
 0x9d8   : > { %2875 = vmatmul.mubr.msk.bf16.gmra.mrb[16].mxu1 %vm1339_vm7, %v1812_v53  ;;  %v1607_v53 = vmul.f32 %v4000_v35, %v1591_v3  ;;  %v1595_v33 = vld [vmem:[#allocation4 + $0x78] sm:$0xff] }
 0x9d9   : > { %v1611_v51 = vmul.f32 %v4076_v16, %v1595_v33 }
 0x9da   : > { %v4095_v36 = vpop.permute.xlu1 %1761 }
 0x9db   : > { %1652 = vadd.xlane.f32.xlu1 %v1651_v56  ;;  %1649 = vadd.xlane.f32.xlu0 %v1648_v14 }
 0x9de   : > { %v4099_v23 = vpop.permute.xlu1 %1751 }
 0x9e2   : > { %v4103_v34 = vpop.permute.xlu1 %1771 }
 0x9ec   : > { %1781 = vperm.xlu1 %3027, %v4073_v4  }
 0x9f1   : > { %1786 = vperm.xlu0 %3026, %v4076_v16   ;;  %v1695_v16 = vld [vmem:[#allocation5 + $0x10] sm:$0xff] }
 0xa38   : > { %v1614_v19 = vpop.xlane.xlu1 %1613 }
 0xa39   : > { %v1660_v52 = vadd.f32 %v1614_v19, %v1596_v8  ;;  %v1605_v8 = vmul.f32 %v4008_v17, %v1589_v63 }
 0xa3b   : > { %1677 = vst.msk [vmem:[#allocation4] sm:$0xff] %vm1676_vm8, %v1660_v52  ;;  %v1594_v52 = vld [vmem:[#allocation4 + $0x70] sm:$0xff] }
 0xa3c   : > { %v1620_v25 = vpop.xlane.xlu0 %1619 }
 0xa3d   : > { %v1662_v11 = vadd.f32 %v1620_v25, %v1598_v20  ;;  %v1610_v25 = vmul.f32 %v4073_v4, %v1594_v52 }
 0xa3f   : > { %1679 = vst.msk [vmem:[#allocation4 + $0x10] sm:$0xff] %vm1676_vm8, %v1662_v11 }
 0xa40   : > { %v1623_v21 = vpop.xlane.xlu1 %1622 }
 0xa41   : > { %v1663_v41 = vadd.f32 %v1623_v21, %v1599_v42  ;;  %v1592_v21 = vld [vmem:[#allocation4 + $0x60] sm:$0xff] }
 0xa43   : > { %1680 = vst.msk [vmem:[#allocation4 + $0x18] sm:$0xff] %vm1676_vm8, %v1663_v41  ;;  %v1608_v41 = vmul.f32 %v4024_v48, %v1592_v21 }
 0xa44   : > { %v1617_v54 = vpop.xlane.xlu0 %1616 }
 0xa45   : > { %v1661_v15 = vadd.f32 %v1617_v54, %v1597_v9  ;;  %v1609_v9 = vmul.f32 %v4014_v39, %v1593_v10  ;;  %v1705_v10 = vld [vmem:[#allocation5 + $0x60] sm:$0xff] }
 0xa47   : > { %1678 = vst.msk [vmem:[#allocation4 + $0x8] sm:$0xff] %vm1676_vm8, %v1661_v15 }
 0xa48   : > { %v1632_v27 = vpop.xlane.xlu0 %1631 }
 0xa49   : > { %v1666_v40 = vadd.f32 %v1632_v27, %v1602_v32  ;;  %v1693_v32 = vld [vmem:[#allocation5] sm:$0xff]  ;;  %v1696_v27 = vld [vmem:[#allocation5 + $0x18] sm:$0xff] }
 0xa4a   : > { %v1792_v48 = vmul.f32 %v4085_v2, %v1696_v27  ;;  %v1700_v2 = vld [vmem:[#allocation5 + $0x38] sm:$0xff] }
 0xa4b   : > { %1683 = vst.msk [vmem:[#allocation4 + $0x30] sm:$0xff] %vm1676_vm8, %v1666_v40  ;;  %v1791_v40 = vmul.f32 %v4083_v44, %v1695_v16  ;;  %v1697_v44 = vld [vmem:[#allocation5 + $0x20] sm:$0xff] }
 0xa4c   : > { %v1626_v37 = vpop.xlane.xlu0 %1625  ;;  %v1793_v5 = vmul.f32 %v4087_v7, %v1697_v44  ;;  %v1704_v7 = vld [vmem:[#allocation5 + $0x58] sm:$0xff] }
 0xa4d   : > { %v1664_v1 = vadd.f32 %v1626_v37, %v1600_v49  ;;  %v1789_v49 = vmul.f32 %v4081_v47, %v1693_v32  ;;  %v1699_v47 = vld [vmem:[#allocation5 + $0x30] sm:$0xff] }
 0xa4e   : > { %v1795_v46 = vmul.f32 %v4091_v43, %v1699_v47  ;;  %v1701_v43 = vld [vmem:[#allocation5 + $0x40] sm:$0xff] }
 0xa4f   : > { %1681 = vst.msk [vmem:[#allocation4 + $0x20] sm:$0xff] %vm1676_vm8, %v1664_v1 }
 0xa54   : > { %v1635_v58 = vpop.xlane.xlu1 %1634 }
 0xa55   : > { %v1667_v60 = vadd.f32 %v1635_v58, %v1603_v26 }
 0xa57   : > { %1684 = vst.msk [vmem:[#allocation4 + $0x38] sm:$0xff] %vm1676_vm8, %v1667_v60 }
 0xa58   : > { %v1629_v61 = vpop.xlane.xlu1 %1628 }
 0xa59   : > { %v1665_v55 = vadd.f32 %v1629_v61, %v1601_v38  ;;  %v1698_v61 = vld [vmem:[#allocation5 + $0x28] sm:$0xff] }
 0xa5b   : > { %1682 = vst.msk [vmem:[#allocation4 + $0x28] sm:$0xff] %vm1676_vm8, %v1665_v55  ;;  %v1796_v55 = vmul.f32 %v4093_v57, %v1700_v2  ;;  %v1702_v57 = vld [vmem:[#allocation5 + $0x48] sm:$0xff] }
 0xa5c   : > { %v1644_v56 = vpop.xlane.xlu0 %1643  ;;  %v1647_v14 = vpop.xlane.xlu1 %1646 }
 0xa5d   : > { %v1670_v6 = vadd.f32 %v1644_v56, %v1606_v30  ;;  %v1671_v22 = vadd.f32 %v1647_v14, %v1607_v53  ;;  %v1794_v56 = vmul.f32 %v4089_v29, %v1698_v61  ;;  %v1797_v29 = vmul.f32 %v4099_v23, %v1701_v43  ;;  %v1708_v23 = vld [vmem:[#allocation5 + $0x78] sm:$0xff] }
 0xa5f   : > { %1687 = vst.msk [vmem:[#allocation4 + $0x50] sm:$0xff] %vm1676_vm8, %v1670_v6  ;;  %1688 = vst.msk [vmem:[#allocation4 + $0x58] sm:$0xff] %vm1676_vm8, %v1671_v22  ;;  %v1703_v22 = vld [vmem:[#allocation5 + $0x50] sm:$0xff] }
 0xa60   : > { %v1638_v19 = vpop.xlane.xlu0 %1637  ;;  %v1641_v45 = vpop.xlane.xlu1 %1640 }
 0xa61   : > { %v1668_v20 = vadd.f32 %v1638_v19, %v1604_v13  ;;  %v1669_v35 = vadd.f32 %v1641_v45, %v1605_v8  ;;  %v1799_v8 = vmul.f32 %v4095_v36, %v1703_v22  ;;  %v1800_v45 = vmul.f32 %v4097_v12, %v1704_v7 }
 0xa63   : > { %1685 = vst.msk [vmem:[#allocation4 + $0x40] sm:$0xff] %vm1676_vm8, %v1668_v20  ;;  %1686 = vst.msk [vmem:[#allocation4 + $0x48] sm:$0xff] %vm1676_vm8, %v1669_v35  ;;  %v1798_v20 = vmul.f32 %v4101_v0, %v1702_v57  ;;  %v3106_v57 = vld [vmem:[%s4360_s9 + $0x40] sm:$0xff] (!%p2710_p3)  }
 0xa64   : > { %v1656_v11 = vpop.xlane.xlu0 %1655  ;;  %v1659_v42 = vpop.xlane.xlu1 %1658  ;;  %2782 = vmatprep.subr.bf16.mxu0 (!%p2710_p3), %v3106_v57 }
 0xa65   : > { %v1674_v24 = vadd.f32 %v1656_v11, %v1610_v25  ;;  %v1675_v17 = vadd.f32 %v1659_v42, %v1611_v51  ;;  %v1707_v42 = vld [vmem:[#allocation5 + $0x70] sm:$0xff] }
 0xa67   : > { %1691 = vst.msk [vmem:[#allocation4 + $0x70] sm:$0xff] %vm1676_vm8, %v1674_v24  ;;  %1692 = vst.msk [vmem:[#allocation4 + $0x78] sm:$0xff] %vm1676_vm8, %v1675_v17  ;;  %v1706_v24 = vld [vmem:[#allocation5 + $0x68] sm:$0xff]  ;;  %v1801_v17 = vmul.f32 %v4103_v34, %v1705_v10  ;;  %v3120_v10 = vld [vmem:[%s4360_s9 + $0x60] sm:$0xff] (!%p2710_p3)  }
 0xa68   : > { %v1650_v54 = vpop.xlane.xlu0 %1649  ;;  %v1653_v50 = vpop.xlane.xlu1 %1652 }
 0xa69   : > { %v1672_v15 = vadd.f32 %v1650_v54, %v1608_v41  ;;  %v1673_v4 = vadd.f32 %v1653_v50, %v1609_v9 }
 0xa6b   : > { %1689 = vst.msk [vmem:[#allocation4 + $0x60] sm:$0xff] %vm1676_vm8, %v1672_v15  ;;  %1690 = vst.msk [vmem:[#allocation4 + $0x68] sm:$0xff] %vm1676_vm8, %v1673_v4  ;;  %v1802_v15 = vmul.f32 %v4106_v18, %v1706_v24  ;;  %v3292_v18 = vmov (!%p2710_p3), 0   ;;  %v3124_v24 = vld [vmem:[%s4360_s9 + $0x68] sm:$0xff] (!%p2710_p3)  }
 0xa6c   : > { %v1782_v21 = vpop.permute.xlu1 %1781  ;;  %3105 = vset.pattern.permute.xlu1 (!%p2710_p3), %v3292_v18  ;;  %3104 = vset.pattern.permute.xlu0 (!%p2710_p3), %v3292_v18 }
 0xa6d   : > { %v1803_v0 = vmul.f32 %v1782_v21, %v1707_v42  ;;  %v3119_v42 = vld [vmem:[%s4360_s9 + $0x90] sm:$0xff] (!%p2710_p3)   ;;  %v3121_v21 = vld [vmem:[%s4360_s9 + $0xd8] sm:$0xff] (!%p2710_p3)  }
 0xa6e   : > { %v2000_v34 = vld [vmem:[#allocation4 + $0x70] sm:$0xff] (!%p2710_p3) }
 0xa6f   : > { %3138 = vrcp.f32 (!%p2710_p3), %v2000_v34 }
 0xa70   : > { %v1787_v12 = vpop.permute.xlu0 %1786 }
 0xa71   : > { %v1804_v9 = vmul.f32 %v1787_v12, %v1708_v23  ;;  %v3123_v23 = vld [vmem:[%s4360_s9 + $0x98] sm:$0xff] (!%p2710_p3)   ;;  %v3122_v12 = vld [vmem:[%s4360_s9 + $0x20] sm:$0xff] (!%p2710_p3)  }
 0xa72   : > { %v1999_v44 = vld [vmem:[#allocation4 + $0x68] sm:$0xff] (!%p2710_p3)  ;;  %v1998_v2 = vld [vmem:[#allocation4 + $0x60] sm:$0xff] (!%p2710_p3) }
 0xa8c   : > { %v2864_v37 = vpop.f32.mrb[4].mxu1 }
 0xa8d   : > { %v1936_v39 = vadd.f32 %v2864_v37, %v1791_v40  ;;  %v1871_v1 = vpop.f32.mrb[5].mxu1  ;;  %v1992_v40 = vld [vmem:[#allocation4 + $0x30] sm:$0xff] (!%p2710_p3)  ;;  %v1993_v37 = vld [vmem:[#allocation4 + $0x38] sm:$0xff] (!%p2710_p3) }
 0xa8e   : > { %v1934_v26 = vadd.f32 %v1871_v1, %v1789_v49  ;;  %v2865_v58 = vpop.f32.mrb[6].mxu1  ;;  %v2001_v49 = vld [vmem:[#allocation4 + $0x78] sm:$0xff] (!%p2710_p3)  ;;  %3140 = vrcp.f32 (!%p2710_p3), %v1992_v40 }
 0xa8f   : > { %1952 = vst.msk [vmem:[#allocation5 + $0x10] sm:$0xff] %vm1168_vm6, %v1936_v39  ;;  %v1937_v59 = vadd.f32 %v2865_v58, %v1792_v48  ;;  %v1874_v60 = vpop.f32.mrb[7].mxu1  ;;  %3142 = vrcp.f32 (!%p2710_p3), %v2001_v49  ;;  %v1989_v48 = vld [vmem:[#allocation4 + $0x18] sm:$0xff] (!%p2710_p3)  ;;  %v1988_v39 = vld [vmem:[#allocation4 + $0x10] sm:$0xff] (!%p2710_p3) }
 0xa90   : > { %1950 = vst.msk [vmem:[#allocation5] sm:$0xff] %vm1168_vm6, %v1934_v26  ;;  %v1935_v38 = vadd.f32 %v1874_v60, %v1790_v28  ;;  %3144 = vrcp.f32 (!%p2710_p3), %v1993_v37  ;;  %v1997_v1 = vld [vmem:[#allocation4 + $0x58] sm:$0xff] (!%p2710_p3)  ;;  %v1996_v28 = vld [vmem:[#allocation4 + $0x50] sm:$0xff] (!%p2710_p3)  ;;  %v3139_v26 = vpop.eup (!%p2710_p3), %3138 }
 0xa91   : > { %1953 = vst.msk [vmem:[#allocation5 + $0x18] sm:$0xff] %vm1168_vm6, %v1937_v59  ;;  %3146 = vrcp.f32 (!%p2710_p3), %v1989_v48  ;;  %2147 = vperm.xlu1 (!%p2710_p3), %3105, %v3139_v26   ;;  %v1991_v59 = vld [vmem:[#allocation4 + $0x28] sm:$0xff] (!%p2710_p3)  ;;  %v3132_v40 = vld [vmem:[%s4360_s9 + $0x78] sm:$0xff] (!%p2710_p3)   ;;  %v3133_v49 = vld [vmem:[%s4360_s9 + $0xf0] sm:$0xff] (!%p2710_p3)  }
 0xa92   : > { %1951 = vst.msk [vmem:[#allocation5 + $0x8] sm:$0xff] %vm1168_vm6, %v1935_v38  ;;  %3148 = vrcp.f32 (!%p2710_p3), %v1988_v39  ;;  %v1990_v38 = vld [vmem:[#allocation4 + $0x20] sm:$0xff] (!%p2710_p3)  ;;  %v3134_v37 = vld [vmem:[%s4360_s9 + $0x38] sm:$0xff] (!%p2710_p3)   ;;  %v3135_v48 = vld [vmem:[%s4360_s9 + $0xb0] sm:$0xff] (!%p2710_p3)  }
 0xa93   : > { %3150 = vrcp.f32 (!%p2710_p3), %v1997_v1 }
 0xa94   : > { %3152 = vrcp.f32 (!%p2710_p3), %v1996_v28 }
 0xa95   : > { %3154 = vrcp.f32 (!%p2710_p3), %v1991_v59 }
 0xa96   : > { %3156 = vrcp.f32 (!%p2710_p3), %v1990_v38  ;;  %v2034_v38 = vld [vmem:[#allocation5 + $0x10] sm:$0xff] (!%p2710_p3) }
 0xa97   : > { %3158 = vrcp.f32 (!%p2710_p3), %v1999_v44 }
 0xa98   : > { %v3141_v58 = vpop.eup (!%p2710_p3), %3140  ;;  %3160 = vrcp.f32 (!%p2710_p3), %v1998_v2  ;;  %v2035_v59 = vld [vmem:[#allocation5 + $0x18] sm:$0xff] (!%p2710_p3) }
 0xa99   : > { %v3143_v60 = vpop.eup (!%p2710_p3), %3142  ;;  %2075 = vperm.xlu0 (!%p2710_p3), %3104, %v3141_v58  }
 0xa9a   : > { %v3145_v47 = vpop.eup (!%p2710_p3), %3144  ;;  %2152 = vperm.xlu1 (!%p2710_p3), %3105, %v3143_v60  }
 0xa9b   : > { %v2868_v3 = vpop.f32.mrb[8].mxu1  ;;  %v3147_v61 = vpop.eup (!%p2710_p3), %3146 }
 0xa9c   : > { %v1940_v30 = vadd.f32 %v2868_v3, %v1795_v46  ;;  %v1887_v53 = vpop.f32.mrb[9].mxu1  ;;  %v3149_v46 = vpop.eup (!%p2710_p3), %3148  ;;  %v1986_v3 = vld [vmem:[#allocation4] sm:$0xff] (!%p2710_p3) }
 0xa9d   : > { %v1938_v14 = vadd.f32 %v1887_v53, %v1793_v5  ;;  %v2869_v62 = vpop.f32.mrb[10].mxu1  ;;  %2080 = vperm.xlu0 (!%p2710_p3), %3104, %v3145_v47   ;;  %v1987_v5 = vld [vmem:[#allocation4 + $0x8] sm:$0xff] (!%p2710_p3)  ;;  %v3136_v47 = vld [vmem:[%s4360_s9 + $0xf8] sm:$0xff] (!%p2710_p3)  }
 0xa9e   : > { %1956 = vst.msk [vmem:[#allocation5 + $0x30] sm:$0xff] %vm1168_vm6, %v1940_v30  ;;  %v1941_v63 = vadd.f32 %v2869_v62, %v1796_v55  ;;  %v1890_v6 = vpop.f32.mrb[11].mxu1  ;;  %2043 = vperm.xlu1 (!%p2710_p3), %3105, %v3147_v61   ;;  %v3151_v55 = vpop.eup (!%p2710_p3), %3150  ;;  %3162 = vrcp.f32 (!%p2710_p3), %v1987_v5  ;;  %v1995_v53 = vld [vmem:[#allocation4 + $0x48] sm:$0xff] (!%p2710_p3)  ;;  %v3137_v61 = vld [vmem:[%s4360_s9 + $0xb8] sm:$0xff] (!%p2710_p3)  }
 0xa9f   : > { %1954 = vst.msk [vmem:[#allocation5 + $0x20] sm:$0xff] %vm1168_vm6, %v1938_v14  ;;  %v1939_v13 = vadd.f32 %v1890_v6, %v1794_v56  ;;  %v3153_v30 = vpop.eup (!%p2710_p3), %3152  ;;  %3164 = vrcp.f32 (!%p2710_p3), %v1986_v3  ;;  %v1994_v56 = vld [vmem:[#allocation4 + $0x40] sm:$0xff] (!%p2710_p3) }
 0xaa0   : > { %1957 = vst.msk [vmem:[#allocation5 + $0x38] sm:$0xff] %vm1168_vm6, %v1941_v63  ;;  %v3155_v14 = vpop.eup (!%p2710_p3), %3154  ;;  %3166 = vrcp.f32 (!%p2710_p3), %v1995_v53 }
 0xaa1   : > { %1955 = vst.msk [vmem:[#allocation5 + $0x28] sm:$0xff] %vm1168_vm6, %v1939_v13  ;;  %2038 = vperm.xlu0 (!%p2710_p3), %3104, %v3149_v46   ;;  %v3157_v62 = vpop.eup (!%p2710_p3), %3156  ;;  %3168 = vrcp.f32 (!%p2710_p3), %v1994_v56 }
 0xaa2   : > { %2116 = vperm.xlu1 (!%p2710_p3), %3105, %v3151_v55   ;;  %v3159_v63 = vpop.eup (!%p2710_p3), %3158 }
 0xaa3   : > { %v2872_v19 = vpop.f32.mrb[12].mxu1  ;;  %v3161_v6 = vpop.eup (!%p2710_p3), %3160 }
 0xaa4   : > { %v1944_v52 = vadd.f32 %v2872_v19, %v1799_v8  ;;  %v1903_v33 = vpop.f32.mrb[13].mxu1  ;;  %v3107_v8 = vld [vmem:[%s4360_s9] sm:$0xff] (!%p2710_p3)  }
 0xaa5   : > { %v1942_v35 = vadd.f32 %v1903_v33, %v1797_v29  ;;  %v2873_v25 = vpop.f32.mrb[14].mxu1  ;;  %2111 = vperm.xlu0 (!%p2710_p3), %3104, %v3153_v30   ;;  %v3108_v29 = vld [vmem:[%s4360_s9 + $0x48] sm:$0xff] (!%p2710_p3)   ;;  %v3109_v19 = vld [vmem:[%s4360_s9 + $0xc0] sm:$0xff] (!%p2710_p3)   ;;  %2783 = vmatpush3.bf16.msra.mxu0 (!%p2710_p3), %v3107_v8 }
 0xaa6   : > { %1960 = vst.msk [vmem:[#allocation5 + $0x50] sm:$0xff] %vm1168_vm6, %v1944_v52  ;;  %v1945_v51 = vadd.f32 %v2873_v25, %v1800_v45  ;;  %v1906_v11 = vpop.f32.mrb[15].mxu1  ;;  %2064 = vperm.xlu1 (!%p2710_p3), %3105, %v3155_v14   ;;  %v3111_v45 = vld [vmem:[%s4360_s9 + $0x80] sm:$0xff] (!%p2710_p3)   ;;  %v3113_v52 = vld [vmem:[%s4360_s9 + $0xc8] sm:$0xff] (!%p2710_p3)   ;;  %2804 = vmatprep.subr.bf16.mxu1 (!%p2710_p3), %v3109_v19  ;;  %v3117_v25 = vld [vmem:[%s4360_s9 + $0xd0] sm:$0xff] (!%p2710_p3)  }
 0xaa7   : > { %1958 = vst.msk [vmem:[#allocation5 + $0x40] sm:$0xff] %vm1168_vm6, %v1942_v35  ;;  %v1943_v36 = vadd.f32 %v1906_v11, %v1798_v20  ;;  %v3110_v33 = vld [vmem:[%s4360_s9 + $0x8] sm:$0xff] (!%p2710_p3)   ;;  %2784 = vmatprep.subr.bf16.mxu0 (!%p2710_p3), %v3108_v29  ;;  %2805 = vmatpush3.bf16.msra.mxu1 (!%p2710_p3), %v3111_v45  ;;  %v3112_v20 = vld [vmem:[%s4360_s9 + $0x50] sm:$0xff] (!%p2710_p3)   ;;  %v3116_v11 = vld [vmem:[%s4360_s9 + $0x58] sm:$0xff] (!%p2710_p3)  }
 0xaa8   : > { %1961 = vst.msk [vmem:[#allocation5 + $0x58] sm:$0xff] %vm1168_vm6, %v1945_v51  ;;  %v3163_v22 = vpop.eup (!%p2710_p3), %3162  ;;  %v3115_v35 = vld [vmem:[%s4360_s9 + $0x88] sm:$0xff] (!%p2710_p3)   ;;  %2806 = vmatprep.subr.bf16.mxu1 (!%p2710_p3), %v3113_v52  ;;  %v3114_v51 = vld [vmem:[%s4360_s9 + $0x10] sm:$0xff] (!%p2710_p3)   ;;  %v2072_v34 = vld [vmem:[#allocation5 + $0x38] sm:$0xff] (!%p2710_p3) }
 0xaa9   : > { %1959 = vst.msk [vmem:[#allocation5 + $0x48] sm:$0xff] %vm1168_vm6, %v1943_v36  ;;  %2059 = vperm.xlu0 (!%p2710_p3), %3104, %v3157_v62   ;;  %v3165_v13 = vpop.eup (!%p2710_p3), %3164  ;;  %2785 = vmatpush3.bf16.msra.mxu0 (!%p2710_p3), %v3110_v33  ;;  %v3118_v36 = vld [vmem:[%s4360_s9 + $0x18] sm:$0xff] (!%p2710_p3)  }
 0xaaa   : > { %2136 = vperm.xlu1 (!%p2710_p3), %3105, %v3159_v63   ;;  %v3167_v43 = vpop.eup (!%p2710_p3), %3166  ;;  %2786 = vmatprep.subr.bf16.mxu0 (!%p2710_p3), %v3112_v20 }
 0xaab   : > { %v2876_v41 = vpop.f32.mrb[16].mxu1  ;;  %1985 = sbr.rel (%p2710_p3) target bundleno = 3513 (0xdb9), region = 72  ;;  %v3169_v7 = vpop.eup (!%p2710_p3), %3168  ;;  %2807 = vmatpush3.bf16.msra.mxu1 (!%p2710_p3), %v3115_v35 }
 0xaac   : > { %v1948_v54 = vadd.f32 %v2876_v41, %v1803_v0  ;;  %v1919_v50 = vpop.f32.mrb[17].mxu1  ;;  %2808 = vmatprep.subr.bf16.mxu1 (!%p2710_p3), %v3117_v25  ;;  %v3125_v0 = vld [vmem:[%s4360_s9 + $0xe0] sm:$0xff] (!%p2710_p3)   ;;  %v2019_v25 = vld [vmem:[#allocation5 + $0x8] sm:$0xff] (!%p2710_p3) }
 0xaad   : > { %v1946_v4 = vadd.f32 %v1919_v50, %v1801_v17  ;;  %v2877_v16 = vpop.f32.mrb[18].mxu1  ;;  %2131 = vperm.xlu0 (!%p2710_p3), %3104, %v3161_v6   ;;  %2787 = vmatpush3.bf16.msra.mxu0 (!%p2710_p3), %v3114_v51  ;;  %v3126_v17 = vld [vmem:[%s4360_s9 + $0x28] sm:$0xff] (!%p2710_p3)   ;;  %v3127_v41 = vld [vmem:[%s4360_s9 + $0xa0] sm:$0xff] (!%p2710_p3)   ;;  %v2107_v30 = vld [vmem:[#allocation5 + $0x50] sm:$0xff] (!%p2710_p3) }
 0xaae   : > { %1964 = vst.msk [vmem:[#allocation5 + $0x70] sm:$0xff] %vm1168_vm6, %v1948_v54  ;;  %v1949_v32 = vadd.f32 %v2877_v16, %v1804_v9  ;;  %v1922_v27 = vpop.f32.mrb[19].mxu1  ;;  %2027 = vperm.xlu1 (!%p2710_p3), %3105, %v3163_v22   ;;  %2788 = vmatprep.subr.bf16.mxu0 (!%p2710_p3), %v3116_v11  ;;  %v3128_v9 = vld [vmem:[%s4360_s9 + $0x70] sm:$0xff] (!%p2710_p3)   ;;  %v3129_v54 = vld [vmem:[%s4360_s9 + $0xe8] sm:$0xff] (!%p2710_p3)   ;;  %v2055_v22 = vld [vmem:[#allocation5 + $0x20] sm:$0xff] (!%p2710_p3) }
 0xaaf   : > { %1962 = vst.msk [vmem:[#allocation5 + $0x60] sm:$0xff] %vm1168_vm6, %v1946_v4  ;;  %v1947_v31 = vadd.f32 %v1922_v27, %v1802_v15  ;;  %2809 = vmatpush3.bf16.msra.mxu1 (!%p2710_p3), %v3119_v42  ;;  %v3130_v15 = vld [vmem:[%s4360_s9 + $0x30] sm:$0xff] (!%p2710_p3)   ;;  %v3131_v4 = vld [vmem:[%s4360_s9 + $0xa8] sm:$0xff] (!%p2710_p3)   ;;  %v2108_v55 = vld [vmem:[#allocation5 + $0x58] sm:$0xff] (!%p2710_p3) }
 0xab0   : > { %1965 = vst.msk [vmem:[#allocation5 + $0x78] sm:$0xff] %vm1168_vm6, %v1949_v32  ;;  %2810 = vmatprep.subr.bf16.mxu1 (!%p2710_p3), %v3121_v21  ;;  %v2071_v27 = vld [vmem:[#allocation5 + $0x30] sm:$0xff] (!%p2710_p3)  ;;  %v2056_v6 = vld [vmem:[#allocation5 + $0x28] sm:$0xff] (!%p2710_p3)  ;;  %v2018_v51 = vld [vmem:[#allocation5] sm:$0xff] (!%p2710_p3) }
 0xab1   : > { %1963 = vst.msk [vmem:[#allocation5 + $0x68] sm:$0xff] %vm1168_vm6, %v1947_v31  ;;  %2022 = vperm.xlu0 (!%p2710_p3), %3104, %v3165_v13   ;;  %2789 = vmatpush3.bf16.msra.mxu0 (!%p2710_p3), %v3118_v36 }
 0xab2   : > { %2100 = vperm.xlu1 %3105, %v3167_v43   ;;  %2790 = vmatprep.subr.bf16.mxu0 %v3120_v10 }
 0xab3   : > { %2811 = vmatpush3.bf16.msra.mxu1 %v3123_v23  ;;  %v2092_v23 = vld [vmem:[#allocation5 + $0x48] sm:$0xff] }
 0xab4   : > { %2812 = vmatprep.subr.bf16.mxu1 %v3125_v0 }
 0xab5   : > { %2095 = vperm.xlu0 %3104, %v3169_v7   ;;  %2791 = vmatpush3.bf16.msra.mxu0 %v3122_v12  ;;  %v2143_v32 = vld [vmem:[#allocation5 + $0x70] sm:$0xff]  ;;  %v2091_v12 = vld [vmem:[#allocation5 + $0x40] sm:$0xff] }
 0xab6   : > { %2792 = vmatprep.subr.bf16.mxu0 %v3124_v24  ;;  %v2127_v19 = vld [vmem:[#allocation5 + $0x60] sm:$0xff] }
 0xab7   : > { %2813 = vmatpush3.bf16.msra.mxu1 %v3127_v41  ;;  %v2144_v31 = vld [vmem:[#allocation5 + $0x78] sm:$0xff] }
 0xab8   : > { %2814 = vmatprep.subr.bf16.mxu1 %v3129_v54  ;;  %v2128_v29 = vld [vmem:[#allocation5 + $0x68] sm:$0xff] }
 0xab9   : > { %2793 = vmatpush3.bf16.msra.mxu0 %v3126_v17 }
 0xaba   : > { %2794 = vmatprep.subr.bf16.mxu0 %v3128_v9 }
 0xabb   : > { %2815 = vmatpush3.bf16.msra.mxu1 %v3131_v4 }
 0xabc   : > { %2816 = vmatprep.subr.bf16.mxu1 %v3133_v49 }
 0xabd   : > { %2795 = vmatpush3.bf16.msra.mxu0 %v3130_v15 }
 0xabe   : > { %2796 = vmatprep.subr.bf16.mxu0 %v3132_v40 }
 0xabf   : > { %2817 = vmatpush3.bf16.msra.mxu1 %v3135_v48 }
 0xac0   : > { %2818 = vmatprep.subr.bf16.mxu1 %v3136_v47 }
 0xac1   : > { %2797 = vmatpush3.bf16.msra.mxu0 %v3134_v37 }
 0xac3   : > { %2819 = vmatpush3.bf16.msra.mxu1 %v3137_v61 }
 0xb10   : > { %v2148_v50 = vpop.permute.xlu1 %2147 }
 0xb11   : > { %v2155_v39 = vmul.f32 %v2148_v50, %v2143_v32 }
 0xb18   : > { %v2076_v16 = vpop.permute.xlu0 %2075 }
 0xb19   : > { %v2153_v18 = vpop.permute.xlu1 %2152  ;;  %v2083_v26 = vmul.f32 %v2076_v16, %v2071_v27 }
 0xb1a   : > { %v2156_v1 = vmul.f32 %v2153_v18, %v2144_v31 }
 0xb1c   : > { %v2081_v28 = vpop.permute.xlu0 %2080  ;;  %v2157_v60 = vpack.c.bf16 %v2156_v1, %v2155_v39 }
 0xb1d   : > { %v2084_v58 = vmul.f32 %v2081_v28, %v2072_v34  ;;  %v2044_v2 = vpop.permute.xlu1 %2043 }
 0xb1e   : > { %v2047_v46 = vmul.f32 %v2044_v2, %v2035_v59  ;;  %2159 = vrot.lane.b32.xlu1 %v2157_v60, %s3293_s20 }
 0xb1f   : > { %v2085_v44 = vpack.c.bf16 %v2084_v58, %v2083_v26 }
 0xb20   : > { %v2039_v5 = vpop.permute.xlu0 %2038 }
 0xb21   : > { %v2046_v3 = vmul.f32 %v2039_v5, %v2034_v38  ;;  %2087 = vrot.lane.b32.xlu0 %v2085_v44, %s3293_s20  ;;  %v2117_v56 = vpop.permute.xlu1 %2116 }
 0xb22   : > { %v2120_v14 = vmul.f32 %v2117_v56, %v2108_v55 }
 0xb23   : > { %v2048_v53 = vpack.c.bf16 %v2047_v46, %v2046_v3 }
 0xb24   : > { %v2112_v62 = vpop.permute.xlu0 %2111 }
 0xb25   : > { %v2119_v63 = vmul.f32 %v2112_v62, %v2107_v30  ;;  %2050 = vrot.lane.b32.xlu0 %v2048_v53, %s3293_s20  ;;  %v2065_v43 = vpop.permute.xlu1 %2064 }
 0xb26   : > { %v2068_v7 = vmul.f32 %v2065_v43, %v2056_v6 }
 0xb27   : > { %v2121_v13 = vpack.c.bf16 %v2120_v14, %v2119_v63 }
 0xb28   : > { %v2060_v57 = vpop.permute.xlu0 %2059 }
 0xb29   : > { %v2067_v8 = vmul.f32 %v2060_v57, %v2055_v22  ;;  %2123 = vrot.lane.b32.xlu1 %v2121_v13, %s3293_s20  ;;  %v2137_v52 = vpop.permute.xlu1 %2136 }
 0xb2a   : > { %v2140_v33 = vmul.f32 %v2137_v52, %v2128_v29 }
 0xb2b   : > { %v2069_v45 = vpack.c.bf16 %v2068_v7, %v2067_v8  ;;  %v2743_v8 = vld [vmem:[%s4361_s10] ss:$0 sm:$0xff] }
 0xb2c   : > { %v2132_v20 = vpop.permute.xlu0 %2131 }
 0xb2d   : > { %2070 = vst.msk [vmem:[#allocation6 + $0x8] sm:$0xff] %vm1168_vm6, %v2069_v45  ;;  %v2139_v35 = vmul.f32 %v2132_v20, %v2127_v19  ;;  %v2028_v42 = vpop.permute.xlu1 %2027 }
 0xb2e   : > { %v2031_v21 = vmul.f32 %v2028_v42, %v2019_v25 }
 0xb2f   : > { %v2141_v11 = vpack.c.bf16 %v2140_v33, %v2139_v35 }
 0xb30   : > { %v2023_v36 = vpop.permute.xlu0 %2022 }
 0xb31   : > { %2142 = vst.msk [vmem:[#allocation6 + $0x18] sm:$0xff] %vm1168_vm6, %v2141_v11  ;;  %v2030_v10 = vmul.f32 %v2023_v36, %v2018_v51  ;;  %v2101_v0 = vpop.permute.xlu1 %2100 }
 0xb32   : > { %v2104_v17 = vmul.f32 %v2101_v0, %v2092_v23 }
 0xb33   : > { %v2032_v24 = vpack.c.bf16 %v2031_v21, %v2030_v10 }
 0xb34   : > { %v2096_v41 = vpop.permute.xlu0 %2095 }
 0xb35   : > { %2033 = vst.msk [vmem:[#allocation6] sm:$0xff] %vm1168_vm6, %v2032_v24  ;;  %v2103_v9 = vmul.f32 %v2096_v41, %v2091_v12 }
 0xb37   : > { %v2105_v54 = vpack.c.bf16 %v2104_v17, %v2103_v9 }
 0xb39   : > { %2106 = vst.msk [vmem:[#allocation6 + $0x10] sm:$0xff] %vm1168_vm6, %v2105_v54 }
 0xb90   : > { %v2160_v50 = vpop.permute.xlu1 %2159 }
 0xb91   : > { %2162 = vst.msk [vmem:[#allocation6 + $0x18] sm:$0xff] %vm2053_vm9, %v2160_v50 }
 0xb93   : > { %v2088_v15 = vpop.permute.xlu0 %2087 }
 0xb94   : > { %2090 = vst.msk [vmem:[#allocation6 + $0x8] sm:$0xff] %vm2053_vm9, %v2088_v15 }
 0xb97   : > { %v2051_v4 = vpop.permute.xlu0 %2050 }
 0xb98   : > { %2054 = vst.msk [vmem:[#allocation6] sm:$0xff] %vm2053_vm9, %v2051_v4  ;;  %v2166_v16 = vld [vmem:[#allocation6 + $0x18] sm:$0xff] }
 0xb99   : > { %2496 = vmatprep.mubr.bf16.mxu1 %v2166_v16 }
 0xb9b   : > { %v2124_v32 = vpop.permute.xlu1 %2123  ;;  %v2164_v27 = vld [vmem:[#allocation6 + $0x8] sm:$0xff] }
 0xb9c   : > { %2126 = vst.msk [vmem:[#allocation6 + $0x10] sm:$0xff] %vm2053_vm9, %v2124_v32  ;;  %2455 = vmatprep.mubr.bf16.mxu0 %v2164_v27 }
 0xb9f   : > { %v2163_v31 = vld [vmem:[#allocation6] sm:$0xff] }
 0xba0   : > { %2456 = vmatmul.mubr.bf16.vlgmr.msra.gmra.mrb[0].mxu0 %v2163_v31 }
 0xba3   : > { %v2165_v34 = vld [vmem:[#allocation6 + $0x10] sm:$0xff] }
 0xba4   : > { %2497 = vmatmul.mubr.bf16.vlgmr.msra.gmra.mrb[0].mxu1 %v2165_v34 }
 0xc73   : > { %v2798_v40 = vpop.f32.mrb[0].mxu0 }
 0xc74   : > { %v2799_v49 = vpop.f32.mrb[1].mxu0 }
 0xc75   : > { %v2800_v18 = vadd.f32 %v2799_v49, %v2798_v40  ;;  %v2801_v37 = vpop.f32.mrb[2].mxu0 }
 0xc76   : > { %v2802_v48 = vpop.f32.mrb[3].mxu0 }
 0xc77   : > { %v2803_v39 = vadd.f32 %v2802_v48, %v2801_v37  ;;  %v2820_v1 = vpop.f32.mrb[0].mxu1 }
 0xc78   : > { %v2821_v28 = vpop.f32.mrb[1].mxu1 }
 0xc79   : > { %v2822_v26 = vadd.f32 %v2821_v28, %v2820_v1  ;;  %v2823_v58 = vpop.f32.mrb[2].mxu1 }
 0xc7a   : > { %v2824_v59 = vpop.f32.mrb[3].mxu1 }
 0xc7b   : > { %v2825_v60 = vadd.f32 %v2824_v59, %v2823_v58  ;;  %v2499_v38 = vadd.f32 %v2822_v26, %v2800_v18 }
 0xc7d   : > { %v2506_v47 = vsel %vm1012_vm4, %v2499_v38, 0.0  ;;  %v2502_v44 = vadd.f32 %v2825_v60, %v2803_v39 }
 0xc7e   : > { %2507 = vadd.xlane.f32.xlu0 %v2506_v47 }
 0xc7f   : > { %v2509_v2 = vsel %vm1012_vm4, %v2502_v44, 0.0 }
 0xc80   : > { %2510 = vadd.xlane.f32.xlu1 %v2509_v2 }
 0xd0b   : > { %v2508_v61 = vpop.xlane.xlu0 %2507 }
 0xd0c   : > { %v2512_v46 = vmul.f32 0.03125, %v2508_v61 }
 0xd0d   : > { %v2511_v5 = vpop.xlane.xlu1 %2510 }
 0xd0e   : > { %v2514_v3 = vsub.f32 %v2499_v38, %v2512_v46  ;;  %v2513_v55 = vmul.f32 0.03125, %v2511_v5 }
 0xd10   : > { %v2515_v30 = vsub.f32 %v2502_v44, %v2513_v55  ;;  %v2516_v53 = vmul.f32 %v2514_v3, %v2514_v3 }
 0xd12   : > { %v2518_v56 = vsel %vm1012_vm4, %v2516_v53, 0.0  ;;  %v2517_v14 = vmul.f32 %v2515_v30, %v2515_v30 }
 0xd13   : > { %2519 = vadd.xlane.f32.xlu0 %v2518_v56 }
 0xd14   : > { %v2521_v62 = vsel %vm1012_vm4, %v2517_v14, 0.0 }
 0xd17   : > { %2522 = vadd.xlane.f32.xlu0 %v2521_v62 }
 0xda0   : > { %v2520_v63 = vpop.xlane.xlu0 %2519 }
 0xda1   : > { %v2524_v6 = vmul.f32 0.03125, %v2520_v63 }
 0xda3   : > { %v2526_v22 = vadd.f32 1e-05, %v2524_v6 }
 0xda4   : > { %v2523_v13 = vpop.xlane.xlu0 %2522 }
 0xda5   : > { %3170 = vrsqrt.f32 %v2526_v22  ;;  %v2525_v43 = vmul.f32 0.03125, %v2523_v13 }
 0xda7   : > { %v2527_v7 = vadd.f32 1e-05, %v2525_v43 }
 0xda9   : > { %3172 = vrsqrt.f32 %v2527_v7 }
 0xdaf   : > { %v3171_v57 = vpop.eup %3170 }
 0xdb0   : > { %v2530_v29 = vmul.f32 %v3171_v57, %v2514_v3 }
 0xdb2   : > { %v2538_v19 = vmul.f32 %v2743_v8, %v2530_v29 }
 0xdb3   : > { %v3173_v45 = vpop.eup %3172 }
 0xdb4   : > { %2540 = vst.msk [vmem:[%s3471_s26] sm:$0xff] %vm1012_vm4, %v2538_v19  ;;  %v2531_v52 = vmul.f32 %v3173_v45, %v2515_v30 }
 0xdb6   : > { %v2539_v33 = vmul.f32 %v2743_v8, %v2531_v52 }
 0xdb8   : > { %2541 = vst.msk [vmem:[%s3471_s26 + $0x8] sm:$0xff] %vm1012_vm4, %v2539_v33 }
 0xdb9 PF: > { %s2746_s25 = sshll.u32 %s3268_s22, 2  ;;  %s2558_s12 = sshll.u32 %s3471_s26, 4  ;;  %s4284_s12 = int_to_ptr.vmem [resolvable:$true] %s2558_s12 }
 0xdba   : > { %s2555_s29 = sadd.s32 %s2746_s25, %s3444_s14  ;;  %s4391_s24 = sand.u32 1, %s3252_s18  }
 0xdbb   : > { %s2747_s27 = sshll.u32 %s2555_s29, 7  ;;  %s4293_s30 = scalar_lea.sflag [#allocation8], %s4391_s24 }
 0xdbc   : > { %s4289_s21 = scalar_lea.hbm %s4362_s11, %s2747_s27  ;;  %s3174_s15 = scalar_lea.vmem %s4284_s12, 256 }
 0xdbd   : > { %p3175_p4 = scmp.ne.s32.totalorder %s4284_s12, %s3174_s15  ;;  %s3294_s22 = smov [#allocation7]  }
 0xdbe   : > { %s3178_s26 = sshll.u32 %s3294_s22, 4  ;;  %s3179_s26 = int_to_ptr.vmem [resolvable:$false] %s3178_s26 }
 0xdbf   : > { %p3176_p5 = pnand %p3175_p4, %p3419_p6  ;;  %s3180_s14 = scalar_lea.vmem %s3179_s26, 512 }
 0xdc0   : > { %p3181_p9 = scmp.lt.s32.totalorder %s4284_s12, %s3179_s26  ;;  %p3182_p10 = scmp.lt.s32.totalorder %s3180_s14, %s3174_s15 }
 0xdc1   : > { %p3177_p8 = pneg %p3176_p5 }
 0xdc2   : > { %p3183_p11 = por %p3182_p10, %p3181_p9 }
 0xdc4   : > { %p3184_p12 = pnand %p3183_p11, %p3177_p8 }
 0xdc6   : > { %3187 = shalt.err (!%p3184_p12)
}
 0xdc7   : > { %s3188_s16 = scalar_lea.hbm %s4289_s21, 256  ;;  %s3192_s20 = scalar_lea.hbm %s4362_s11, 1024 }
 0xdc8   : > { %p3189_p13 = scmp.ne.s32.totalorder %s4289_s21, %s3188_s16  ;;  %p3193_p2 = scmp.lt.u32.totalorder %s4289_s21, %s4362_s11 }
 0xdc9   : > { %p3194_p3 = scmp.lt.u32.totalorder %s3192_s20, %s3188_s16  ;;  %p3196_p5 = scmp.lt.u32.totalorder %s3188_s16, %s4289_s21 }
 0xdca   : > { %p3190_p0 = pnand %p3189_p13, %p3419_p6 }
 0xdcb   : > { %p3195_p4 = por %p3194_p3, %p3193_p2 }
 0xdcc   : > { %p3191_p1 = pneg %p3190_p0 }
 0xdcd   : > { %p3197_p8 = por %p3196_p5, %p3195_p4 }
 0xdcf   : > { %p3198_p9 = pnand %p3197_p8, %p3191_p1 }
 0xdd1   : > { %3201 = shalt.err (!%p3198_p9)
}
 0xdd2   : > { %s3295_s25 = smov 128   ;;  %s3296_s29 = smov 8  }
 0xdd3   : > { %2879 = dma.vmem_to_hbm [thread:$0]  (%p3419_p6), %s4284_s12, 256, %s4289_s21, %s4293_s30, %s3295_s25, %s3295_s25, %s3296_s29  }
 0xdd4 PF: > { %s4392_s27 = sld [smem:[#allocation15_spill]]  ;;  %s4393_s28 = sld [smem:[#allocation10_spill]] }
 0xdda   : > { %p2885_p10 = scmp.ge.s32.totalorder %s4392_s27, 2  ;;  %s2573_s24 = sand.u32 1, %s4393_s28  }
 0xddb   : > { %s2574_s15 = scalar_lea.sflag [#allocation8], %s2573_s24 }
 0xddc   : > { %p2882_p11 = pnand %p2885_p10, %p3426_p7 }
 0xdde   : > { %3243 = dma.done.wait (!%p2882_p11), %s2574_s15, 256  }
 0xddf   : > { %3245 = vsyncadd (!%p2882_p11), %s2574_s15, 4294967040  ;;  %s24_s26 = sadd.s32 1, %s4392_s27   ;;  %s4395_s22 = sld [smem:[#allocation11_spill]] }
 0xde0   : > { %p21_p12 = scmp.ge.s32.totalorder %s24_s26, 10   ;;  %s4396_s19 = sld [smem:[#allocation20_spill]] }
 0xde1   : > { %s4397_s20 = sld [smem:[#allocation12_spill]]  ;;  %s4398_s21 = sld [smem:[#allocation13_spill]] }
 0xde2   : > { %s4399_s13 = sld [smem:[#allocation14_spill]]  ;;  %s4400_s23 = sld [smem:[#allocation16_spill]] }
 0xde3   : > { %s4401_s24 = sld [smem:[#allocation17_spill]]  ;;  %s4402_s25 = sld [smem:[#allocation19_spill]] }
 0xde4   : > { %s4403_s17 = smov %s3252_s18  ;;  %23 = sbr.rel (!%p21_p12) target bundleno = 9 (0x9), region = 110 }
 0xde5   : > { %s4404_s18 = smov %s4395_s22 }
 0xde8   : > { %s4405_s22 = smov %s4399_s13 }
 0xdeb   :  { %2579 = vsyncpa [#allocation8], 1 }
 0xdec   :  { %2581 = vsyncpa [#allocation8 + $0x1], 1 }

</bundles_post_ra>
